<compile_context>
chip_gen: v5e
topology: v5e:2x2
jax: 0.10.0
libtpu: 0.0.40
codegen_flags: <defaults>
</compile_context>

<pallas_src>
import jax
import jax.numpy as jnp
from jax import lax
from jax.experimental import pallas as pl
from jax.experimental.pallas import tpu as pltpu

EPS = 1e-5
# Raise the scoped-VMEM cap (v5e default is 16 MiB); keep headroom for v7x (64 MiB phys).
VMEM_LIMIT = 48 * 1024 * 1024


# ---------------------------------------------------------------------------
# In-kernel helpers
# ---------------------------------------------------------------------------
def _partial_stats(h2d):
    """Per-channel [sum; sum_of_squares] of a (rows, C) f32 tensor -> (2, C)."""
    s = jnp.sum(h2d, axis=0, keepdims=True)
    sq = jnp.sum(h2d * h2d, axis=0, keepdims=True)
    return jnp.concatenate([s, sq], axis=0)


# ---------------------------------------------------------------------------
# Kernels (grid = (batch, row_block); leading batch dim squeezed via None)
# ---------------------------------------------------------------------------
def stats_kernel(x_ref, stat_ref):
    # bn1 statistics: per-tile partial [sum; sum_sq] of x.
    c = x_ref.shape[-1]
    stat_ref[...] = _partial_stats(x_ref[...].reshape(-1, c))


def conv1_kernel(x_ref, s1_ref, w1_ref, h1_ref, stat_ref):
    # h1 = conv1_1x1(relu(bn1(x))) as a channel matmul; also bn2 partial stats.
    th, w, cin = x_ref.shape
    s1 = s1_ref[...]
    h = jnp.maximum(x_ref[...].reshape(th * w, cin) * s1[0:1, :] + s1[1:2, :], 0.0)
    h1 = jnp.dot(h.astype(jnp.bfloat16), w1_ref[...],
                 preferred_element_type=jnp.float32)
    stat_ref[...] = _partial_stats(h1)                   # stats from the f32 accumulator
    h1_ref[...] = h1.reshape(th, w, -1).astype(h1_ref.dtype)   # bf16 inter-pass store


def conv2_kernel(h1_ref, s2_ref, w2_ref, h2_ref, stat_ref):
    # h2 = conv2_3x3(relu(bn2(h1))), stride 1, pad 1.
    #   h1_ref : (H, W, P)  bf16 whole image (resident across the row-block axis)
    #   w2_ref : (3, 3P, P) bf16, one dy-major (3P, P) weight group per dx
    #   h2_ref : (TH, W, P) bf16 output row block
    # Three MXU matmuls with K = 3P; dx shifts via pltpu.roll + edge masks -> no
    # 9P im2col buffer, no padded scratch, no full-tensor re-zeroing.
    H, W, P = h1_ref.shape
    TH = h2_ref.shape[0]
    r = pl.program_id(1)
    row0 = pl.multiple_of(r * TH, TH)

    s2 = s2_ref[...]
    scale, shift = s2[0:1, :], s2[1:2, :]

    def act(rows):  # (rows, W, P) -> (rows*W, P) f32 relu(bn2(.))
        t = rows.astype(jnp.float32).reshape(-1, P)
        return jnp.maximum(t * scale + shift, 0.0)

    # Window = [top halo row | TH block rows | bottom halo row], halo rows outside the
    # image are zero *after* bn+relu (matching the conv's zero padding).
    main = act(h1_ref[pl.ds(row0, TH), :, :])
    top = jnp.where(row0 > 0,
                    act(h1_ref[pl.ds(jnp.maximum(row0 - 1, 0), 1), :, :]), 0.0)
    bot = jnp.where(row0 + TH < H,
                    act(h1_ref[pl.ds(jnp.minimum(row0 + TH, H - 1), 1), :, :]), 0.0)
    win = jnp.concatenate([top, main, bot], axis=0)          # ((TH+2)*W, P) f32
    n = (TH + 2) * W

    # x coordinate of every window row (zeroes the left/right conv halo after a roll).
    xw = lax.broadcasted_iota(jnp.int32, (TH + 2, W, 1), 1).reshape(n, 1)
    shifted = (
        jnp.where(xw >= 1, pltpu.roll(win, 1, 0), 0.0),           # dx=0: source x-1
        win,                                                      # dx=1: source x
        jnp.where(xw <= W - 2, pltpu.roll(win, n - 1, 0), 0.0),   # dx=2: source x+1
    )

    acc = None
    for dx in range(3):
        sw = shifted[dx]
        # K = 3P operand: dy-major stack of the three row-offset views of the window.
        col = jnp.concatenate([sw[dy * W: dy * W + TH * W] for dy in range(3)],
                              axis=-1)                            # (TH*W, 3P)
        part = jnp.dot(col.astype(jnp.bfloat16), w2_ref[dx],
                       preferred_element_type=jnp.float32)
        acc = part if acc is None else acc + part

    stat_ref[...] = _partial_stats(acc)                  # bn3 stats from the f32 acc
    h2_ref[...] = acc.reshape(TH, W, P).astype(h2_ref.dtype)     # bf16 inter-pass store


def conv3_kernel(h2_ref, x_ref, s3_ref, w3_ref, out_ref, nstat_ref):
    # out = conv3_1x1(relu(bn3(h2))) + x  (identity residual), plus producer-side
    # bn1 partial stats of `out` for the next block.
    th, w, p = h2_ref.shape
    cout = w3_ref.shape[1]
    s3 = s3_ref[...]
    h = jnp.maximum(h2_ref[...].astype(jnp.float32).reshape(th * w, p) * s3[0:1, :]
                    + s3[1:2, :], 0.0)
    y = jnp.dot(h.astype(jnp.bfloat16), w3_ref[...],
                preferred_element_type=jnp.float32)
    out = y + x_ref[...].reshape(th * w, cout)
    out_ref[...] = out.reshape(th, w, cout)
    nstat_ref[...] = _partial_stats(out)


# ---------------------------------------------------------------------------
# Wrapper
# ---------------------------------------------------------------------------
def _finalize_bn(partials, gamma, beta, count):
    """Reduce per-tile partials and fold BN into per-channel scale/shift."""
    s = jnp.sum(partials, axis=(0, 1))                         # (2, C)
    mean = s[0] / count
    var = jnp.maximum(s[1] / count - mean * mean, 0.0)         # biased variance
    scale = gamma.reshape(-1) * lax.rsqrt(var + EPS)
    shift = beta.reshape(-1) - mean * scale
    return jnp.stack([scale, shift], axis=0).astype(jnp.float32)   # (2, C)


def preact_bottleneck_nhwc(x, params, block_rows=None):
    """x: (N, H, W, Cin) f32 NHWC.  Returns (out (N,H,W,Cout) f32, next-bn1 partials)."""
    w1, w2, w3, g1, b1, g2, b2, g3, b3 = params
    N, H, W, Cin = x.shape
    P = w1.shape[1]
    Cout = w3.shape[1]
    assert Cin == Cout, "identity residual requires inplanes == planes*4"
    count = N * H * W

    TH = block_rows if block_rows is not None else (8 if H % 8 == 0 else H)
    assert H % TH == 0, (H, TH)
    RB = H // TH
    grid = (N, RB)

    # Weights in bf16 for the MXU (f32 accumulation inside the kernels).
    w1b = w1.astype(jnp.bfloat16)                                   # (Cin, P)
    # HWIO (3,3,P,P) -> (dx, dy*P + cin, cout): one dy-major weight group per dx.
    w2g = jnp.transpose(w2, (1, 0, 2, 3)).reshape(3, 3 * P, P).astype(jnp.bfloat16)
    w3b = w3.astype(jnp.bfloat16)                                   # (P, Cout)

    par_pp = pltpu.CompilerParams(dimension_semantics=("parallel", "parallel"),
                                  vmem_limit_bytes=VMEM_LIMIT)
    par_pa = pltpu.CompilerParams(dimension_semantics=("parallel", "arbitrary"),
                                  vmem_limit_bytes=VMEM_LIMIT)

    def row_spec(c):
        return pl.BlockSpec((None, TH, W, c), lambda i, r: (i, r, 0, 0))

    def stat_spec(c):
        return pl.BlockSpec((None, None, 2, c), lambda i, r: (i, r, 0, 0))

    def full_spec(shape):
        zeros = (0,) * len(shape)
        return pl.BlockSpec(shape, lambda i, r: zeros)

    # Pass 1: bn1 partial stats of x.
    # TODO(synk): when blocks are chained, drop this pass and consume the previous
    # block's `next_stats` output instead (saves one full read of x).
    stats1 = pl.pallas_call(
        stats_kernel, grid=grid,
        in_specs=[row_spec(Cin)],
        out_specs=stat_spec(Cin),
        out_shape=jax.ShapeDtypeStruct((N, RB, 2, Cin), jnp.float32),
        compiler_params=par_pp,
        cost_estimate=pl.CostEstimate(flops=3 * count * Cin, transcendentals=0,
                                      bytes_accessed=4 * count * Cin),
    )(x)
    s1 = _finalize_bn(stats1, g1, b1, count)

    # Pass 2: h1 = conv1_1x1(relu(bn1(x)))  (bf16 store) + bn2 partial stats.
    h1, stats2 = pl.pallas_call(
        conv1_kernel, grid=grid,
        in_specs=[row_spec(Cin), full_spec((2, Cin)), full_spec((Cin, P))],
        out_specs=[row_spec(P), stat_spec(P)],
        out_shape=[jax.ShapeDtypeStruct((N, H, W, P), jnp.bfloat16),
                   jax.ShapeDtypeStruct((N, RB, 2, P), jnp.float32)],
        compiler_params=par_pp,
        cost_estimate=pl.CostEstimate(
            flops=2 * count * Cin * P + 6 * count * Cin + 3 * count * P,
            transcendentals=0,
            bytes_accessed=4 * count * Cin + 2 * count * P),
    )(x, s1, w1b)
    s2 = _finalize_bn(stats2, g2, b2, count)

    # Pass 3: h2 = conv2_3x3(relu(bn2(h1)))  (bf16 store) + bn3 partial stats.
    # Whole-image h1 block (bf16, small) stays resident across the row axis so the
    # 1-row halo is a dynamic row slice; the row axis is therefore "arbitrary".
    h2, stats3 = pl.pallas_call(
        conv2_kernel, grid=grid,
        in_specs=[pl.BlockSpec((None, H, W, P), lambda i, r: (i, 0, 0, 0)),
                  full_spec((2, P)), full_spec((3, 3 * P, P))],
        out_specs=[row_spec(P), stat_spec(P)],
        out_shape=[jax.ShapeDtypeStruct((N, H, W, P), jnp.bfloat16),
                   jax.ShapeDtypeStruct((N, RB, 2, P), jnp.float32)],
        compiler_params=par_pa,
        cost_estimate=pl.CostEstimate(
            flops=2 * count * 9 * P * P + 12 * count * P,
            transcendentals=0,
            bytes_accessed=4 * count * P),
    )(h1, s2, w2g)
    s3 = _finalize_bn(stats3, g3, b3, count)

    # Pass 4: out = conv3_1x1(relu(bn3(h2))) + x, plus next-block bn1 partial stats.
    out, next_stats = pl.pallas_call(
        conv3_kernel, grid=grid,
        in_specs=[row_spec(P), row_spec(Cout),
                  full_spec((2, P)), full_spec((P, Cout))],
        out_specs=[row_spec(Cout), stat_spec(Cout)],
        out_shape=[jax.ShapeDtypeStruct((N, H, W, Cout), jnp.float32),
                   jax.ShapeDtypeStruct((N, RB, 2, Cout), jnp.float32)],
        compiler_params=par_pp,
        cost_estimate=pl.CostEstimate(
            flops=2 * count * P * Cout + 6 * count * P + 4 * count * Cout,
            transcendentals=0,
            bytes_accessed=2 * count * P + 8 * count * Cout),
    )(h2, x, s3, w3b)
    return out, next_stats


def preact_bottleneck(x_nchw, params, block_rows=None):
    """x_nchw: (N, C, H, W) float32. Returns (N, C, H, W) float32."""
    x = jnp.transpose(x_nchw, (0, 2, 3, 1)).astype(jnp.float32)     # NCHW -> NHWC
    out, _ = preact_bottleneck_nhwc(x, params, block_rows)
    return jnp.transpose(out, (0, 3, 1, 2))                         # NHWC -> NCHW


# ---------------------------------------------------------------------------
# Pure-JAX reference (same math, XLA convs) for a correctness check
# ---------------------------------------------------------------------------
def reference_forward(x_nchw, params):
    w1, w2, w3, g1, b1, g2, b2, g3, b3 = params
    x = jnp.transpose(x_nchw, (0, 2, 3, 1)).astype(jnp.float32)

    def bn_relu(t, g, b):
        mean = jnp.mean(t, axis=(0, 1, 2), keepdims=True)
        var = jnp.mean((t - mean) ** 2, axis=(0, 1, 2), keepdims=True)
        y = (t - mean) * lax.rsqrt(var + EPS) * g.reshape(1, 1, 1, -1) \
            + b.reshape(1, 1, 1, -1)
        return jnp.maximum(y, 0.0)

    dn = ('NHWC', 'HWIO', 'NHWC')
    h = bn_relu(x, g1, b1)
    h = lax.conv_general_dilated(h, w1.reshape(1, 1, *w1.shape), (1, 1),
                                 'VALID', dimension_numbers=dn)
    h = bn_relu(h, g2, b2)
    h = lax.conv_general_dilated(h, w2, (1, 1), 'SAME', dimension_numbers=dn)
    h = bn_relu(h, g3, b3)
    h = lax.conv_general_dilated(h, w3.reshape(1, 1, *w3.shape), (1, 1),
                                 'VALID', dimension_numbers=dn)
    out = h + x
    return jnp.transpose(out, (0, 3, 1, 2))


if __name__ == "__main__":
    # Small but lane-friendly configuration: inplanes = planes * expansion so the
    # identity residual of the PyTorch module is valid with downsample=None; the
    # residual/output channel count (128) is lane-dense.  H=16 with TH=8 exercises
    # the row-tiled halo path.
    N, H, W = 2, 16, 16
    planes = 32
    inplanes = planes * 4    # 128
    Cout = planes * 4        # 128

    key = jax.random.PRNGKey(0)
    keys = jax.random.split(key, 10)
    x = jax.random.normal(keys[0], (N, inplanes, H, W), jnp.float32)

    # Deterministic synthetic parameters (weights already in kernel layout):
    #   conv1.weight (planes, inplanes, 1, 1)   -> w1 (inplanes, planes)
    #   conv2.weight (planes, planes, 3, 3)     -> w2 (3, 3, planes, planes)  [HWIO]
    #   conv3.weight (4*planes, planes, 1, 1)   -> w3 (planes, 4*planes)
    w1 = jax.random.normal(keys[1], (inplanes, planes), jnp.float32) * (inplanes ** -0.5)
    w2 = jax.random.normal(keys[2], (3, 3, planes, planes), jnp.float32) * ((9 * planes) ** -0.5)
    w3 = jax.random.normal(keys[3], (planes, Cout), jnp.float32) * (planes ** -0.5)
    g1 = 1.0 + 0.1 * jax.random.normal(keys[4], (inplanes,), jnp.float32)
    b1 = 0.1 * jax.random.normal(keys[5], (inplanes,), jnp.float32)
    g2 = 1.0 + 0.1 * jax.random.normal(keys[6], (planes,), jnp.float32)
    b2 = 0.1 * jax.random.normal(keys[7], (planes,), jnp.float32)
    g3 = 1.0 + 0.1 * jax.random.normal(keys[8], (planes,), jnp.float32)
    b3 = 0.1 * jax.random.normal(keys[9], (planes,), jnp.float32)
    params = (w1, w2, w3, g1, b1, g2, b2, g3, b3)

    out = jax.block_until_ready(jax.jit(preact_bottleneck)(x, params))
    ref = jax.block_until_ready(reference_forward(x, params))

    assert out.shape == (N, Cout, H, W), out.shape
    max_err = float(jnp.max(jnp.abs(out - ref)))
    assert jnp.allclose(out, ref, atol=5e-2, rtol=5e-2), f"max_err={max_err}"
    print("KERNEL_OK")
</pallas_src>

<mosaic_0001>
module attributes {stable_mosaic.version = 11 : i64} {
  func.func @stats_kernel(%arg0: i32, %arg1: i32, %arg2: memref<1x8x16x128xf32, #tpu.memory_space<vmem>>, %arg3: memref<1x1x2x128xf32, #tpu.memory_space<vmem>>) attributes {dimension_semantics = [#tpu.dimension_semantics<parallel>, #tpu.dimension_semantics<parallel>], iteration_bounds = array<i64: 2, 2>, scalar_prefetch = 0 : i64, scratch_operands = 0 : i64, tpu.core_type = #tpu.core_type<tc>, window_params = [{transform_indices = @transform_0, window_bounds = array<i64: 1, 8, 16, 128>}, {transform_indices = @transform_1, window_bounds = array<i64: 1, 1, 2, 128>}]} {
    %c0 = arith.constant 0 : index
    %c0_0 = arith.constant 0 : index
    %c0_1 = arith.constant 0 : index
    %c0_2 = arith.constant 0 : index
    %0 = vector.load %arg2[%c0, %c0_0, %c0_1, %c0_2] : memref<1x8x16x128xf32, #tpu.memory_space<vmem>>, vector<1x8x16x128xf32>
    %1 = vector.shape_cast %0 : vector<1x8x16x128xf32> to vector<8x16x128xf32>
    %2 = vector.shape_cast %1 : vector<8x16x128xf32> to vector<128x128xf32>
    %cst = arith.constant dense<0.000000e+00> : vector<128xf32>
    %3 = vector.multi_reduction <add>, %2, %cst [0] : vector<128x128xf32> to vector<128xf32>
    %4 = vector.shape_cast %3 : vector<128xf32> to vector<1x128xf32>
    %5 = arith.mulf %2, %2 : vector<128x128xf32>
    %cst_3 = arith.constant dense<0.000000e+00> : vector<128xf32>
    %6 = vector.multi_reduction <add>, %5, %cst_3 [0] : vector<128x128xf32> to vector<128xf32>
    %7 = vector.shape_cast %6 : vector<128xf32> to vector<1x128xf32>
    %8 = tpu.concatenate %4, %7 in 0 : vector<1x128xf32>, vector<1x128xf32> -> vector<2x128xf32>
    %c0_4 = arith.constant 0 : index
    %c0_5 = arith.constant 0 : index
    %c0_6 = arith.constant 0 : index
    %c0_7 = arith.constant 0 : index
    %9 = vector.load %arg3[%c0_4, %c0_5, %c0_6, %c0_7] : memref<1x1x2x128xf32, #tpu.memory_space<vmem>>, vector<1x1x2x128xf32>
    %10 = vector.shape_cast %9 : vector<1x1x2x128xf32> to vector<2x128xf32>
    %11 = vector.shape_cast %8 : vector<2x128xf32> to vector<1x1x2x128xf32>
    tpu.vector_store %arg3[%c0_4, %c0_5, %c0_6, %c0_7], %11 {strides = array<i32>} : memref<1x1x2x128xf32, #tpu.memory_space<vmem>>, vector<1x1x2x128xf32>,
    return
  }
  func.func @transform_0(%arg0: i32, %arg1: i32) -> (i32, i32, i32, i32) {
    %c0_i32 = arith.constant 0 : i32
    %c0_i32_0 = arith.constant 0 : i32
    %c0_i32_1 = arith.constant 0 : i32
    return %arg0, %arg1, %c0_i32, %c0_i32_0 : i32, i32, i32, i32
  }
  func.func @transform_1(%arg0: i32, %arg1: i32) -> (i32, i32, i32, i32) {
    %c0_i32 = arith.constant 0 : i32
    %c0_i32_0 = arith.constant 0 : i32
    %c0_i32_1 = arith.constant 0 : i32
    return %arg0, %arg1, %c0_i32, %c0_i32_0 : i32, i32, i32, i32
  }
}

module attributes {stable_mosaic.version = 11 : i64} {
  func.func @conv1_kernel(%arg0: i32, %arg1: i32, %arg2: memref<1x8x16x128xf32, #tpu.memory_space<vmem>>, %arg3: memref<2x128xf32, #tpu.memory_space<vmem>>, %arg4: memref<128x32xbf16, #tpu.memory_space<vmem>>, %arg5: memref<1x8x16x32xbf16, #tpu.memory_space<vmem>>, %arg6: memref<1x1x2x32xf32, #tpu.memory_space<vmem>>) attributes {dimension_semantics = [#tpu.dimension_semantics<parallel>, #tpu.dimension_semantics<parallel>], iteration_bounds = array<i64: 2, 2>, scalar_prefetch = 0 : i64, scratch_operands = 0 : i64, tpu.core_type = #tpu.core_type<tc>, window_params = [{transform_indices = @transform_0, window_bounds = array<i64: 1, 8, 16, 128>}, {pipeline_mode = #tpu.pipeline_mode<synchronous>, transform_indices = @transform_1, window_bounds = array<i64: 2, 128>}, {pipeline_mode = #tpu.pipeline_mode<synchronous>, transform_indices = @transform_2, window_bounds = array<i64: 128, 32>}, {transform_indices = @transform_3, window_bounds = array<i64: 1, 8, 16, 32>}, {transform_indices = @transform_4, window_bounds = array<i64: 1, 1, 2, 32>}]} {
    %c0 = arith.constant 0 : index
    %c0_0 = arith.constant 0 : index
    %0 = vector.load %arg3[%c0, %c0_0] : memref<2x128xf32, #tpu.memory_space<vmem>>, vector<2x128xf32>
    %c0_1 = arith.constant 0 : index
    %c0_2 = arith.constant 0 : index
    %c0_3 = arith.constant 0 : index
    %c0_4 = arith.constant 0 : index
    %1 = vector.load %arg2[%c0_1, %c0_2, %c0_3, %c0_4] : memref<1x8x16x128xf32, #tpu.memory_space<vmem>>, vector<1x8x16x128xf32>
    %2 = vector.shape_cast %1 : vector<1x8x16x128xf32> to vector<8x16x128xf32>
    %3 = vector.shape_cast %2 : vector<8x16x128xf32> to vector<128x128xf32>
    %4 = vector.extract_strided_slice %0 {offsets = [0, 0], sizes = [1, 128], strides = [1, 1]} : vector<2x128xf32> to vector<1x128xf32>
    %5 = vector.broadcast %4 : vector<1x128xf32> to vector<128x128xf32>
    %6 = arith.mulf %3, %5 : vector<128x128xf32>
    %7 = vector.extract_strided_slice %0 {offsets = [1, 0], sizes = [1, 128], strides = [1, 1]} : vector<2x128xf32> to vector<1x128xf32>
    %8 = vector.broadcast %7 : vector<1x128xf32> to vector<128x128xf32>
    %9 = arith.addf %6, %8 : vector<128x128xf32>
    %cst = arith.constant 0.000000e+00 : f32
    %10 = vector.broadcast %cst : f32 to vector<128x128xf32>
    %11 = arith.maximumf %9, %10 : vector<128x128xf32>
    %12 = arith.truncf %11 : vector<128x128xf32> to vector<128x128xbf16>
    %c0_5 = arith.constant 0 : index
    %c0_6 = arith.constant 0 : index
    %13 = vector.load %arg4[%c0_5, %c0_6] : memref<128x32xbf16, #tpu.memory_space<vmem>>, vector<128x32xbf16>
    %cst_7 = arith.constant dense<0.000000e+00> : vector<128x32xf32>
    %14 = tpu.matmul %12, %13, %cst_7 {dimension_numbers = #tpu.dot_dimension_numbers<[1], [0], [0], [1], [0, 0, 1, 1], [], []>} : vector<128x128xbf16>, vector<128x32xbf16>, vector<128x32xf32> -> vector<128x32xf32>
    %cst_8 = arith.constant dense<0.000000e+00> : vector<32xf32>
    %15 = vector.multi_reduction <add>, %14, %cst_8 [0] : vector<128x32xf32> to vector<32xf32>
    %16 = vector.shape_cast %15 : vector<32xf32> to vector<1x32xf32>
    %17 = arith.mulf %14, %14 : vector<128x32xf32>
    %cst_9 = arith.constant dense<0.000000e+00> : vector<32xf32>
    %18 = vector.multi_reduction <add>, %17, %cst_9 [0] : vector<128x32xf32> to vector<32xf32>
    %19 = vector.shape_cast %18 : vector<32xf32> to vector<1x32xf32>
    %20 = tpu.concatenate %16, %19 in 0 : vector<1x32xf32>, vector<1x32xf32> -> vector<2x32xf32>
    %c0_10 = arith.constant 0 : index
    %c0_11 = arith.constant 0 : index
    %c0_12 = arith.constant 0 : index
    %c0_13 = arith.constant 0 : index
    %21 = vector.load %arg6[%c0_10, %c0_11, %c0_12, %c0_13] : memref<1x1x2x32xf32, #tpu.memory_space<vmem>>, vector<1x1x2x32xf32>
    %22 = vector.shape_cast %21 : vector<1x1x2x32xf32> to vector<2x32xf32>
    %23 = vector.shape_cast %20 : vector<2x32xf32> to vector<1x1x2x32xf32>
    tpu.vector_store %arg6[%c0_10, %c0_11, %c0_12, %c0_13], %23 {strides = array<i32>} : memref<1x1x2x32xf32, #tpu.memory_space<vmem>>, vector<1x1x2x32xf32>,
    %24 = vector.shape_cast %14 : vector<128x32xf32> to vector<8x16x32xf32>
    %25 = arith.truncf %24 : vector<8x16x32xf32> to vector<8x16x32xbf16>
    %c0_14 = arith.constant 0 : index
    %c0_15 = arith.constant 0 : index
    %c0_16 = arith.constant 0 : index
    %c0_17 = arith.constant 0 : index
    %26 = vector.load %arg5[%c0_14, %c0_15, %c0_16, %c0_17] : memref<1x8x16x32xbf16, #tpu.memory_space<vmem>>, vector<1x8x16x32xbf16>
    %27 = vector.shape_cast %26 : vector<1x8x16x32xbf16> to vector<8x16x32xbf16>
    %28 = vector.shape_cast %25 : vector<8x16x32xbf16> to vector<1x8x16x32xbf16>
    tpu.vector_store %arg5[%c0_14, %c0_15, %c0_16, %c0_17], %28 {strides = array<i32>} : memref<1x8x16x32xbf16, #tpu.memory_space<vmem>>, vector<1x8x16x32xbf16>,
    return
  }
  func.func @transform_0(%arg0: i32, %arg1: i32) -> (i32, i32, i32, i32) {
    %c0_i32 = arith.constant 0 : i32
    %c0_i32_0 = arith.constant 0 : i32
    %c0_i32_1 = arith.constant 0 : i32
    return %arg0, %arg1, %c0_i32, %c0_i32_0 : i32, i32, i32, i32
  }
  func.func @transform_1(%arg0: i32, %arg1: i32) -> (i32, i32) {
    %c0_i32 = arith.constant 0 : i32
    %c0_i32_0 = arith.constant 0 : i32
    %c0_i32_1 = arith.constant 0 : i32
    return %c0_i32, %c0_i32_0 : i32, i32
  }
  func.func @transform_2(%arg0: i32, %arg1: i32) -> (i32, i32) {
    %c0_i32 = arith.constant 0 : i32
    %c0_i32_0 = arith.constant 0 : i32
    %c0_i32_1 = arith.constant 0 : i32
    return %c0_i32, %c0_i32_0 : i32, i32
  }
  func.func @transform_3(%arg0: i32, %arg1: i32) -> (i32, i32, i32, i32) {
    %c0_i32 = arith.constant 0 : i32
    %c0_i32_0 = arith.constant 0 : i32
    %c0_i32_1 = arith.constant 0 : i32
    return %arg0, %arg1, %c0_i32, %c0_i32_0 : i32, i32, i32, i32
  }
  func.func @transform_4(%arg0: i32, %arg1: i32) -> (i32, i32, i32, i32) {
    %c0_i32 = arith.constant 0 : i32
    %c0_i32_0 = arith.constant 0 : i32
    %c0_i32_1 = arith.constant 0 : i32
    return %arg0, %arg1, %c0_i32, %c0_i32_0 : i32, i32, i32, i32
  }
}

module attributes {stable_mosaic.version = 11 : i64} {
  func.func @conv3_kernel(%arg0: i32, %arg1: i32, %arg2: memref<1x8x16x32xbf16, #tpu.memory_space<vmem>>, %arg3: memref<1x8x16x128xf32, #tpu.memory_space<vmem>>, %arg4: memref<2x32xf32, #tpu.memory_space<vmem>>, %arg5: memref<32x128xbf16, #tpu.memory_space<vmem>>, %arg6: memref<1x8x16x128xf32, #tpu.memory_space<vmem>>, %arg7: memref<1x1x2x128xf32, #tpu.memory_space<vmem>>) attributes {dimension_semantics = [#tpu.dimension_semantics<parallel>, #tpu.dimension_semantics<parallel>], iteration_bounds = array<i64: 2, 2>, scalar_prefetch = 0 : i64, scratch_operands = 0 : i64, tpu.core_type = #tpu.core_type<tc>, window_params = [{transform_indices = @transform_0, window_bounds = array<i64: 1, 8, 16, 32>}, {transform_indices = @transform_1, window_bounds = array<i64: 1, 8, 16, 128>}, {pipeline_mode = #tpu.pipeline_mode<synchronous>, transform_indices = @transform_2, window_bounds = array<i64: 2, 32>}, {pipeline_mode = #tpu.pipeline_mode<synchronous>, transform_indices = @transform_3, window_bounds = array<i64: 32, 128>}, {transform_indices = @transform_4, window_bounds = array<i64: 1, 8, 16, 128>}, {transform_indices = @transform_5, window_bounds = array<i64: 1, 1, 2, 128>}]} {
    %c0 = arith.constant 0 : index
    %c0_0 = arith.constant 0 : index
    %0 = vector.load %arg4[%c0, %c0_0] : memref<2x32xf32, #tpu.memory_space<vmem>>, vector<2x32xf32>
    %c0_1 = arith.constant 0 : index
    %c0_2 = arith.constant 0 : index
    %c0_3 = arith.constant 0 : index
    %c0_4 = arith.constant 0 : index
    %1 = vector.load %arg2[%c0_1, %c0_2, %c0_3, %c0_4] : memref<1x8x16x32xbf16, #tpu.memory_space<vmem>>, vector<1x8x16x32xbf16>
    %2 = vector.shape_cast %1 : vector<1x8x16x32xbf16> to vector<8x16x32xbf16>
    %3 = arith.extf %2 : vector<8x16x32xbf16> to vector<8x16x32xf32>
    %4 = vector.shape_cast %3 : vector<8x16x32xf32> to vector<128x32xf32>
    %5 = vector.extract_strided_slice %0 {offsets = [0, 0], sizes = [1, 32], strides = [1, 1]} : vector<2x32xf32> to vector<1x32xf32>
    %6 = vector.broadcast %5 : vector<1x32xf32> to vector<128x32xf32>
    %7 = arith.mulf %4, %6 : vector<128x32xf32>
    %8 = vector.extract_strided_slice %0 {offsets = [1, 0], sizes = [1, 32], strides = [1, 1]} : vector<2x32xf32> to vector<1x32xf32>
    %9 = vector.broadcast %8 : vector<1x32xf32> to vector<128x32xf32>
    %10 = arith.addf %7, %9 : vector<128x32xf32>
    %cst = arith.constant 0.000000e+00 : f32
    %11 = vector.broadcast %cst : f32 to vector<128x32xf32>
    %12 = arith.maximumf %10, %11 : vector<128x32xf32>
    %13 = arith.truncf %12 : vector<128x32xf32> to vector<128x32xbf16>
    %c0_5 = arith.constant 0 : index
    %c0_6 = arith.constant 0 : index
    %14 = vector.load %arg5[%c0_5, %c0_6] : memref<32x128xbf16, #tpu.memory_space<vmem>>, vector<32x128xbf16>
    %cst_7 = arith.constant dense<0.000000e+00> : vector<128x128xf32>
    %15 = tpu.matmul %13, %14, %cst_7 {dimension_numbers = #tpu.dot_dimension_numbers<[1], [0], [0], [1], [0, 0, 1, 1], [], []>} : vector<128x32xbf16>, vector<32x128xbf16>, vector<128x128xf32> -> vector<128x128xf32>
    %c0_8 = arith.constant 0 : index
    %c0_9 = arith.constant 0 : index
    %c0_10 = arith.constant 0 : index
    %c0_11 = arith.constant 0 : index
    %16 = vector.load %arg3[%c0_8, %c0_9, %c0_10, %c0_11] : memref<1x8x16x128xf32, #tpu.memory_space<vmem>>, vector<1x8x16x128xf32>
    %17 = vector.shape_cast %16 : vector<1x8x16x128xf32> to vector<8x16x128xf32>
    %18 = vector.shape_cast %17 : vector<8x16x128xf32> to vector<128x128xf32>
    %19 = arith.addf %15, %18 : vector<128x128xf32>
    %20 = vector.shape_cast %19 : vector<128x128xf32> to vector<8x16x128xf32>
    %c0_12 = arith.constant 0 : index
    %c0_13 = arith.constant 0 : index
    %c0_14 = arith.constant 0 : index
    %c0_15 = arith.constant 0 : index
    %21 = vector.load %arg6[%c0_12, %c0_13, %c0_14, %c0_15] : memref<1x8x16x128xf32, #tpu.memory_space<vmem>>, vector<1x8x16x128xf32>
    %22 = vector.shape_cast %21 : vector<1x8x16x128xf32> to vector<8x16x128xf32>
    %23 = vector.shape_cast %20 : vector<8x16x128xf32> to vector<1x8x16x128xf32>
    tpu.vector_store %arg6[%c0_12, %c0_13, %c0_14, %c0_15], %23 {strides = array<i32>} : memref<1x8x16x128xf32, #tpu.memory_space<vmem>>, vector<1x8x16x128xf32>,
    %cst_16 = arith.constant dense<0.000000e+00> : vector<128xf32>
    %24 = vector.multi_reduction <add>, %19, %cst_16 [0] : vector<128x128xf32> to vector<128xf32>
    %25 = vector.shape_cast %24 : vector<128xf32> to vector<1x128xf32>
    %26 = arith.mulf %19, %19 : vector<128x128xf32>
    %cst_17 = arith.constant dense<0.000000e+00> : vector<128xf32>
    %27 = vector.multi_reduction <add>, %26, %cst_17 [0] : vector<128x128xf32> to vector<128xf32>
    %28 = vector.shape_cast %27 : vector<128xf32> to vector<1x128xf32>
    %29 = tpu.concatenate %25, %28 in 0 : vector<1x128xf32>, vector<1x128xf32> -> vector<2x128xf32>
    %c0_18 = arith.constant 0 : index
    %c0_19 = arith.constant 0 : index
    %c0_20 = arith.constant 0 : index
    %c0_21 = arith.constant 0 : index
    %30 = vector.load %arg7[%c0_18, %c0_19, %c0_20, %c0_21] : memref<1x1x2x128xf32, #tpu.memory_space<vmem>>, vector<1x1x2x128xf32>
    %31 = vector.shape_cast %30 : vector<1x1x2x128xf32> to vector<2x128xf32>
    %32 = vector.shape_cast %29 : vector<2x128xf32> to vector<1x1x2x128xf32>
    tpu.vector_store %arg7[%c0_18, %c0_19, %c0_20, %c0_21], %32 {strides = array<i32>} : memref<1x1x2x128xf32, #tpu.memory_space<vmem>>, vector<1x1x2x128xf32>,
    return
  }
  func.func @transform_0(%arg0: i32, %arg1: i32) -> (i32, i32, i32, i32) {
    %c0_i32 = arith.constant 0 : i32
    %c0_i32_0 = arith.constant 0 : i32
    %c0_i32_1 = arith.constant 0 : i32
    return %arg0, %arg1, %c0_i32, %c0_i32_0 : i32, i32, i32, i32
  }
  func.func @transform_1(%arg0: i32, %arg1: i32) -> (i32, i32, i32, i32) {
    %c0_i32 = arith.constant 0 : i32
    %c0_i32_0 = arith.constant 0 : i32
    %c0_i32_1 = arith.constant 0 : i32
    return %arg0, %arg1, %c0_i32, %c0_i32_0 : i32, i32, i32, i32
  }
  func.func @transform_2(%arg0: i32, %arg1: i32) -> (i32, i32) {
    %c0_i32 = arith.constant 0 : i32
    %c0_i32_0 = arith.constant 0 : i32
    %c0_i32_1 = arith.constant 0 : i32
    return %c0_i32, %c0_i32_0 : i32, i32
  }
  func.func @transform_3(%arg0: i32, %arg1: i32) -> (i32, i32) {
    %c0_i32 = arith.constant 0 : i32
    %c0_i32_0 = arith.constant 0 : i32
    %c0_i32_1 = arith.constant 0 : i32
    return %c0_i32, %c0_i32_0 : i32, i32
  }
  func.func @transform_4(%arg0: i32, %arg1: i32) -> (i32, i32, i32, i32) {
    %c0_i32 = arith.constant 0 : i32
    %c0_i32_0 = arith.constant 0 : i32
    %c0_i32_1 = arith.constant 0 : i32
    return %arg0, %arg1, %c0_i32, %c0_i32_0 : i32, i32, i32, i32
  }
  func.func @transform_5(%arg0: i32, %arg1: i32) -> (i32, i32, i32, i32) {
    %c0_i32 = arith.constant 0 : i32
    %c0_i32_0 = arith.constant 0 : i32
    %c0_i32_1 = arith.constant 0 : i32
    return %arg0, %arg1, %c0_i32, %c0_i32_0 : i32, i32, i32, i32
  }
}

module attributes {stable_mosaic.version = 11 : i64} {
  func.func @conv2_kernel(%arg0: i32, %arg1: i32, %arg2: memref<1x16x16x32xbf16, #tpu.memory_space<vmem>>, %arg3: memref<2x32xf32, #tpu.memory_space<vmem>>, %arg4: memref<3x96x32xbf16, #tpu.memory_space<vmem>>, %arg5: memref<1x8x16x32xbf16, #tpu.memory_space<vmem>>, %arg6: memref<1x1x2x32xf32, #tpu.memory_space<vmem>>) attributes {dimension_semantics = [#tpu.dimension_semantics<parallel>, #tpu.dimension_semantics<arbitrary>], iteration_bounds = array<i64: 2, 2>, scalar_prefetch = 0 : i64, scratch_operands = 0 : i64, tpu.core_type = #tpu.core_type<tc>, window_params = [{transform_indices = @transform_0, window_bounds = array<i64: 1, 16, 16, 32>}, {pipeline_mode = #tpu.pipeline_mode<synchronous>, transform_indices = @transform_1, window_bounds = array<i64: 2, 32>}, {pipeline_mode = #tpu.pipeline_mode<synchronous>, transform_indices = @transform_2, window_bounds = array<i64: 3, 96, 32>}, {transform_indices = @transform_3, window_bounds = array<i64: 1, 8, 16, 32>}, {transform_indices = @transform_4, window_bounds = array<i64: 1, 1, 2, 32>}]} {
    %c8_i32 = arith.constant 8 : i32
    %0 = arith.muli %arg1, %c8_i32 : i32
    %1 = tpu.assume_multiple %0, 8 : i32
    %c0 = arith.constant 0 : index
    %c0_0 = arith.constant 0 : index
    %2 = vector.load %arg3[%c0, %c0_0] : memref<2x32xf32, #tpu.memory_space<vmem>>, vector<2x32xf32>
    %3 = vector.extract_strided_slice %2 {offsets = [0, 0], sizes = [1, 32], strides = [1, 1]} : vector<2x32xf32> to vector<1x32xf32>
    %4 = vector.extract_strided_slice %2 {offsets = [1, 0], sizes = [1, 32], strides = [1, 1]} : vector<2x32xf32> to vector<1x32xf32>
    %c0_1 = arith.constant 0 : index
    %5 = arith.index_cast %1 : i32 to index
    %c0_2 = arith.constant 0 : index
    %c0_3 = arith.constant 0 : index
    %6 = vector.load %arg2[%c0_1, %5, %c0_2, %c0_3] : memref<1x16x16x32xbf16, #tpu.memory_space<vmem>>, vector<1x8x16x32xbf16>
    %7 = vector.shape_cast %6 : vector<1x8x16x32xbf16> to vector<8x16x32xbf16>
    %8 = arith.extf %7 : vector<8x16x32xbf16> to vector<8x16x32xf32>
    %9 = vector.shape_cast %8 : vector<8x16x32xf32> to vector<128x32xf32>
    %10 = vector.broadcast %3 : vector<1x32xf32> to vector<128x32xf32>
    %11 = arith.mulf %9, %10 : vector<128x32xf32>
    %12 = vector.broadcast %4 : vector<1x32xf32> to vector<128x32xf32>
    %13 = arith.addf %11, %12 : vector<128x32xf32>
    %cst = arith.constant 0.000000e+00 : f32
    %14 = vector.broadcast %cst : f32 to vector<128x32xf32>
    %15 = arith.maximumf %13, %14 : vector<128x32xf32>
    %c0_i32 = arith.constant 0 : i32
    %16 = arith.cmpi sgt, %1, %c0_i32 : i32
    %c1_i32 = arith.constant 1 : i32
    %17 = arith.subi %1, %c1_i32 : i32
    %c0_i32_4 = arith.constant 0 : i32
    %18 = arith.maxsi %17, %c0_i32_4 : i32
    %c0_5 = arith.constant 0 : index
    %19 = arith.index_cast %18 : i32 to index
    %c0_6 = arith.constant 0 : index
    %c0_7 = arith.constant 0 : index
    %20 = vector.load %arg2[%c0_5, %19, %c0_6, %c0_7] : memref<1x16x16x32xbf16, #tpu.memory_space<vmem>>, vector<1x1x16x32xbf16>
    %21 = vector.shape_cast %20 : vector<1x1x16x32xbf16> to vector<1x16x32xbf16>
    %22 = arith.extf %21 : vector<1x16x32xbf16> to vector<1x16x32xf32>
    %23 = vector.shape_cast %22 : vector<1x16x32xf32> to vector<16x32xf32>
    %24 = vector.broadcast %3 : vector<1x32xf32> to vector<16x32xf32>
    %25 = arith.mulf %23, %24 : vector<16x32xf32>
    %26 = vector.broadcast %4 : vector<1x32xf32> to vector<16x32xf32>
    %27 = arith.addf %25, %26 : vector<16x32xf32>
    %cst_8 = arith.constant 0.000000e+00 : f32
    %28 = vector.broadcast %cst_8 : f32 to vector<16x32xf32>
    %29 = arith.maximumf %27, %28 : vector<16x32xf32>
    %cst_9 = arith.constant 0.000000e+00 : f32
    %30 = vector.broadcast %cst_9 : f32 to vector<16x32xf32>
    %31 = arith.select %16, %29, %30 : vector<16x32xf32>
    %c8_i32_10 = arith.constant 8 : i32
    %32 = arith.addi %1, %c8_i32_10 : i32
    %c16_i32 = arith.constant 16 : i32
    %33 = arith.cmpi slt, %32, %c16_i32 : i32
    %c8_i32_11 = arith.constant 8 : i32
    %34 = arith.addi %1, %c8_i32_11 : i32
    %c15_i32 = arith.constant 15 : i32
    %35 = arith.minsi %34, %c15_i32 : i32
    %c0_12 = arith.constant 0 : index
    %36 = arith.index_cast %35 : i32 to index
    %c0_13 = arith.constant 0 : index
    %c0_14 = arith.constant 0 : index
    %37 = vector.load %arg2[%c0_12, %36, %c0_13, %c0_14] : memref<1x16x16x32xbf16, #tpu.memory_space<vmem>>, vector<1x1x16x32xbf16>
    %38 = vector.shape_cast %37 : vector<1x1x16x32xbf16> to vector<1x16x32xbf16>
    %39 = arith.extf %38 : vector<1x16x32xbf16> to vector<1x16x32xf32>
    %40 = vector.shape_cast %39 : vector<1x16x32xf32> to vector<16x32xf32>
    %41 = vector.broadcast %3 : vector<1x32xf32> to vector<16x32xf32>
    %42 = arith.mulf %40, %41 : vector<16x32xf32>
    %43 = vector.broadcast %4 : vector<1x32xf32> to vector<16x32xf32>
    %44 = arith.addf %42, %43 : vector<16x32xf32>
    %cst_15 = arith.constant 0.000000e+00 : f32
    %45 = vector.broadcast %cst_15 : f32 to vector<16x32xf32>
    %46 = arith.maximumf %44, %45 : vector<16x32xf32>
    %cst_16 = arith.constant 0.000000e+00 : f32
    %47 = vector.broadcast %cst_16 : f32 to vector<16x32xf32>
    %48 = arith.select %33, %46, %47 : vector<16x32xf32>
    %49 = tpu.concatenate %31, %15, %48 in 0 : vector<16x32xf32>, vector<128x32xf32>, vector<16x32xf32> -> vector<160x32xf32>
    %50 = tpu.iota {dimensions = array<i32: 1>} : vector<10x16x1xi32>
    %51 = vector.shape_cast %50 : vector<10x16x1xi32> to vector<160x1xi32>
    %c1_i32_17 = arith.constant 1 : i32
    %52 = vector.broadcast %c1_i32_17 : i32 to vector<160x1xi32>
    %53 = arith.cmpi sge, %51, %52 : vector<160x1xi32>
    %c1_i32_18 = arith.constant 1 : i32
    %54 = tpu.dynamic_rotate %49 by %c1_i32_18 dim 0 : vector<160x32xf32>, i32 -> vector<160x32xf32>
    %cst_19 = arith.constant 0.000000e+00 : f32
    %55 = vector.shape_cast %53 : vector<160x1xi1> to vector<160x1xi1>
    %56 = vector.broadcast %55 : vector<160x1xi1> to vector<160x32xi1>
    %57 = vector.broadcast %cst_19 : f32 to vector<160x32xf32>
    %58 = arith.select %56, %54, %57 : vector<160x32xi1>, vector<160x32xf32>
    %c14_i32 = arith.constant 14 : i32
    %59 = vector.broadcast %c14_i32 : i32 to vector<160x1xi32>
    %60 = arith.cmpi sle, %51, %59 : vector<160x1xi32>
    %c159_i32 = arith.constant 159 : i32
    %61 = tpu.dynamic_rotate %49 by %c159_i32 dim 0 : vector<160x32xf32>, i32 -> vector<160x32xf32>
    %cst_20 = arith.constant 0.000000e+00 : f32
    %62 = vector.shape_cast %60 : vector<160x1xi1> to vector<160x1xi1>
    %63 = vector.broadcast %62 : vector<160x1xi1> to vector<160x32xi1>
    %64 = vector.broadcast %cst_20 : f32 to vector<160x32xf32>
    %65 = arith.select %63, %61, %64 : vector<160x32xi1>, vector<160x32xf32>
    %66 = vector.extract_strided_slice %58 {offsets = [0, 0], sizes = [128, 32], strides = [1, 1]} : vector<160x32xf32> to vector<128x32xf32>
    %67 = vector.extract_strided_slice %58 {offsets = [16, 0], sizes = [128, 32], strides = [1, 1]} : vector<160x32xf32> to vector<128x32xf32>
    %68 = vector.extract_strided_slice %58 {offsets = [32, 0], sizes = [128, 32], strides = [1, 1]} : vector<160x32xf32> to vector<128x32xf32>
    %69 = tpu.concatenate %66, %67, %68 in 1 : vector<128x32xf32>, vector<128x32xf32>, vector<128x32xf32> -> vector<128x96xf32>
    %70 = arith.truncf %69 : vector<128x96xf32> to vector<128x96xbf16>
    %c0_21 = arith.constant 0 : index
    %c0_22 = arith.constant 0 : index
    %c0_23 = arith.constant 0 : index
    %71 = vector.load %arg4[%c0_21, %c0_22, %c0_23] : memref<3x96x32xbf16, #tpu.memory_space<vmem>>, vector<1x96x32xbf16>
    %72 = vector.shape_cast %71 : vector<1x96x32xbf16> to vector<96x32xbf16>
    %cst_24 = arith.constant dense<0.000000e+00> : vector<128x32xf32>
    %73 = tpu.matmul %70, %72, %cst_24 {dimension_numbers = #tpu.dot_dimension_numbers<[1], [0], [0], [1], [0, 0, 1, 1], [], []>} : vector<128x96xbf16>, vector<96x32xbf16>, vector<128x32xf32> -> vector<128x32xf32>
    %74 = vector.extract_strided_slice %49 {offsets = [0, 0], sizes = [128, 32], strides = [1, 1]} : vector<160x32xf32> to vector<128x32xf32>
    %75 = vector.extract_strided_slice %49 {offsets = [16, 0], sizes = [128, 32], strides = [1, 1]} : vector<160x32xf32> to vector<128x32xf32>
    %76 = vector.extract_strided_slice %49 {offsets = [32, 0], sizes = [128, 32], strides = [1, 1]} : vector<160x32xf32> to vector<128x32xf32>
    %77 = tpu.concatenate %74, %75, %76 in 1 : vector<128x32xf32>, vector<128x32xf32>, vector<128x32xf32> -> vector<128x96xf32>
    %78 = arith.truncf %77 : vector<128x96xf32> to vector<128x96xbf16>
    %c1 = arith.constant 1 : index
    %c0_25 = arith.constant 0 : index
    %c0_26 = arith.constant 0 : index
    %79 = vector.load %arg4[%c1, %c0_25, %c0_26] : memref<3x96x32xbf16, #tpu.memory_space<vmem>>, vector<1x96x32xbf16>
    %80 = vector.shape_cast %79 : vector<1x96x32xbf16> to vector<96x32xbf16>
    %cst_27 = arith.constant dense<0.000000e+00> : vector<128x32xf32>
    %81 = tpu.matmul %78, %80, %cst_27 {dimension_numbers = #tpu.dot_dimension_numbers<[1], [0], [0], [1], [0, 0, 1, 1], [], []>} : vector<128x96xbf16>, vector<96x32xbf16>, vector<128x32xf32> -> vector<128x32xf32>
    %82 = arith.addf %73, %81 : vector<128x32xf32>
    %83 = vector.extract_strided_slice %65 {offsets = [0, 0], sizes = [128, 32], strides = [1, 1]} : vector<160x32xf32> to vector<128x32xf32>
    %84 = vector.extract_strided_slice %65 {offsets = [16, 0], sizes = [128, 32], strides = [1, 1]} : vector<160x32xf32> to vector<128x32xf32>
    %85 = vector.extract_strided_slice %65 {offsets = [32, 0], sizes = [128, 32], strides = [1, 1]} : vector<160x32xf32> to vector<128x32xf32>
    %86 = tpu.concatenate %83, %84, %85 in 1 : vector<128x32xf32>, vector<128x32xf32>, vector<128x32xf32> -> vector<128x96xf32>
    %87 = arith.truncf %86 : vector<128x96xf32> to vector<128x96xbf16>
    %c2 = arith.constant 2 : index
    %c0_28 = arith.constant 0 : index
    %c0_29 = arith.constant 0 : index
    %88 = vector.load %arg4[%c2, %c0_28, %c0_29] : memref<3x96x32xbf16, #tpu.memory_space<vmem>>, vector<1x96x32xbf16>
    %89 = vector.shape_cast %88 : vector<1x96x32xbf16> to vector<96x32xbf16>
    %cst_30 = arith.constant dense<0.000000e+00> : vector<128x32xf32>
    %90 = tpu.matmul %87, %89, %cst_30 {dimension_numbers = #tpu.dot_dimension_numbers<[1], [0], [0], [1], [0, 0, 1, 1], [], []>} : vector<128x96xbf16>, vector<96x32xbf16>, vector<128x32xf32> -> vector<128x32xf32>
    %91 = arith.addf %82, %90 : vector<128x32xf32>
    %cst_31 = arith.constant dense<0.000000e+00> : vector<32xf32>
    %92 = vector.multi_reduction <add>, %91, %cst_31 [0] : vector<128x32xf32> to vector<32xf32>
    %93 = vector.shape_cast %92 : vector<32xf32> to vector<1x32xf32>
    %94 = arith.mulf %91, %91 : vector<128x32xf32>
    %cst_32 = arith.constant dense<0.000000e+00> : vector<32xf32>
    %95 = vector.multi_reduction <add>, %94, %cst_32 [0] : vector<128x32xf32> to vector<32xf32>
    %96 = vector.shape_cast %95 : vector<32xf32> to vector<1x32xf32>
    %97 = tpu.concatenate %93, %96 in 0 : vector<1x32xf32>, vector<1x32xf32> -> vector<2x32xf32>
    %c0_33 = arith.constant 0 : index
    %c0_34 = arith.constant 0 : index
    %c0_35 = arith.constant 0 : index
    %c0_36 = arith.constant 0 : index
    %98 = vector.load %arg6[%c0_33, %c0_34, %c0_35, %c0_36] : memref<1x1x2x32xf32, #tpu.memory_space<vmem>>, vector<1x1x2x32xf32>
    %99 = vector.shape_cast %98 : vector<1x1x2x32xf32> to vector<2x32xf32>
    %100 = vector.shape_cast %97 : vector<2x32xf32> to vector<1x1x2x32xf32>
    tpu.vector_store %arg6[%c0_33, %c0_34, %c0_35, %c0_36], %100 {strides = array<i32>} : memref<1x1x2x32xf32, #tpu.memory_space<vmem>>, vector<1x1x2x32xf32>,
    %101 = vector.shape_cast %91 : vector<128x32xf32> to vector<8x16x32xf32>
    %102 = arith.truncf %101 : vector<8x16x32xf32> to vector<8x16x32xbf16>
    %c0_37 = arith.constant 0 : index
    %c0_38 = arith.constant 0 : index
    %c0_39 = arith.constant 0 : index
    %c0_40 = arith.constant 0 : index
    %103 = vector.load %arg5[%c0_37, %c0_38, %c0_39, %c0_40] : memref<1x8x16x32xbf16, #tpu.memory_space<vmem>>, vector<1x8x16x32xbf16>
    %104 = vector.shape_cast %103 : vector<1x8x16x32xbf16> to vector<8x16x32xbf16>
    %105 = vector.shape_cast %102 : vector<8x16x32xbf16> to vector<1x8x16x32xbf16>
    tpu.vector_store %arg5[%c0_37, %c0_38, %c0_39, %c0_40], %105 {strides = array<i32>} : memref<1x8x16x32xbf16, #tpu.memory_space<vmem>>, vector<1x8x16x32xbf16>,
    return
  }
  func.func @transform_0(%arg0: i32, %arg1: i32) -> (i32, i32, i32, i32) {
    %c0_i32 = arith.constant 0 : i32
    %c0_i32_0 = arith.constant 0 : i32
    %c0_i32_1 = arith.constant 0 : i32
    %c0_i32_2 = arith.constant 0 : i32
    return %arg0, %c0_i32, %c0_i32_0, %c0_i32_1 : i32, i32, i32, i32
  }
  func.func @transform_1(%arg0: i32, %arg1: i32) -> (i32, i32) {
    %c0_i32 = arith.constant 0 : i32
    %c0_i32_0 = arith.constant 0 : i32
    %c0_i32_1 = arith.constant 0 : i32
    return %c0_i32, %c0_i32_0 : i32, i32
  }
  func.func @transform_2(%arg0: i32, %arg1: i32) -> (i32, i32, i32) {
    %c0_i32 = arith.constant 0 : i32
    %c0_i32_0 = arith.constant 0 : i32
    %c0_i32_1 = arith.constant 0 : i32
    %c0_i32_2 = arith.constant 0 : i32
    return %c0_i32, %c0_i32_0, %c0_i32_1 : i32, i32, i32
  }
  func.func @transform_3(%arg0: i32, %arg1: i32) -> (i32, i32, i32, i32) {
    %c0_i32 = arith.constant 0 : i32
    %c0_i32_0 = arith.constant 0 : i32
    %c0_i32_1 = arith.constant 0 : i32
    return %arg0, %arg1, %c0_i32, %c0_i32_0 : i32, i32, i32, i32
  }
  func.func @transform_4(%arg0: i32, %arg1: i32) -> (i32, i32, i32, i32) {
    %c0_i32 = arith.constant 0 : i32
    %c0_i32_0 = arith.constant 0 : i32
    %c0_i32_1 = arith.constant 0 : i32
    return %arg0, %arg1, %c0_i32, %c0_i32_0 : i32, i32, i32, i32
  }
}

</mosaic_0001>

<bundles_post_ra>
// kernel: preact_bottleneck.4
= control target key start
LH: loop header
LB: loop body
LE: loop exit
PB: predicated region body
PF: predicated region fallthrough
CT: control target
= control target key end

     0   :  { %6 = vsyncpa [#allocation3], 0  ;;  %s669_s0 = inlined_call_operand.hbm [shape: f32[2,16,16,128], index: 0, kind: input, shape index: {}]   ;;  %s670_s1 = inlined_call_operand.vmem [shape: f32[2,2,2,128], index: 1, kind: output, shape index: {}]  }
   0x1   :  { %8 = vsyncpa [#allocation3 + $0x1], 0  ;;  %s536_s6 = smov 0   ;;  %s538_s7 = smov 0  }
   0x2   :  { %s540_s8 = smov 0   ;;  %s542_s9 = smov 0  }
   0x3   :  { %s544_s10 = smov 0   ;;  %s546_s11 = smov 0  }
   0x4   :  { %s548_s12 = smov 0   ;;  %s550_s13 = smov 0  }
   0x5 LB: > { %s337_s14 = sadd.s32 4294967295, %s522_s13   ;;  %s23_s15 = sadd.s32 1, %s514_s11  ;;  %s522_s13 = sphi %s550_s13, %s14_s13   ;;  %s518_s12 = sphi %s548_s12, %s679_s12   ;;  %s514_s11 = sphi %s546_s11, %s678_s11   ;;  %s510_s10 = sphi %s544_s10, %s677_s10   ;;  %s506_s9 = sphi %s542_s9, %s676_s9   ;;  %s502_s8 = sphi %s540_s8, %s675_s8   ;;  %s498_s7 = sphi %s538_s7, %s674_s7   ;;  %s494_s6 = sphi %s536_s6, %s673_s6  }
   0x6   : > { %p24_p0 = scmp.ge.s32.totalorder %s23_s15, 2  ;;  %s26_s16 = sadd.s32 1, %s518_s12 }
   0x7   : > { %s35_s17 = sadd.s32 1, %s502_s8  ;;  %p42_p1 = scmp.ne.s32.totalorder %s502_s8, %s498_s7 }
   0x8   : > { %s681_s15 = smov (%p24_p0, %s23_s15), 0  ;;  %s683_s16 = smov (!%p24_p0, %s26_s16), %s518_s12 }
   0x9   : > { %s31_s18 = ssub.s32 %s514_s11, %s681_s15  ;;  %p43_p2 = scmp.eq.s32.totalorder %s522_s13, 0 }
   0xa   : > { %p28_p3 = scmp.ge.s32.totalorder %s683_s16, 2  ;;  %p48_p4 = scmp.ne.s32.totalorder %s498_s7, %s494_s6 }
   0xb   : > { %p587_p5 = por %p43_p2, %p42_p1  ;;  %p49_p6 = scmp.eq.s32.totalorder %s337_s14, 0 }
   0xc   : > { %s685_s16 = smov (%p28_p3, %s683_s16), 0  ;;  %p359_p8 = scmp.lt.s32.totalorder %s522_s13, 4 }
   0xd   : > { %p593_p7 = por %p49_p6, %p48_p4  ;;  %s30_s21 = ssub.s32 %s518_s12, %s685_s16 }
   0xe   : > { %s32_s22 = sor.u32 %s31_s18, %s30_s21  ;;  %s100_s23 = sand.u32 1, %s502_s8  }
   0xf   : > { %p33_p9 = scmp.eq.s32.totalorder %s32_s22, 0  ;;  %s341_s24 = sshll.u32 %s100_s23, 7 }
  0x10   : > { %s352_s25 = sshll.u32 %s514_s11, 4  ;;  %s344_s27 = sshll.u32 %s518_s12, 5 }
  0x11   : > { %s603_s26 = scalar_select %p33_p9, %s502_s8, %s35_s17  }
  0x12   : > { %s110_s28 = sadd.s32 %s352_s25, %s344_s27  ;;  %s104_s29 = scalar_lea.vmem [#allocation2], %s341_s24 }
  0x13   : > { %s115_s30 = sshll.u32 %s104_s29, 4  ;;  %s345_s2 = sshll.u32 %s110_s28, 3  ;;  %s116_s30 = int_to_ptr.vmem [resolvable:$true] %s115_s30 }
  0x14   : > { %s112_s5 = scalar_lea.hbm %s669_s0, %s345_s2  ;;  %p356_p10 = pnand %p359_p8, %p587_p5 }
  0x15   : > { %s113_s6 = sshll.u32 %s112_s5, 4  ;;  %p346_p11 = scmp.ge.s32.totalorder %s522_s13, 1  ;;  %s114_s6 = int_to_ptr.hbm [resolvable:$true] %s113_s6 }
  0x16   : > { %s101_s14 = scalar_lea.sflag [#allocation3], %s100_s23  ;;  %s524_s17 = smov 128  }
  0x17   : > { %s525_s18 = smov 8   ;;  %p123_p12 = scmp.lt.s32.totalorder %s522_s13, 5 }
  0x18   : > { %358 = dma.hbm_to_vmem [thread:$0]  (!%p356_p10), %s114_s6, 2048, %s116_s30, %s101_s14, %s524_s17, %s524_s17, %s525_s18  }
  0x19   : > { %p124_p13 = pnand %p346_p11, %p123_p12 }
  0x1a   : > { %s129_s21 = sand.u32 (!%p124_p13), 1, %s498_s7  }
  0x1b   : > { %127 = sbr.rel (%p124_p13) target bundleno = 80 (0x50), region = 24  ;;  %s347_s22 = sshll.u32 (!%p124_p13), %s129_s21, 7 }
  0x1c   : > { %s130_s24 = scalar_lea.sflag (!%p124_p13), [#allocation3], %s129_s21  ;;  %s616_s25 = scalar_lea.vmem (!%p124_p13), [#allocation2], %s347_s22 }
  0x20   : > { %489 = dma.done.wait (%p593_p7), %s130_s24, 2048  }
  0x21   : > { %491 = vsyncadd (%p593_p7), %s130_s24, 4294965248  ;;  %v165_v0 = vld [vmem:[%s616_s25] sm:$0xff]  ;;  %v166_v1 = vld [vmem:[%s616_s25 + $0x8] sm:$0xff]  ;;  %p157_p0 = scmp.lt.s32.totalorder %s510_s10, 1  ;;  %p159_p1 = scmp.lt.s32.totalorder %s506_s9, 1  ;;  %vm239_vm0 = vcmask 1040384  }
  0x22   : > { %v167_v2 = vld [vmem:[%s616_s25 + $0x10] sm:$0xff]  ;;  %v168_v3 = vld [vmem:[%s616_s25 + $0x18] sm:$0xff]  ;;  %v181_v4 = vadd.f32 %v166_v1, %v165_v0  ;;  %v202_v5 = vmul.f32 %v165_v0, %v165_v0  ;;  %v203_v6 = vmul.f32 %v166_v1, %v166_v1  ;;  %v169_v8 = vld [vmem:[%s616_s25 + $0x20] sm:$0xff] }
  0x23   : > { %v204_v7 = vmul.f32 %v167_v2, %v167_v2  ;;  %v205_v10 = vmul.f32 %v168_v3, %v168_v3  ;;  %v170_v12 = vld [vmem:[%s616_s25 + $0x28] sm:$0xff]  ;;  %v206_v14 = vmul.f32 %v169_v8, %v169_v8  ;;  %v171_v16 = vld [vmem:[%s616_s25 + $0x30] sm:$0xff]  ;;  %v172_v20 = vld [vmem:[%s616_s25 + $0x38] sm:$0xff]  ;;  %s687_s10 = smov (!%p157_p0, %s510_s10), 1  ;;  %s689_s9 = smov (!%p159_p1, %s506_s9), 1 }
  0x24   : > { %v182_v9 = vadd.f32 %v181_v4, %v167_v2  ;;  %v218_v11 = vadd.f32 %v203_v6, %v202_v5  ;;  %v207_v18 = vmul.f32 %v170_v12, %v170_v12  ;;  %v208_v22 = vmul.f32 %v171_v16, %v171_v16  ;;  %v173_v24 = vld [vmem:[%s616_s25 + $0x40] sm:$0xff]  ;;  %v174_v28 = vld [vmem:[%s616_s25 + $0x48] sm:$0xff]  ;;  %v175_v32 = vld [vmem:[%s616_s25 + $0x50] sm:$0xff]  ;;  %s348_s19 = sshll.u32 %s687_s10, 1 }
  0x25   : > { %v209_v26 = vmul.f32 %v172_v20, %v172_v20  ;;  %v210_v30 = vmul.f32 %v173_v24, %v173_v24  ;;  %v211_v34 = vmul.f32 %v174_v28, %v174_v28  ;;  %v176_v36 = vld [vmem:[%s616_s25 + $0x58] sm:$0xff]  ;;  %v212_v38 = vmul.f32 %v175_v32, %v175_v32  ;;  %v177_v40 = vld [vmem:[%s616_s25 + $0x60] sm:$0xff]  ;;  %v178_v44 = vld [vmem:[%s616_s25 + $0x68] sm:$0xff]  ;;  %s162_s20 = sadd.s32 %s348_s19, %s689_s9 }
  0x26   : > { %v183_v13 = vadd.f32 %v182_v9, %v168_v3  ;;  %v219_v15 = vadd.f32 %v218_v11, %v204_v7  ;;  %v213_v42 = vmul.f32 %v176_v36, %v176_v36  ;;  %v214_v46 = vmul.f32 %v177_v40, %v177_v40  ;;  %v179_v48 = vld [vmem:[%s616_s25 + $0x70] sm:$0xff]  ;;  %v180_v52 = vld [vmem:[%s616_s25 + $0x78] sm:$0xff]  ;;  %s349_s23 = sshll.u32 %s162_s20, 1 }
  0x27   : > { %v215_v50 = vmul.f32 %v178_v44, %v178_v44  ;;  %v216_v54 = vmul.f32 %v179_v48, %v179_v48  ;;  %v217_v57 = vmul.f32 %v180_v52, %v180_v52  ;;  %s164_s29 = scalar_lea.vmem %s670_s1, %s349_s23 }
  0x28   : > { %v184_v17 = vadd.f32 %v183_v13, %v169_v8  ;;  %v220_v19 = vadd.f32 %v219_v15, %v205_v10 }
  0x2a   : > { %v185_v21 = vadd.f32 %v184_v17, %v170_v12  ;;  %v221_v23 = vadd.f32 %v220_v19, %v206_v14 }
  0x2c   : > { %v186_v25 = vadd.f32 %v185_v21, %v171_v16  ;;  %v222_v27 = vadd.f32 %v221_v23, %v207_v18 }
  0x2e   : > { %v187_v29 = vadd.f32 %v186_v25, %v172_v20  ;;  %v223_v31 = vadd.f32 %v222_v27, %v208_v22 }
  0x30   : > { %v188_v33 = vadd.f32 %v187_v29, %v173_v24  ;;  %v224_v35 = vadd.f32 %v223_v31, %v209_v26 }
  0x32   : > { %v189_v37 = vadd.f32 %v188_v33, %v174_v28  ;;  %v225_v39 = vadd.f32 %v224_v35, %v210_v30 }
  0x34   : > { %v190_v41 = vadd.f32 %v189_v37, %v175_v32  ;;  %v226_v43 = vadd.f32 %v225_v39, %v211_v34 }
  0x36   : > { %v191_v45 = vadd.f32 %v190_v41, %v176_v36  ;;  %v227_v47 = vadd.f32 %v226_v43, %v212_v38 }
  0x38   : > { %v192_v49 = vadd.f32 %v191_v45, %v177_v40  ;;  %v228_v51 = vadd.f32 %v227_v47, %v213_v42 }
  0x3a   : > { %v193_v53 = vadd.f32 %v192_v49, %v178_v44  ;;  %v229_v55 = vadd.f32 %v228_v51, %v214_v46 }
  0x3c   : > { %v194_v56 = vadd.f32 %v193_v53, %v179_v48  ;;  %v230_v58 = vadd.f32 %v229_v55, %v215_v50 }
  0x3e   : > { %v195_v59 = vadd.f32 %v194_v56, %v180_v52  ;;  %v231_v60 = vadd.f32 %v230_v58, %v216_v54 }
  0x40   : > { %v196_v61 = vrot.slane %v195_v59, 4  ;;  %v232_v62 = vadd.f32 %v231_v60, %v217_v57 }
  0x42   : > { %v197_v63 = vadd.f32 %v196_v61, %v195_v59  ;;  %v233_v0 = vrot.slane %v232_v62, 4 }
  0x44   : > { %v198_v1 = vrot.slane %v197_v63, 2  ;;  %v234_v2 = vadd.f32 %v233_v0, %v232_v62 }
  0x46   : > { %v199_v3 = vadd.f32 %v198_v1, %v197_v63  ;;  %v235_v4 = vrot.slane %v234_v2, 2 }
  0x48   : > { %v200_v5 = vrot.slane %v199_v3, 1  ;;  %v236_v6 = vadd.f32 %v235_v4, %v234_v2 }
  0x4a   : > { %v201_v7 = vadd.f32 %v200_v5, %v199_v3  ;;  %v237_v8 = vrot.slane %v236_v6, 1 }
  0x4c   : > { %v238_v9 = vadd.f32 %v237_v8, %v236_v6 }
  0x4e   : > { %v240_v10 = vsel %vm239_vm0, %v201_v7, %v238_v9 }
  0x4f   : > { %241 = vst [vmem:[%s164_s29] sm:$0x3] %v240_v10 }
  0x50 PF: > { %s14_s13 = sadd.s32 1, %s522_s13   ;;  %s673_s6 = smov %s498_s7 }
  0x51   : > { %p11_p2 = scmp.ge.s32.totalorder %s14_s13, 6   ;;  %s674_s7 = smov %s502_s8 }
  0x52   : > { %s675_s8 = smov %s603_s26  ;;  %s676_s9 = smov %s514_s11 }
  0x53   : > { %s677_s10 = smov %s518_s12  ;;  %s678_s11 = smov %s681_s15 }
  0x54   : > { %s679_s12 = smov %s685_s16  ;;  %13 = sbr.rel (!%p11_p2) target bundleno = 5 (0x5), region = 64 }
  0x59   :  { %269 = vsyncpa [#allocation3], 1 }
  0x5a   :  { %271 = vsyncpa [#allocation3 + $0x1], 1 }

// kernel: preact_bottleneck.5
= control target key start
LH: loop header
LB: loop body
LE: loop exit
PB: predicated region body
PF: predicated region fallthrough
CT: control target
= control target key end

     0   :  { %s911_s15 = smov 0   ;;  %s913_s16 = smov 0   ;;  %s1160_s0 = inlined_call_operand.vmem [shape: f32[2,16,16,128], index: 0, kind: input, shape index: {}]   ;;  %s1161_s1 = inlined_call_operand.vmem [shape: f32[2,128], index: 1, kind: input, shape index: {}]   ;;  %s1162_s2 = inlined_call_operand.vmem [shape: bf16[128,32], index: 2, kind: input, shape index: {}]   ;;  %s1163_s3 = inlined_call_operand.vmem [shape: bf16[2,16,16,32], index: 3, kind: output, shape index: {0}]   ;;  %s1164_s4 = inlined_call_operand.vmem [shape: f32[2,2,2,32], index: 4, kind: output, shape index: {1}]  }
   0x1   :  { %s915_s17 = smov 0   ;;  %s917_s18 = smov 0  }
   0x2   :  { %s919_s19 = smov 0  }
   0x3 LB: > { %s24_s20 = sadd.s32 1, %s876_s17  ;;  %s27_s21 = sadd.s32 1, %s880_s18  ;;  %s884_s19 = sphi %s919_s19, %s15_s19   ;;  %s880_s18 = sphi %s917_s18, %s1168_s18   ;;  %s876_s17 = sphi %s915_s17, %s1167_s17   ;;  %s872_s16 = sphi %s913_s16, %s1166_s16   ;;  %s868_s15 = sphi %s911_s15, %s1165_s15  }
   0x4   : > { %p25_p0 = scmp.ge.s32.totalorder %s24_s20, 2  ;;  %p729_p1 = scmp.ge.s32.totalorder %s884_s19, 1 }
   0x5   : > { %p189_p2 = scmp.lt.s32.totalorder %s884_s19, 5 }
   0x6   : > { %s1170_s20 = smov (%p25_p0, %s24_s20), 0  ;;  %s1172_s21 = smov (!%p25_p0, %s27_s21), %s880_s18 }
   0x7   : > { %p190_p3 = pnand %p729_p1, %p189_p2  ;;  %p29_p4 = scmp.ge.s32.totalorder %s1172_s21, 2 }
   0x8   : > { %s730_s24 = sshll.u32 (!%p190_p3), %s868_s15, 3  ;;  %p234_p5 = scmp.lt.s32.totalorder (!%p190_p3), %s872_s16, 1 }
   0x9   : > { %s1174_s21 = smov (%p29_p4, %s1172_s21), 0  ;;  %193 = sbr.rel (%p190_p3) target bundleno = 239 (0xef), region = 32 }
   0xa   : > { %p236_p6 = scmp.lt.s32.totalorder (!%p190_p3), %s730_s24, 15  ;;  %p257_p7 = scmp.lt.s32.totalorder (!%p190_p3), %s868_s15, 1 }
   0xe   : > { %v781_v0 = vld [vmem:[%s1162_s2 + $0x38] sm:$0xff]  ;;  %v780_v1 = vld [vmem:[%s1162_s2 + $0x30] sm:$0xff]  ;;  %s1176_s16 = smov (!%p234_p5, %s872_s16), 1  ;;  %s1178_s24 = smov (!%p236_p6, %s730_s24), 15  ;;  %v779_v2 = vld [vmem:[%s1162_s2 + $0x28] sm:$0xff]  ;;  %vm562_vm0 = vcmask 257024  }
   0xf   : > { %402 = vmatpush.bf16.msra.mxu0 %v781_v0  ;;  %782 = vmatpush.bf16.msra.mxu1 %v781_v0  ;;  %s732_s27 = sshll.u32 %s1176_s16, 5  ;;  %s731_s28 = sshll.u32 %s1178_s24, 1  ;;  %v263_v3 = vld [vmem:[%s1161_s1] sm:$0x3]  ;;  %v777_v6 = vld [vmem:[%s1162_s2 + $0x18] sm:$0xff]  ;;  %v776_v21 = vld [vmem:[%s1162_s2 + $0x10] sm:$0xff] }
  0x10   : > { %783 = vmatpush.bf16.msra.mxu2 %v781_v0  ;;  %784 = vmatpush.bf16.msra.mxu3 %v781_v0  ;;  %s956_s5 = sadd.s32 %s732_s27, %s731_s28  ;;  %v778_v4 = vld [vmem:[%s1162_s2 + $0x20] sm:$0xff]  ;;  %v970_v5 = vperm.slane %v263_v3, 0  ;;  %v984_v16 = vperm.slane %v263_v3, 1  ;;  %v775_v30 = vld [vmem:[%s1162_s2 + $0x8] sm:$0xff]  ;;  %vm451_vm1 = vcmask 261120   ;;  %s1180_s15 = smov (!%p257_p7, %s868_s15), 1 }
  0x11   : > { %s733_s6 = sshll.u32 %s956_s5, 3  ;;  %v774_v38 = vld [vmem:[%s1162_s2] sm:$0xff]  ;;  %s737_s29 = sshll.u32 %s956_s5, 2  ;;  %vm542_vm2 = vcmask 1040384   ;;  %vm544_vm3 = vcmask 254976  }
  0x12   : > { %s968_s13 = scalar_lea.vmem %s1160_s0, %s733_s6  ;;  %s1038_s7 = scalar_lea.vmem %s1163_s3, %s737_s29 }
  0x13   : > { %403 = vmatpush.bf16.msra.mxu0 %v780_v1  ;;  %785 = vmatpush.bf16.msra.mxu1 %v780_v1  ;;  %v264_v7 = vld [vmem:[%s968_s13] sm:$0xff]  ;;  %v265_v8 = vld [vmem:[%s968_s13 + $0x8] sm:$0xff]  ;;  %v266_v45 = vld [vmem:[%s968_s13 + $0x10] sm:$0xff]  ;;  %s738_s5 = sshll.u32 %s1176_s16, 1 }
  0x14   : > { %786 = vmatpush.bf16.msra.mxu2 %v780_v1  ;;  %787 = vmatpush.bf16.msra.mxu3 %v780_v1  ;;  %v268_v9 = vld [vmem:[%s968_s13 + $0x20] sm:$0xff]  ;;  %v269_v10 = vld [vmem:[%s968_s13 + $0x28] sm:$0xff]  ;;  %v281_v15 = vmul.f32 %v970_v5, %v264_v7  ;;  %v282_v17 = vmul.f32 %v970_v5, %v265_v8  ;;  %v267_v46 = vld [vmem:[%s968_s13 + $0x18] sm:$0xff]  ;;  %v283_v55 = vmul.f32 %v970_v5, %v266_v45  ;;  %s260_s8 = sadd.s32 %s738_s5, %s1180_s15 }
  0x15   : > { %v272_v11 = vld [vmem:[%s968_s13 + $0x40] sm:$0xff]  ;;  %v273_v12 = vld [vmem:[%s968_s13 + $0x48] sm:$0xff]  ;;  %v285_v18 = vmul.f32 %v970_v5, %v268_v9  ;;  %v286_v19 = vmul.f32 %v970_v5, %v269_v10  ;;  %v270_v49 = vld [vmem:[%s968_s13 + $0x30] sm:$0xff]  ;;  %v284_v56 = vmul.f32 %v970_v5, %v267_v46  ;;  %s739_s9 = sshll.u32 %s260_s8, 1 }
  0x16   : > { %v276_v13 = vld [vmem:[%s968_s13 + $0x60] sm:$0xff]  ;;  %v277_v14 = vld [vmem:[%s968_s13 + $0x68] sm:$0xff]  ;;  %v289_v20 = vmul.f32 %v970_v5, %v272_v11  ;;  %v290_v22 = vmul.f32 %v970_v5, %v273_v12  ;;  %v298_v25 = vadd.f32 %v984_v16, %v281_v15  ;;  %v299_v26 = vadd.f32 %v984_v16, %v282_v17  ;;  %v271_v50 = vld [vmem:[%s968_s13 + $0x38] sm:$0xff]  ;;  %s262_s12 = scalar_lea.vmem %s1164_s4, %s739_s9 }
  0x17   : > { %404 = vmatpush.bf16.msra.mxu0 %v779_v2  ;;  %788 = vmatpush.bf16.msra.mxu1 %v779_v2  ;;  %v293_v23 = vmul.f32 %v970_v5, %v276_v13  ;;  %v294_v24 = vmul.f32 %v970_v5, %v277_v14  ;;  %v302_v27 = vadd.f32 %v984_v16, %v285_v18  ;;  %v274_v51 = vld [vmem:[%s968_s13 + $0x50] sm:$0xff]  ;;  %v275_v52 = vld [vmem:[%s968_s13 + $0x58] sm:$0xff] }
  0x18   : > { %789 = vmatpush.bf16.msra.mxu2 %v779_v2  ;;  %790 = vmatpush.bf16.msra.mxu3 %v779_v2  ;;  %v303_v28 = vadd.f32 %v984_v16, %v286_v19  ;;  %v306_v29 = vadd.f32 %v984_v16, %v289_v20  ;;  %v307_v31 = vadd.f32 %v984_v16, %v290_v22  ;;  %v314_v34 = vmax.f32 %v298_v25, 0.0  ;;  %v278_v53 = vld [vmem:[%s968_s13 + $0x70] sm:$0xff]  ;;  %v279_v54 = vld [vmem:[%s968_s13 + $0x78] sm:$0xff] }
  0x19   : > { %v310_v32 = vadd.f32 %v984_v16, %v293_v23  ;;  %v311_v33 = vadd.f32 %v984_v16, %v294_v24  ;;  %v315_v35 = vmax.f32 %v299_v26, 0.0  ;;  %v318_v36 = vmax.f32 %v302_v27, 0.0 }
  0x1a   : > { %v319_v37 = vmax.f32 %v303_v28, 0.0  ;;  %v322_v39 = vmax.f32 %v306_v29, 0.0  ;;  %v323_v40 = vmax.f32 %v307_v31, 0.0  ;;  %v287_v57 = vmul.f32 %v970_v5, %v270_v49 }
  0x1b   : > { %405 = vmatpush.bf16.msra.mxu0 %v778_v4  ;;  %791 = vmatpush.bf16.msra.mxu1 %v778_v4  ;;  %v326_v41 = vmax.f32 %v310_v32, 0.0  ;;  %v327_v42 = vmax.f32 %v311_v33, 0.0  ;;  %v330_v43 = vpack.c.bf16 %v315_v35, %v314_v34  ;;  %v288_v58 = vmul.f32 %v970_v5, %v271_v50 }
  0x1c   : > { %792 = vmatpush.bf16.msra.mxu2 %v778_v4  ;;  %793 = vmatpush.bf16.msra.mxu3 %v778_v4  ;;  %v332_v44 = vpack.c.bf16 %v319_v37, %v318_v36  ;;  %v334_v47 = vpack.c.bf16 %v323_v40, %v322_v39  ;;  %v291_v59 = vmul.f32 %v970_v5, %v274_v51 }
  0x1d   : > { %v336_v48 = vpack.c.bf16 %v327_v42, %v326_v41  ;;  %v292_v60 = vmul.f32 %v970_v5, %v275_v52  ;;  %v295_v61 = vmul.f32 %v970_v5, %v278_v53  ;;  %v296_v62 = vmul.f32 %v970_v5, %v279_v54 }
  0x1e   : > { %v300_v63 = vadd.f32 %v984_v16, %v283_v55  ;;  %v301_v0 = vadd.f32 %v984_v16, %v284_v56  ;;  %v304_v1 = vadd.f32 %v984_v16, %v287_v57  ;;  %v305_v2 = vadd.f32 %v984_v16, %v288_v58 }
  0x1f   : > { %406 = vmatpush.bf16.msra.mxu0 %v777_v6  ;;  %794 = vmatpush.bf16.msra.mxu1 %v777_v6  ;;  %v308_v3 = vadd.f32 %v984_v16, %v291_v59  ;;  %v309_v4 = vadd.f32 %v984_v16, %v292_v60  ;;  %v313_v7 = vadd.f32 %v984_v16, %v296_v62 }
  0x20   : > { %795 = vmatpush.bf16.msra.mxu2 %v777_v6  ;;  %796 = vmatpush.bf16.msra.mxu3 %v777_v6  ;;  %v312_v6 = vadd.f32 %v984_v16, %v295_v61  ;;  %v316_v8 = vmax.f32 %v300_v63, 0.0  ;;  %v317_v9 = vmax.f32 %v301_v0, 0.0  ;;  %v320_v5 = vmax.f32 %v304_v1, 0.0 }
  0x21   : > { %v321_v10 = vmax.f32 %v305_v2, 0.0  ;;  %v324_v11 = vmax.f32 %v308_v3, 0.0  ;;  %v325_v12 = vmax.f32 %v309_v4, 0.0  ;;  %v329_v14 = vmax.f32 %v313_v7, 0.0 }
  0x22   : > { %v328_v13 = vmax.f32 %v312_v6, 0.0  ;;  %v331_v15 = vpack.c.bf16 %v317_v9, %v316_v8 }
  0x23   : > { %407 = vmatpush.bf16.msra.mxu0 %v776_v21  ;;  %797 = vmatpush.bf16.msra.mxu1 %v776_v21  ;;  %v333_v17 = vpack.c.bf16 %v321_v10, %v320_v5  ;;  %v335_v18 = vpack.c.bf16 %v325_v12, %v324_v11 }
  0x24   : > { %798 = vmatpush.bf16.msra.mxu2 %v776_v21  ;;  %799 = vmatpush.bf16.msra.mxu3 %v776_v21  ;;  %v337_v19 = vpack.c.bf16 %v329_v14, %v328_v13 }
  0x27   : > { %408 = vmatpush.bf16.msra.mxu0 %v775_v30  ;;  %800 = vmatpush.bf16.msra.mxu1 %v775_v30 }
  0x28   : > { %801 = vmatpush.bf16.msra.mxu2 %v775_v30  ;;  %802 = vmatpush.bf16.msra.mxu3 %v775_v30 }
  0x2b   : > { %409 = vmatpush.bf16.msra.mxu0 %v774_v38  ;;  %803 = vmatpush.bf16.msra.mxu1 %v774_v38 }
  0x2c   : > { %804 = vmatpush.bf16.msra.mxu2 %v774_v38  ;;  %805 = vmatpush.bf16.msra.mxu3 %v774_v38 }
  0x2e   : > { %410 = vmatmul.bf16.vlgmr.msra.gmra.mxu0 %v330_v43  ;;  %420 = vmatmul.bf16.vlgmr.msra.gmra.mxu1 %v332_v44 }
  0x2f   : > { %430 = vmatmul.bf16.vlgmr.msra.gmra.mxu2 %v334_v47  ;;  %440 = vmatmul.bf16.vlgmr.msra.gmra.mxu3 %v336_v48 }
  0x3e   : > { %415 = vmatmul.bf16.gmra.mxu0 %v331_v15  ;;  %425 = vmatmul.bf16.gmra.mxu1 %v333_v17 }
  0x3f   : > { %435 = vmatmul.bf16.gmra.mxu2 %v335_v18  ;;  %445 = vmatmul.bf16.gmra.mxu3 %v337_v19 }
  0xab   : > { %v411_v16 = vpop.f32.mrf.mxu0  ;;  %v421_v20 = vpop.f32.mrf.mxu1 }
  0xac   : > { %v546_v21 = vpack.c.bf16 %v411_v16, %v411_v16  ;;  %v550_v22 = vpack.c.bf16 %v421_v20, %v421_v20  ;;  %v489_v39 = vmul.f32 %v411_v16, %v411_v16  ;;  %v452_v43 = vsel %vm451_vm1, %v411_v16, 0.0 }
  0xad   : > { %v493_v56 = vmul.f32 %v421_v20, %v421_v20  ;;  %v459_v63 = vsel %vm451_vm1, %v421_v20, 0.0 }
  0xae   : > { %563 = vst.msk [vmem:[%s1038_s7] sm:$0xf] %vm562_vm0, %v546_v21  ;;  %v505_v47 = vsel %vm451_vm1, %v489_v39, 0.0 }
  0xaf   : > { %567 = vst.msk [vmem:[%s1038_s7 + $0x10] sm:$0xf] %vm562_vm0, %v550_v22  ;;  %v512_v6 = vsel %vm451_vm1, %v493_v56, 0.0 }
  0xb2   : > { %v1044_v23 = vpop.f32.mrf.mxu2  ;;  %v1046_v24 = vpop.f32.mrf.mxu3 }
  0xb3   : > { %v413_v25 = vpop.f32.mrf.mxu0  ;;  %v423_v26 = vpop.f32.mrf.mxu1  ;;  %v554_v27 = vpack.c.bf16 %v1044_v23, %v1044_v23  ;;  %v558_v30 = vpack.c.bf16 %v1046_v24, %v1046_v24  ;;  %v497_v18 = vmul.f32 %v1044_v23, %v1044_v23 }
  0xb4   : > { %v547_v28 = vpack.c.bf16 %v413_v25, %v413_v25  ;;  %v551_v29 = vpack.c.bf16 %v423_v26, %v423_v26  ;;  %v490_v36 = vmul.f32 %v413_v25, %v413_v25  ;;  %v453_v40 = vsel %vm451_vm1, %v413_v25, 0.0 }
  0xb5   : > { %571 = vst.msk [vmem:[%s1038_s7 + $0x20] sm:$0xf] %vm562_vm0, %v554_v27  ;;  %v454_v46 = vadd.f32 %v453_v40, %v452_v43  ;;  %v494_v0 = vmul.f32 %v423_v26, %v423_v26  ;;  %v461_v7 = vsel %vm451_vm1, %v423_v26, 0.0  ;;  %v467_v25 = vsel %vm451_vm1, %v1044_v23, 0.0 }
  0xb6   : > { %564 = vst.msk [vmem:[%s1038_s7 + $0x4] sm:$0xf] %vm562_vm0, %v547_v28  ;;  %v506_v44 = vsel %vm451_vm1, %v490_v36, 0.0 }
  0xb7   : > { %568 = vst.msk [vmem:[%s1038_s7 + $0x14] sm:$0xf] %vm562_vm0, %v551_v29  ;;  %v507_v51 = vadd.f32 %v506_v44, %v505_v47  ;;  %v514_v10 = vsel %vm451_vm1, %v494_v0, 0.0 }
  0xb8   : > { %575 = vst.msk [vmem:[%s1038_s7 + $0x30] sm:$0xf] %vm562_vm0, %v558_v30 }
  0xba   : > { %v1060_v31 = vpop.f32.mrf.mxu2  ;;  %v1062_v32 = vpop.f32.mrf.mxu3 }
  0xbb   : > { %v416_v33 = vpop.f32.mrf.mxu0  ;;  %v426_v34 = vpop.f32.mrf.mxu1  ;;  %v555_v35 = vpack.c.bf16 %v1060_v31, %v1060_v31  ;;  %v559_v42 = vpack.c.bf16 %v1062_v32, %v1062_v32  ;;  %v498_v26 = vmul.f32 %v1060_v31, %v1060_v31  ;;  %v502_v47 = vmul.f32 %v1062_v32, %v1062_v32 }
  0xbc   : > { %v548_v37 = vpack.c.bf16 %v416_v33, %v416_v33  ;;  %v552_v38 = vpack.c.bf16 %v426_v34, %v426_v34  ;;  %v491_v41 = vmul.f32 %v416_v33, %v416_v33  ;;  %v455_v45 = vsel %vm451_vm1, %v416_v33, 0.0 }
  0xbd   : > { %572 = vst.msk [vmem:[%s1038_s7 + $0x24] sm:$0xf] %vm562_vm0, %v555_v35  ;;  %v456_v52 = vadd.f32 %v455_v45, %v454_v46  ;;  %v495_v8 = vmul.f32 %v426_v34, %v426_v34  ;;  %v463_v11 = vsel %vm451_vm1, %v426_v34, 0.0  ;;  %v520_v33 = vsel %vm451_vm1, %v497_v18, 0.0 }
  0xbe   : > { %565 = vst.msk [vmem:[%s1038_s7 + $0x8] sm:$0xf] %vm562_vm0, %v548_v37  ;;  %v508_v48 = vsel %vm451_vm1, %v491_v41, 0.0  ;;  %v469_v34 = vsel %vm451_vm1, %v1060_v31, 0.0  ;;  %v522_v37 = vsel %vm451_vm1, %v498_v26, 0.0  ;;  %v475_v46 = vsel %vm451_vm1, %v1046_v24, 0.0 }
  0xbf   : > { %569 = vst.msk [vmem:[%s1038_s7 + $0x18] sm:$0xf] %vm562_vm0, %v552_v38  ;;  %v509_v60 = vadd.f32 %v508_v48, %v507_v51  ;;  %v516_v19 = vsel %vm451_vm1, %v495_v8, 0.0 }
  0xc0   : > { %576 = vst.msk [vmem:[%s1038_s7 + $0x34] sm:$0xf] %vm562_vm0, %v559_v42  ;;  %v501_v42 = vmul.f32 %v1046_v24, %v1046_v24  ;;  %v530_v24 = vsel %vm451_vm1, %v502_v47, 0.0 }
  0xc2   : > { %v436_v49 = vpop.f32.mrf.mxu2  ;;  %v1082_v50 = vpop.f32.mrf.mxu3 }
  0xc3   : > { %v418_v53 = vpop.f32.mrf.mxu0  ;;  %v428_v54 = vpop.f32.mrf.mxu1  ;;  %v556_v55 = vpack.c.bf16 %v436_v49, %v436_v49  ;;  %v560_v2 = vpack.c.bf16 %v1082_v50, %v1082_v50  ;;  %v499_v35 = vmul.f32 %v436_v49, %v436_v49  ;;  %v471_v38 = vsel %vm451_vm1, %v436_v49, 0.0 }
  0xc4   : > { %v457_v57 = vsel %vm451_vm1, %v418_v53, 0.0  ;;  %v492_v58 = vmul.f32 %v418_v53, %v418_v53  ;;  %v549_v59 = vpack.c.bf16 %v418_v53, %v418_v53  ;;  %v553_v62 = vpack.c.bf16 %v428_v54, %v428_v54 }
  0xc5   : > { %v458_v61 = vadd.f32 %v457_v57, %v456_v52  ;;  %573 = vst.msk [vmem:[%s1038_s7 + $0x28] sm:$0xf] %vm562_vm0, %v556_v55  ;;  %v496_v12 = vmul.f32 %v428_v54, %v428_v54  ;;  %v465_v16 = vsel %vm451_vm1, %v428_v54, 0.0  ;;  %v524_v43 = vsel %vm451_vm1, %v499_v35, 0.0 }
  0xc6   : > { %v510_v1 = vsel %vm451_vm1, %v492_v58, 0.0  ;;  %566 = vst.msk [vmem:[%s1038_s7 + $0xc] sm:$0xf] %vm562_vm0, %v549_v59  ;;  %v528_v52 = vsel %vm451_vm1, %v501_v42, 0.0  ;;  %v477_v53 = vsel %vm451_vm1, %v1062_v32, 0.0  ;;  %v503_v54 = vmul.f32 %v1082_v50, %v1082_v50 }
  0xc7   : > { %v460_v3 = vadd.f32 %v459_v63, %v458_v61  ;;  %v511_v4 = vadd.f32 %v510_v1, %v509_v60  ;;  %570 = vst.msk [vmem:[%s1038_s7 + $0x1c] sm:$0xf] %vm562_vm0, %v553_v62  ;;  %v518_v27 = vsel %vm451_vm1, %v496_v12, 0.0  ;;  %v479_v57 = vsel %vm451_vm1, %v1082_v50, 0.0 }
  0xc8   : > { %577 = vst.msk [vmem:[%s1038_s7 + $0x38] sm:$0xf] %vm562_vm0, %v560_v2  ;;  %v532_v61 = vsel %vm451_vm1, %v503_v54, 0.0 }
  0xc9   : > { %v513_v9 = vadd.f32 %v512_v6, %v511_v4  ;;  %v462_v5 = vadd.f32 %v461_v7, %v460_v3 }
  0xca   : > { %v438_v13 = vpop.f32.mrf.mxu2  ;;  %v448_v17 = vpop.f32.mrf.mxu3 }
  0xcb   : > { %v464_v14 = vadd.f32 %v463_v11, %v462_v5  ;;  %v515_v15 = vadd.f32 %v514_v10, %v513_v9  ;;  %v557_v20 = vpack.c.bf16 %v438_v13, %v438_v13  ;;  %v561_v28 = vpack.c.bf16 %v448_v17, %v448_v17 }
  0xcc   : > { %v500_v39 = vmul.f32 %v438_v13, %v438_v13  ;;  %v473_v44 = vsel %vm451_vm1, %v438_v13, 0.0  ;;  %v504_v58 = vmul.f32 %v448_v17, %v448_v17  ;;  %v481_v62 = vsel %vm451_vm1, %v448_v17, 0.0 }
  0xcd   : > { %v466_v21 = vadd.f32 %v465_v16, %v464_v14  ;;  %v517_v22 = vadd.f32 %v516_v19, %v515_v15  ;;  %574 = vst.msk [vmem:[%s1038_s7 + $0x2c] sm:$0xf] %vm562_vm0, %v557_v20 }
  0xce   : > { %578 = vst.msk [vmem:[%s1038_s7 + $0x3c] sm:$0xf] %vm562_vm0, %v561_v28  ;;  %v526_v48 = vsel %vm451_vm1, %v500_v39, 0.0  ;;  %v534_v0 = vsel %vm451_vm1, %v504_v58, 0.0 }
  0xcf   : > { %v468_v29 = vadd.f32 %v467_v25, %v466_v21  ;;  %v519_v30 = vadd.f32 %v518_v27, %v517_v22 }
  0xd1   : > { %v521_v36 = vadd.f32 %v520_v33, %v519_v30  ;;  %v470_v23 = vadd.f32 %v469_v34, %v468_v29 }
  0xd3   : > { %v472_v40 = vadd.f32 %v471_v38, %v470_v23  ;;  %v523_v41 = vadd.f32 %v522_v37, %v521_v36 }
  0xd5   : > { %v525_v31 = vadd.f32 %v524_v43, %v523_v41  ;;  %v474_v45 = vadd.f32 %v473_v44, %v472_v40 }
  0xd7   : > { %v476_v49 = vadd.f32 %v475_v46, %v474_v45  ;;  %v527_v51 = vadd.f32 %v526_v48, %v525_v31 }
  0xd9   : > { %v529_v55 = vadd.f32 %v528_v52, %v527_v51  ;;  %v478_v56 = vadd.f32 %v477_v53, %v476_v49 }
  0xdb   : > { %v480_v59 = vadd.f32 %v479_v57, %v478_v56  ;;  %v531_v60 = vadd.f32 %v530_v24, %v529_v55 }
  0xdd   : > { %v533_v32 = vadd.f32 %v532_v61, %v531_v60  ;;  %v482_v63 = vadd.f32 %v481_v62, %v480_v59 }
  0xdf   : > { %v483_v1 = vrot.slane %v482_v63, 4  ;;  %v535_v2 = vadd.f32 %v534_v0, %v533_v32 }
  0xe1   : > { %v484_v3 = vadd.f32 %v483_v1, %v482_v63  ;;  %v536_v4 = vrot.slane %v535_v2, 4 }
  0xe3   : > { %v485_v6 = vrot.slane %v484_v3, 2  ;;  %v537_v50 = vadd.f32 %v536_v4, %v535_v2 }
  0xe5   : > { %v486_v7 = vadd.f32 %v485_v6, %v484_v3  ;;  %v538_v8 = vrot.slane %v537_v50, 2 }
  0xe7   : > { %v487_v9 = vrot.slane %v486_v7, 1  ;;  %v539_v5 = vadd.f32 %v538_v8, %v537_v50 }
  0xe9   : > { %v540_v10 = vrot.slane %v539_v5, 1  ;;  %v488_v11 = vadd.f32 %v487_v9, %v486_v7 }
  0xeb   : > { %v541_v12 = vadd.f32 %v540_v10, %v539_v5 }
  0xed   : > { %v543_v13 = vsel %vm542_vm2, %v488_v11, %v541_v12 }
  0xee   : > { %545 = vst.msk [vmem:[%s262_s12] sm:$0x3] %vm544_vm3, %v543_v13 }
  0xef PF: > { %s15_s19 = sadd.s32 1, %s884_s19   ;;  %s1165_s15 = smov %s876_s17 }
  0xf0   : > { %p12_p8 = scmp.ge.s32.totalorder %s15_s19, 6   ;;  %s1166_s16 = smov %s880_s18 }
  0xf1   : > { %s1167_s17 = smov %s1170_s20  ;;  %s1168_s18 = smov %s1174_s21 }
  0xf2   :  { %14 = sbr.rel (!%p12_p8) target bundleno = 3 (0x3), region = 74 }

// kernel: preact_bottleneck.7
= control target key start
LH: loop header
LB: loop body
LE: loop exit
PB: predicated region body
PF: predicated region fallthrough
CT: control target
= control target key end

     0   :  { %s1380_s0 = inlined_call_operand.vmem [shape: bf16[2,16,16,32], index: 0, kind: input, shape index: {}]   ;;  %s1381_s1 = inlined_call_operand.vmem [shape: f32[2,16,16,128], index: 1, kind: input, shape index: {}]   ;;  %s1382_s2 = inlined_call_operand.vmem [shape: f32[2,32], index: 2, kind: input, shape index: {}]   ;;  %s1383_s3 = inlined_call_operand.vmem [shape: bf16[32,128], index: 3, kind: input, shape index: {}]   ;;  %s1384_s4 = inlined_call_operand.hbm [shape: f32[2,16,16,128], index: 4, kind: output, shape index: {0}]   ;;  %s1385_s5 = inlined_call_operand.hbm [shape: f32[2,2,2,128], index: 5, kind: output, shape index: {1}]  }
   0x1   :  { %1386 = sst [smem:[#allocation8_spill]] %s1380_s0 }
   0x2   :  { %11 = vsyncpa [#allocation3], 0 }
   0x3   :  { %13 = vsyncpa [#allocation3 + $0x1], 0 }
   0x4   :  { %14 = vsyncpa [#allocation5], 0 }
   0x5   :  { %16 = vsyncpa [#allocation5 + $0x1], 0  ;;  %s1092_s18 = smov 0   ;;  %s1094_s19 = smov 0  }
   0x6   :  { %s1096_s20 = smov 0   ;;  %s1098_s21 = smov 0  }
   0x7   :  { %s1100_s22 = smov 0   ;;  %s1102_s23 = smov 0  }
   0x8   :  { %s1104_s24 = smov 0   ;;  %s1106_s25 = smov 0  }
   0x9 LB: > { %s765_s26 = sadd.s32 4294967295, %s1058_s25   ;;  %s766_s27 = sadd.s32 4294967294, %s1058_s25   ;;  %s1058_s25 = sphi %s1106_s25, %s22_s25   ;;  %s1054_s24 = sphi %s1104_s24, %s1396_s24   ;;  %s1050_s23 = sphi %s1102_s23, %s1395_s23   ;;  %s1046_s22 = sphi %s1100_s22, %s1394_s22   ;;  %s1042_s21 = sphi %s1098_s21, %s1393_s21   ;;  %s1038_s20 = sphi %s1096_s20, %s1392_s20   ;;  %s1034_s19 = sphi %s1094_s19, %s1391_s19   ;;  %s1030_s18 = sphi %s1092_s18, %s1390_s18  }
   0xa   : > { %s31_s28 = sadd.s32 1, %s1050_s23  ;;  %s34_s29 = sadd.s32 1, %s1054_s24 }
   0xb   : > { %p32_p0 = scmp.ge.s32.totalorder %s31_s28, 2  ;;  %p151_p1 = scmp.ne.s32.totalorder %s1038_s20, %s1034_s19 }
   0xc   : > { %p152_p2 = scmp.eq.s32.totalorder %s765_s26, 3  ;;  %p157_p5 = scmp.ne.s32.totalorder %s1034_s19, %s1030_s18 }
   0xd   : > { %s1398_s28 = smov (%p32_p0, %s31_s28), 0  ;;  %s1400_s29 = smov (!%p32_p0, %s34_s29), %s1054_s24 }
   0xe   : > { %s137_s30 = ssub.s32 %s1050_s23, %s1398_s28  ;;  %p1143_p3 = por %p152_p2, %p151_p1 }
   0xf   : > { %p36_p4 = scmp.ge.s32.totalorder %s1400_s29, 2  ;;  %p158_p6 = scmp.eq.s32.totalorder %s766_s27, 3 }
  0x10   : > { %p769_p7 = scmp.ge.s32.totalorder %s1058_s25, 1  ;;  %p238_p9 = scmp.lt.s32.totalorder %s1058_s25, 5 }
  0x11   : > { %s1402_s29 = smov (%p36_p4, %s1400_s29), 0  ;;  %p1152_p8 = por %p158_p6, %p157_p5 }
  0x12   : > { %s136_s8 = ssub.s32 %s1054_s24, %s1402_s29  ;;  %s141_s9 = sadd.s32 1, %s1038_s20 }
  0x13   : > { %s138_s10 = sor.u32 %s137_s30, %s136_s8  ;;  %p239_p10 = pnand %p769_p7, %p238_p9 }
  0x14   : > { %p139_p11 = scmp.eq.s32.totalorder %s138_s10, 0  ;;  %s772_s14 = sshll.u32 (!%p239_p10), %s1042_s21, 3 }
  0x15   : > { %242 = sbr.rel (%p239_p10) target bundleno = 239 (0xef), region = 36  ;;  %p287_p12 = scmp.lt.s32.totalorder (!%p239_p10), %s1046_s22, 1 }
  0x16   : > { %s1161_s11 = scalar_select %p139_p11, %s1038_s20, %s141_s9  }
  0x17   : > { %p289_p13 = scmp.lt.s32.totalorder (!%p239_p10), %s772_s14, 15  ;;  %s1389_s0 = sld [smem:[#allocation8_spill]] (!%p239_p10) }
  0x18   : > { %s1237_s16 = sand.u32 (!%p239_p10), 1, %s1034_s19  }
  0x19   : > { %s770_s30 = sshll.u32 (!%p239_p10), %s1237_s16, 7 }
  0x1a   : > { %v807_v0 = vld [vmem:[%s1383_s3 + $0x8] sm:$0xff]  ;;  %v806_v1 = vld [vmem:[%s1383_s3] sm:$0xff]  ;;  %s288_s17 = scalar_select %p287_p12, %s1046_s22, 1  ;;  %vm433_vm0 = vcmask 261120  }
  0x1b   : > { %464 = vmatpush.bf16.msra.mxu0 %v807_v0  ;;  %848 = vmatpush.bf16.msra.mxu1 %v807_v0  ;;  %s1404_s14 = smov (!%p289_p13, %s772_s14), 15  ;;  %v310_v2 = vld [vmem:[%s1382_s2] sm:$0x3]  ;;  %s1249_s8 = scalar_lea.vmem [#allocation2], %s770_s30 }
  0x1c   : > { %849 = vmatpush.bf16.msra.mxu2 %v807_v0  ;;  %850 = vmatpush.bf16.msra.mxu3 %v807_v0  ;;  %s774_s26 = sshll.u32 %s288_s17, 5  ;;  %s773_s27 = sshll.u32 %s1404_s14, 1  ;;  %v1183_v3 = vperm.slane %v310_v2, 0  ;;  %v1186_v5 = vperm.slane %v310_v2, 1 }
  0x1d   : > { %s1175_s9 = sadd.s32 %s774_s26, %s773_s27  ;;  %s605_s26 = sshll.u32 %s1249_s8, 4  ;;  %s1304_s26 = int_to_ptr.vmem [resolvable:$true] %s605_s26 }
  0x1e   : > { %s775_s10 = sshll.u32 %s1175_s9, 2  ;;  %s779_s14 = sshll.u32 %s1175_s9, 3 }
  0x1f   : > { %465 = vmatpush.bf16.msra.mxu0 %v806_v1  ;;  %851 = vmatpush.bf16.msra.mxu1 %v806_v1  ;;  %s1181_s15 = scalar_lea.vmem %s1389_s0, %s775_s10  ;;  %s1242_s27 = scalar_lea.vmem %s1381_s1, %s779_s14 }
  0x20   : > { %852 = vmatpush.bf16.msra.mxu2 %v806_v1  ;;  %853 = vmatpush.bf16.msra.mxu3 %v806_v1  ;;  %v810_v4 = vld [vmem:[%s1181_s15] sm:$0xff]   ;;  %v842_v6 = vld [vmem:[%s1181_s15 + $0x10] sm:$0xff]   ;;  %v841_v33 = vld [vmem:[%s1181_s15 + $0x8] sm:$0xff]   ;;  %s808_s9 = sshll.u32 %s1042_s21, 4  ;;  %s800_s10 = sshll.u32 %s1046_s22, 5 }
  0x21   : > { %v844_v7 = vld [vmem:[%s1181_s15 + $0x20] sm:$0xff]   ;;  %v811_v8 = vunpack.c.l.bf16 %v810_v4  ;;  %v812_v9 = vunpack.c.h.bf16 %v810_v4  ;;  %v819_v10 = vunpack.c.l.bf16 %v842_v6  ;;  %v820_v11 = vunpack.c.h.bf16 %v842_v6  ;;  %v846_v12 = vld [vmem:[%s1181_s15 + $0x30] sm:$0xff]   ;;  %v843_v38 = vld [vmem:[%s1181_s15 + $0x18] sm:$0xff]   ;;  %s602_s12 = sadd.s32 %s808_s9, %s800_s10 }
  0x22   : > { %v827_v13 = vunpack.c.l.bf16 %v844_v7  ;;  %v828_v14 = vunpack.c.h.bf16 %v844_v7  ;;  %v835_v15 = vunpack.c.l.bf16 %v846_v12  ;;  %v836_v16 = vunpack.c.h.bf16 %v846_v12  ;;  %v845_v43 = vld [vmem:[%s1181_s15 + $0x28] sm:$0xff]   ;;  %v847_v48 = vld [vmem:[%s1181_s15 + $0x38] sm:$0xff]   ;;  %s801_s13 = sshll.u32 %s602_s12, 3  ;;  %s952_s15 = scalar_lea.hbm %s1384_s4, 512 }
  0x23   : > { %v344_v17 = vmul.f32 %v811_v8, %v1183_v3  ;;  %v345_v18 = vmul.f32 %v812_v9, %v1183_v3  ;;  %v348_v19 = vmul.f32 %v819_v10, %v1183_v3  ;;  %v349_v20 = vmul.f32 %v820_v11, %v1183_v3  ;;  %s604_s17 = scalar_lea.hbm %s1384_s4, %s801_s13 }
  0x24   : > { %v352_v21 = vmul.f32 %v827_v13, %v1183_v3  ;;  %v353_v22 = vmul.f32 %v828_v14, %v1183_v3  ;;  %v356_v23 = vmul.f32 %v835_v15, %v1183_v3  ;;  %v357_v24 = vmul.f32 %v836_v16, %v1183_v3  ;;  %s607_s30 = sshll.u32 %s604_s17, 4  ;;  %s608_s30 = int_to_ptr.hbm [resolvable:$true] %s607_s30 }
  0x25   : > { %v361_v25 = vadd.f32 %v1186_v5, %v344_v17  ;;  %v362_v26 = vadd.f32 %v1186_v5, %v345_v18  ;;  %v365_v27 = vadd.f32 %v1186_v5, %v348_v19  ;;  %v366_v28 = vadd.f32 %v1186_v5, %v349_v20  ;;  %s946_s9 = sshra.s32 %s608_s30, 4  ;;  %s947_s9 = int_to_ptr.hbm [resolvable:$true] %s946_s9 }
  0x26   : > { %v369_v29 = vadd.f32 %v1186_v5, %v352_v21  ;;  %v370_v30 = vadd.f32 %v1186_v5, %v353_v22  ;;  %v373_v31 = vadd.f32 %v1186_v5, %v356_v23  ;;  %v374_v32 = vadd.f32 %v1186_v5, %v357_v24  ;;  %v409_v22 = vld [vmem:[%s1242_s27 + $0x20] sm:$0xff]  ;;  %s948_s10 = scalar_lea.hbm %s947_s9, 128  ;;  %p953_p4 = scmp.lt.s32.totalorder %s947_s9, %s1384_s4 }
  0x27   : > { %v377_v34 = vmax.f32 %v361_v25, 0.0  ;;  %v378_v35 = vmax.f32 %v362_v26, 0.0  ;;  %v381_v36 = vmax.f32 %v365_v27, 0.0  ;;  %v382_v37 = vmax.f32 %v366_v28, 0.0  ;;  %v413_v27 = vld [vmem:[%s1242_s27 + $0x40] sm:$0xff]  ;;  %v406_v28 = vld [vmem:[%s1242_s27 + $0x8] sm:$0xff]  ;;  %p949_p0 = scmp.ne.s32.totalorder %s947_s9, %s948_s10  ;;  %p954_p5 = scmp.lt.s32.totalorder %s952_s15, %s948_s10 }
  0x28   : > { %v385_v39 = vmax.f32 %v369_v29, 0.0  ;;  %v386_v40 = vmax.f32 %v370_v30, 0.0  ;;  %v389_v41 = vmax.f32 %v373_v31, 0.0  ;;  %v390_v42 = vmax.f32 %v374_v32, 0.0  ;;  %v410_v29 = vld [vmem:[%s1242_s27 + $0x28] sm:$0xff]  ;;  %v417_v30 = vld [vmem:[%s1242_s27 + $0x60] sm:$0xff] }
  0x29   : > { %v393_v44 = vpack.c.bf16 %v378_v35, %v377_v34  ;;  %v395_v45 = vpack.c.bf16 %v382_v37, %v381_v36  ;;  %v815_v46 = vunpack.c.l.bf16 %v841_v33  ;;  %v816_v47 = vunpack.c.h.bf16 %v841_v33  ;;  %p950_p1 = pnand %p949_p0, %p1143_p3  ;;  %p955_p6 = por %p954_p5, %p953_p4 }
  0x2a   : > { %v397_v49 = vpack.c.bf16 %v386_v40, %v385_v39  ;;  %v399_v50 = vpack.c.bf16 %v390_v42, %v389_v41  ;;  %v823_v51 = vunpack.c.l.bf16 %v843_v38  ;;  %v824_v52 = vunpack.c.h.bf16 %v843_v38  ;;  %v414_v39 = vld [vmem:[%s1242_s27 + $0x48] sm:$0xff]  ;;  %v407_v40 = vld [vmem:[%s1242_s27 + $0x10] sm:$0xff] }
  0x2b   : > { %788 = vmatmul.msk.bf16.vlgmr.msra.gmra.mxu0 %vm433_vm0, %v393_v44  ;;  %790 = vmatmul.msk.bf16.vlgmr.msra.gmra.mxu1 %vm433_vm0, %v395_v45  ;;  %v346_v53 = vmul.f32 %v815_v46, %v1183_v3  ;;  %v347_v54 = vmul.f32 %v816_v47, %v1183_v3  ;;  %v831_v55 = vunpack.c.l.bf16 %v845_v43  ;;  %v832_v56 = vunpack.c.h.bf16 %v845_v43  ;;  %v411_v41 = vld [vmem:[%s1242_s27 + $0x30] sm:$0xff]  ;;  %v418_v42 = vld [vmem:[%s1242_s27 + $0x68] sm:$0xff]  ;;  %p951_p2 = pneg %p950_p1 }
  0x2c   : > { %792 = vmatmul.msk.bf16.vlgmr.msra.gmra.mxu2 %vm433_vm0, %v397_v49  ;;  %794 = vmatmul.msk.bf16.vlgmr.msra.gmra.mxu3 %vm433_vm0, %v399_v50  ;;  %v350_v57 = vmul.f32 %v823_v51, %v1183_v3  ;;  %v351_v58 = vmul.f32 %v824_v52, %v1183_v3  ;;  %v839_v59 = vunpack.c.l.bf16 %v847_v48  ;;  %v840_v60 = vunpack.c.h.bf16 %v847_v48  ;;  %v415_v52 = vld [vmem:[%s1242_s27 + $0x50] sm:$0xff] }
  0x2d   : > { %v354_v61 = vmul.f32 %v831_v55, %v1183_v3  ;;  %v355_v62 = vmul.f32 %v832_v56, %v1183_v3  ;;  %v363_v1 = vadd.f32 %v1186_v5, %v346_v53  ;;  %v364_v2 = vadd.f32 %v1186_v5, %v347_v54  ;;  %v408_v54 = vld [vmem:[%s1242_s27 + $0x18] sm:$0xff]  ;;  %v419_v56 = vld [vmem:[%s1242_s27 + $0x70] sm:$0xff]  ;;  %p956_p7 = pnand %p955_p6, %p951_p2 }
  0x2e   : > { %v358_v63 = vmul.f32 %v839_v59, %v1183_v3  ;;  %v359_v0 = vmul.f32 %v840_v60, %v1183_v3  ;;  %v367_v4 = vadd.f32 %v1186_v5, %v350_v57  ;;  %v368_v6 = vadd.f32 %v1186_v5, %v351_v58  ;;  %v412_v55 = vld [vmem:[%s1242_s27 + $0x38] sm:$0xff] }
  0x2f   : > { %v371_v7 = vadd.f32 %v1186_v5, %v354_v61  ;;  %v372_v8 = vadd.f32 %v1186_v5, %v355_v62  ;;  %v379_v11 = vmax.f32 %v363_v1, 0.0  ;;  %v380_v12 = vmax.f32 %v364_v2, 0.0 }
  0x30   : > { %v375_v9 = vadd.f32 %v1186_v5, %v358_v63  ;;  %v376_v10 = vadd.f32 %v1186_v5, %v359_v0  ;;  %v383_v3 = vmax.f32 %v367_v4, 0.0  ;;  %v384_v13 = vmax.f32 %v368_v6, 0.0  ;;  %v405_v5 = vld [vmem:[%s1242_s27] sm:$0xff] }
  0x31   : > { %v387_v14 = vmax.f32 %v371_v7, 0.0  ;;  %v388_v15 = vmax.f32 %v372_v8, 0.0  ;;  %v394_v18 = vpack.c.bf16 %v380_v12, %v379_v11 }
  0x32   : > { %v391_v16 = vmax.f32 %v375_v9, 0.0  ;;  %v392_v17 = vmax.f32 %v376_v10, 0.0  ;;  %v396_v19 = vpack.c.bf16 %v384_v13, %v383_v3  ;;  %v416_v3 = vld [vmem:[%s1242_s27 + $0x58] sm:$0xff] }
  0x33   : > { %v398_v20 = vpack.c.bf16 %v388_v15, %v387_v14  ;;  %v420_v13 = vld [vmem:[%s1242_s27 + $0x78] sm:$0xff]  ;;  %s585_s27 = scalar_lea.sflag [#allocation3], %s1237_s16 }
  0x34   : > { %v400_v21 = vpack.c.bf16 %v392_v17, %v391_v16 }
  0x3b   : > { %789 = vmatmul.msk.bf16.gmra.mxu0 %vm433_vm0, %v394_v18  ;;  %791 = vmatmul.msk.bf16.gmra.mxu1 %vm433_vm0, %v396_v19 }
  0x3c   : > { %793 = vmatmul.msk.bf16.gmra.mxu2 %vm433_vm0, %v398_v20  ;;  %795 = vmatmul.msk.bf16.gmra.mxu3 %vm433_vm0, %v400_v21 }
  0xa8   : > { %v467_v23 = vpop.f32.mrf.mxu0  ;;  %v477_v24 = vpop.f32.mrf.mxu1 }
  0xa9   : > { %v468_v25 = vadd.f32 %v467_v23, %v405_v5  ;;  %v1247_v26 = vadd.f32 %v477_v24, %v409_v22 }
  0xab   : > { %507 = vst [vmem:[%s1249_s8] sm:$0xff] %v468_v25  ;;  %v544_v53 = vmul.f32 %v468_v25, %v468_v25  ;;  %v548_v10 = vmul.f32 %v1247_v26, %v1247_v26 }
  0xac   : > { %511 = vst [vmem:[%s1249_s8 + $0x20] sm:$0xff] %v1247_v26 }
  0xaf   : > { %v487_v31 = vpop.f32.mrf.mxu2  ;;  %v497_v32 = vpop.f32.mrf.mxu3 }
  0xb0   : > { %v469_v33 = vpop.f32.mrf.mxu0  ;;  %v479_v34 = vpop.f32.mrf.mxu1  ;;  %v1258_v35 = vadd.f32 %v487_v31, %v413_v27  ;;  %v1260_v38 = vadd.f32 %v497_v32, %v417_v30 }
  0xb1   : > { %v470_v36 = vadd.f32 %v469_v33, %v406_v28  ;;  %v480_v37 = vadd.f32 %v479_v34, %v410_v29 }
  0xb2   : > { %515 = vst [vmem:[%s1249_s8 + $0x40] sm:$0xff] %v1258_v35 }
  0xb3   : > { %508 = vst [vmem:[%s1249_s8 + $0x8] sm:$0xff] %v470_v36  ;;  %v545_v51 = vmul.f32 %v470_v36, %v470_v36  ;;  %v523_v57 = vadd.f32 %v470_v36, %v468_v25  ;;  %v549_v14 = vmul.f32 %v480_v37, %v480_v37 }
  0xb4   : > { %512 = vst [vmem:[%s1249_s8 + $0x28] sm:$0xff] %v480_v37 }
  0xb5   : > { %519 = vst [vmem:[%s1249_s8 + $0x60] sm:$0xff] %v1260_v38  ;;  %v560_v61 = vadd.f32 %v545_v51, %v544_v53 }
  0xb7   : > { %v489_v43 = vpop.f32.mrf.mxu2  ;;  %v499_v44 = vpop.f32.mrf.mxu3 }
  0xb8   : > { %v472_v45 = vpop.f32.mrf.mxu0  ;;  %v482_v46 = vpop.f32.mrf.mxu1  ;;  %v1272_v47 = vadd.f32 %v489_v43, %v414_v39  ;;  %v1274_v50 = vadd.f32 %v499_v44, %v418_v42 }
  0xb9   : > { %v473_v48 = vadd.f32 %v472_v45, %v407_v40  ;;  %v483_v49 = vadd.f32 %v482_v46, %v411_v41 }
  0xba   : > { %516 = vst [vmem:[%s1249_s8 + $0x48] sm:$0xff] %v1272_v47 }
  0xbb   : > { %509 = vst [vmem:[%s1249_s8 + $0x10] sm:$0xff] %v473_v48  ;;  %v546_v58 = vmul.f32 %v473_v48, %v473_v48  ;;  %v524_v1 = vadd.f32 %v523_v57, %v473_v48  ;;  %v550_v21 = vmul.f32 %v483_v49, %v483_v49 }
  0xbc   : > { %513 = vst [vmem:[%s1249_s8 + $0x30] sm:$0xff] %v483_v49 }
  0xbd   : > { %520 = vst [vmem:[%s1249_s8 + $0x68] sm:$0xff] %v1274_v50  ;;  %v561_v7 = vadd.f32 %v560_v61, %v546_v58 }
  0xbf   : > { %v492_v59 = vpop.f32.mrf.mxu2  ;;  %v502_v60 = vpop.f32.mrf.mxu3 }
  0xc0   : > { %v474_v62 = vpop.f32.mrf.mxu0  ;;  %v484_v63 = vpop.f32.mrf.mxu1  ;;  %v493_v0 = vadd.f32 %v492_v59, %v415_v52  ;;  %v1288_v6 = vadd.f32 %v502_v60, %v419_v56 }
  0xc1   : > { %v475_v2 = vadd.f32 %v474_v62, %v408_v54  ;;  %v485_v4 = vadd.f32 %v484_v63, %v412_v55 }
  0xc2   : > { %517 = vst [vmem:[%s1249_s8 + $0x50] sm:$0xff] %v493_v0 }
  0xc3   : > { %510 = vst [vmem:[%s1249_s8 + $0x18] sm:$0xff] %v475_v2  ;;  %v525_v8 = vadd.f32 %v524_v1, %v475_v2  ;;  %v547_v9 = vmul.f32 %v475_v2, %v475_v2  ;;  %v551_v24 = vmul.f32 %v485_v4, %v485_v4 }
  0xc4   : > { %514 = vst [vmem:[%s1249_s8 + $0x38] sm:$0xff] %v485_v4 }
  0xc5   : > { %v526_v11 = vadd.f32 %v525_v8, %v1247_v26  ;;  %v562_v12 = vadd.f32 %v561_v7, %v547_v9  ;;  %521 = vst [vmem:[%s1249_s8 + $0x70] sm:$0xff] %v1288_v6 }
  0xc7   : > { %v563_v15 = vadd.f32 %v562_v12, %v548_v10  ;;  %v527_v16 = vadd.f32 %v526_v11, %v480_v37  ;;  %v494_v17 = vpop.f32.mrf.mxu2  ;;  %v504_v18 = vpop.f32.mrf.mxu3 }
  0xc8   : > { %v495_v19 = vadd.f32 %v494_v17, %v416_v3  ;;  %v505_v20 = vadd.f32 %v504_v18, %v420_v13 }
  0xc9   : > { %v528_v5 = vadd.f32 %v527_v16, %v483_v49  ;;  %v564_v22 = vadd.f32 %v563_v15, %v549_v14 }
  0xca   : > { %518 = vst [vmem:[%s1249_s8 + $0x58] sm:$0xff] %v495_v19 }
  0xcb   : > { %v529_v23 = vadd.f32 %v528_v5, %v485_v4  ;;  %v565_v25 = vadd.f32 %v564_v22, %v550_v21  ;;  %522 = vst [vmem:[%s1249_s8 + $0x78] sm:$0xff] %v505_v20 }
  0xcc   : > { %959 = shalt.err (!%p956_p7)
}
  0xcd   : > { %s1060_s8 = smov 128   ;;  %s1061_s0 = smov 8   ;;  %v552_v26 = vmul.f32 %v1258_v35, %v1258_v35  ;;  %v530_v27 = vadd.f32 %v529_v23, %v1258_v35  ;;  %v566_v28 = vadd.f32 %v565_v25, %v551_v24  ;;  %v553_v29 = vmul.f32 %v1272_v47, %v1272_v47 }
  0xce   : > { %854 = dma.vmem_to_hbm [thread:$0]  (%p1143_p3), %s1304_s26, 2048, %s608_s30, %s585_s27, %s1060_s8, %s1060_s8, %s1061_s0   ;;  %v554_v33 = vmul.f32 %v493_v0, %v493_v0  ;;  %v555_v39 = vmul.f32 %v495_v19, %v495_v19  ;;  %v556_v40 = vmul.f32 %v1260_v38, %v1260_v38  ;;  %v557_v42 = vmul.f32 %v1274_v50, %v1274_v50 }
  0xcf   : > { %v567_v30 = vadd.f32 %v566_v28, %v552_v26  ;;  %v531_v31 = vadd.f32 %v530_v27, %v1272_v47  ;;  %v558_v46 = vmul.f32 %v1288_v6, %v1288_v6  ;;  %v559_v51 = vmul.f32 %v505_v20, %v505_v20  ;;  %s802_s0 = sshll.u32 %s1046_s22, 1  ;;  %s771_s30 = sshll.u32 %s1237_s16, 1 }
  0xd0   : > { %s620_s26 = sadd.s32 %s1042_s21, %s802_s0  ;;  %s285_s22 = scalar_lea.vmem [#allocation4], %s771_s30  ;;  %vm581_vm1 = vcmask 1040384  }
  0xd1   : > { %v532_v32 = vadd.f32 %v531_v31, %v493_v0  ;;  %v568_v34 = vadd.f32 %v567_v30, %v553_v29  ;;  %s803_s27 = sshll.u32 %s620_s26, 1  ;;  %s624_s13 = sshll.u32 %s285_s22, 4  ;;  %s625_s13 = int_to_ptr.vmem [resolvable:$true] %s624_s13 }
  0xd2   : > { %s622_s12 = scalar_lea.hbm %s1385_s5, %s803_s27  ;;  %s590_s15 = scalar_lea.sflag [#allocation5], %s1237_s16 }
  0xd3   : > { %v569_v36 = vadd.f32 %v568_v34, %v554_v33  ;;  %v533_v37 = vadd.f32 %v532_v32, %v495_v19  ;;  %s626_s21 = sshll.u32 %s622_s12, 4  ;;  %s980_s26 = scalar_lea.hbm %s1385_s5, 8  ;;  %s627_s21 = int_to_ptr.hbm [resolvable:$true] %s626_s21 }
  0xd4   : > { %s974_s14 = sshra.s32 %s627_s21, 4  ;;  %s975_s14 = int_to_ptr.hbm [resolvable:$true] %s974_s14 }
  0xd5   : > { %v534_v35 = vadd.f32 %v533_v37, %v1260_v38  ;;  %v570_v41 = vadd.f32 %v569_v36, %v555_v39  ;;  %s976_s17 = scalar_lea.hbm %s975_s14, 2  ;;  %p981_p12 = scmp.lt.s32.totalorder %s975_s14, %s1385_s5 }
  0xd6   : > { %p977_p9 = scmp.ne.s32.totalorder %s975_s14, %s976_s17  ;;  %p982_p13 = scmp.lt.s32.totalorder %s980_s26, %s976_s17 }
  0xd7   : > { %v571_v43 = vadd.f32 %v570_v41, %v556_v40  ;;  %v535_v44 = vadd.f32 %v534_v35, %v1274_v50 }
  0xd8   : > { %p978_p10 = pnand %p977_p9, %p1143_p3  ;;  %p983_p0 = por %p982_p13, %p981_p12 }
  0xd9   : > { %v536_v45 = vadd.f32 %v535_v44, %v1288_v6  ;;  %v572_v47 = vadd.f32 %v571_v43, %v557_v42 }
  0xda   : > { %p979_p11 = pneg %p978_p10 }
  0xdb   : > { %v573_v48 = vadd.f32 %v572_v47, %v558_v46  ;;  %v537_v49 = vadd.f32 %v536_v45, %v505_v20 }
  0xdc   : > { %p984_p1 = pnand %p983_p0, %p979_p11 }
  0xdd   : > { %v538_v52 = vrot.slane %v537_v49, 4  ;;  %v574_v38 = vadd.f32 %v573_v48, %v559_v51 }
  0xdf   : > { %v539_v53 = vadd.f32 %v538_v52, %v537_v49  ;;  %v575_v54 = vrot.slane %v574_v38, 4 }
  0xe1   : > { %v540_v55 = vrot.slane %v539_v53, 2  ;;  %v576_v56 = vadd.f32 %v575_v54, %v574_v38 }
  0xe3   : > { %v541_v50 = vadd.f32 %v540_v55, %v539_v53  ;;  %v577_v57 = vrot.slane %v576_v56, 2 }
  0xe5   : > { %v542_v58 = vrot.slane %v541_v50, 1  ;;  %v578_v59 = vadd.f32 %v577_v57, %v576_v56 }
  0xe7   : > { %v579_v60 = vrot.slane %v578_v59, 1  ;;  %v543_v61 = vadd.f32 %v542_v58, %v541_v50 }
  0xe9   : > { %v580_v62 = vadd.f32 %v579_v60, %v578_v59 }
  0xeb   : > { %v582_v63 = vsel %vm581_vm1, %v543_v61, %v580_v62 }
  0xec   : > { %583 = vst [vmem:[%s285_s22] sm:$0x3] %v582_v63 }
  0xed   : > { %987 = shalt.err (!%p984_p1)
}
  0xee   : > { %855 = dma.vmem_to_hbm [thread:$0]  (%p1143_p3), %s625_s13, 32, %s627_s21, %s590_s15  }
  0xef PF: > { %p865_p2 = scmp.ge.s32.totalorder %s1058_s25, 2  ;;  %s638_s16 = sand.u32 1, %s1030_s18  }
  0xf0   : > { %s639_s9 = scalar_lea.sflag [#allocation3], %s638_s16 }
  0xf1   : > { %p859_p4 = pnand %p865_p2, %p1152_p8 }
  0xf3   : > { %p860_p5 = pneg %p859_p4 }
  0xf5   : > { %1021 = dma.done.wait (%p860_p5), %s639_s9, 2048  }
  0xf6   : > { %1023 = vsyncadd (%p860_p5), %s639_s9, 4294965248  ;;  %s649_s10 = scalar_lea.sflag [#allocation5], %s638_s16 }
  0xf7   : > { %1025 = dma.done.wait (%p860_p5), %s649_s10, 32  }
  0xf8   : > { %1027 = vsyncadd (%p860_p5), %s649_s10, 4294967264  ;;  %s22_s25 = sadd.s32 1, %s1058_s25   ;;  %s1390_s18 = smov %s1034_s19 }
  0xf9   : > { %p19_p6 = scmp.ge.s32.totalorder %s22_s25, 6   ;;  %s1391_s19 = smov %s1038_s20 }
  0xfa   : > { %s1392_s20 = smov %s1161_s11  ;;  %s1393_s21 = smov %s1050_s23 }
  0xfb   : > { %s1394_s22 = smov %s1054_s24  ;;  %s1395_s23 = smov %s1398_s28 }
  0xfc   : > { %s1396_s24 = smov %s1402_s29  ;;  %21 = sbr.rel (!%p19_p6) target bundleno = 9 (0x9), region = 91 }
 0x101   :  { %655 = vsyncpa [#allocation3], 1 }
 0x102   :  { %657 = vsyncpa [#allocation3 + $0x1], 1 }
 0x103   :  { %658 = vsyncpa [#allocation5], 1 }
 0x104   :  { %660 = vsyncpa [#allocation5 + $0x1], 1 }

// kernel: preact_bottleneck.6
= control target key start
LH: loop header
LB: loop body
LE: loop exit
PB: predicated region body
PF: predicated region fallthrough
CT: control target
= control target key end

     0   :  { %s2209_s15 = smov 0   ;;  %s2211_s16 = smov 0   ;;  %s3145_s0 = inlined_call_operand.vmem [shape: bf16[2,16,16,32], index: 0, kind: input, shape index: {}]   ;;  %s3146_s1 = inlined_call_operand.vmem [shape: f32[2,32], index: 1, kind: input, shape index: {}]   ;;  %s3147_s2 = inlined_call_operand.vmem [shape: bf16[3,96,32], index: 2, kind: input, shape index: {}]   ;;  %s3148_s3 = inlined_call_operand.vmem [shape: bf16[2,16,16,32], index: 3, kind: output, shape index: {0}]   ;;  %s3149_s4 = inlined_call_operand.vmem [shape: f32[2,2,2,32], index: 4, kind: output, shape index: {1}]  }
   0x1   :  { %s2213_s17 = smov 0   ;;  %s2215_s18 = smov 0  }
   0x2   :  { %s2217_s19 = smov 0  }
   0x3 LB: > { %s24_s20 = sadd.s32 1, %s2172_s17  ;;  %s27_s21 = sadd.s32 1, %s2176_s18  ;;  %s2180_s19 = sphi %s2217_s19, %s15_s19   ;;  %s2176_s18 = sphi %s2215_s18, %s3198_s18   ;;  %s2172_s17 = sphi %s2213_s17, %s3197_s17   ;;  %s2168_s16 = sphi %s2211_s16, %s3196_s16   ;;  %s2164_s15 = sphi %s2209_s15, %s3195_s15  }
   0x4   : > { %p25_p0 = scmp.ge.s32.totalorder %s24_s20, 2  ;;  %p1633_p1 = scmp.ge.s32.totalorder %s2180_s19, 1 }
   0x5   : > { %p181_p2 = scmp.lt.s32.totalorder %s2180_s19, 5 }
   0x6   : > { %s3200_s20 = smov (%p25_p0, %s24_s20), 0  ;;  %s3202_s21 = smov (!%p25_p0, %s27_s21), %s2176_s18 }
   0x7   : > { %p182_p3 = pnand %p1633_p1, %p181_p2  ;;  %p29_p4 = scmp.ge.s32.totalorder %s3202_s21, 2 }
   0x9   : > { %s3204_s21 = smov (%p29_p4, %s3202_s21), 0  ;;  %185 = sbr.rel (%p182_p3) target bundleno = 436 (0x1b4), region = 32 }
   0xe   : > { %p220_p5 = scmp.lt.s32.totalorder %s2168_s16, 1  ;;  %v376_v0 = vlaneseq  ;;  %v246_v1 = vld [vmem:[%s3146_s1] sm:$0x3]  ;;  %s1774_s24 = sshll.u32 %s2164_s15, 6  ;;  %vm627_vm6 = vcmask 261120   ;;  %vm644_vm7 = vcmask 523264  }
   0xf   : > { %s2256_s29 = sshll.u32 %s2164_s15, 3  ;;  %v2261_v3 = vperm.slane %v246_v1, 0  ;;  %v2264_v5 = vperm.slane %v246_v1, 1  ;;  %s2182_s11 = smov 32   ;;  %vm884_vm8 = vcmask 785408   ;;  %vm1469_vm9 = vcmask 257024  }
  0x10   : > { %s3206_s16 = smov (!%p220_p5, %s2168_s16), 1  ;;  %v2247_v2 = vshrl.u32 %v376_v0, 7  ;;  %s1645_s5 = sadd.s32 4294967295, %s2256_s29  ;;  %vm1449_vm10 = vcmask 1040384   ;;  %vm1451_vm11 = vcmask 254976  }
  0x11   : > { %s1772_s25 = sshll.u32 %s3206_s16, 7  ;;  %p2276_p6 = scmp.gt.s32.totalorder %s1645_s5, 0 }
  0x12   : > { %s2253_s28 = scalar_lea.vmem %s3145_s0, %s1772_s25  ;;  %v2269_v8 = vadd.s32 8, %v2247_v2  ;;  %p332_p7 = scmp.gt.s32.totalorder %s2256_s29, 0  ;;  %vm468_vm0 = vcmp.lt.s32.totalorder %v2247_v2, 7  ;;  %vm401_vm3 = vcmp.lt.s32.totalorder %v2247_v2, 1  ;;  %vm379_vm4 = vcmp.ge.s32.totalorder %v2247_v2, 1 }
  0x13   : > { %s2259_s30 = scalar_lea.vmem %s2253_s28, %s1774_s24  ;;  %s3208_s5 = smov (!%p2276_p6, %s1645_s5), 0 }
  0x14   : > { %v1840_v4 = vld [vmem:[%s2259_s30 + $0x30] sm:$0xff]   ;;  %v1796_v6 = vld [vmem:[%s2259_s30] sm:$0xff]   ;;  %v1841_v7 = vld [vmem:[%s2259_s30 + $0x38] sm:$0xff]   ;;  %s2309_s7 = scalar_select %p332_p7, 1, 0  ;;  %vm447_vm1 = vcmp.le.s32.totalorder %v2269_v8, 14 }
  0x15   : > { %v1821_v9 = vunpack.c.l.bf16 %v1840_v4  ;;  %v1822_v10 = vunpack.c.h.bf16 %v1840_v4  ;;  %v1797_v11 = vunpack.c.l.bf16 %v1796_v6  ;;  %v1798_v12 = vunpack.c.h.bf16 %v1796_v6  ;;  %v1835_v13 = vld [vmem:[%s2259_s30 + $0x8] sm:$0xff]   ;;  %v2273_v14 = vld [vmem:[%s2259_s30 + $0x10] sm:$0xff]   ;;  %s1775_s8 = sshll.u32 %s3208_s5, 3  ;;  %s2316_s9 = sadd.s32 8, %s2256_s29  ;;  %v2342_v52 = vld [vmem:[%s2259_s30 + $0x18] sm:$0xff]  }
  0x16   : > { %v1825_v15 = vunpack.c.l.bf16 %v1841_v7  ;;  %v1826_v16 = vunpack.c.h.bf16 %v1841_v7  ;;  %v1801_v17 = vunpack.c.l.bf16 %v1835_v13  ;;  %v1802_v18 = vunpack.c.h.bf16 %v1835_v13  ;;  %s338_s10 = scalar_lea.vmem %s2253_s28, %s1775_s8  ;;  %p356_p8 = scmp.lt.s32.totalorder %s2316_s9, 15 }
  0x17   : > { %v295_v19 = vmul.f32 %v1821_v9, %v2261_v3  ;;  %v296_v20 = vmul.f32 %v1822_v10, %v2261_v3  ;;  %v283_v21 = vmul.f32 %v1797_v11, %v2261_v3  ;;  %v284_v22 = vmul.f32 %v1798_v12, %v2261_v3  ;;  %v2331_v48 = vld [vmem:[%s338_s10] sm:$0xff]   ;;  %s2183_s13 = smov 64   ;;  %p355_p9 = scmp.lt.s32.totalorder %s2316_s9, 16 }
  0x18   : > { %v297_v23 = vmul.f32 %v1825_v15, %v2261_v3  ;;  %v298_v24 = vmul.f32 %v1826_v16, %v2261_v3  ;;  %v285_v25 = vmul.f32 %v1801_v17, %v2261_v3  ;;  %v1805_v26 = vunpack.c.l.bf16 %v2273_v14  ;;  %s2378_s12 = scalar_select %p356_p8, %s2316_s9, 15 }
  0x19   : > { %v312_v27 = vadd.f32 %v2264_v5, %v295_v19  ;;  %v313_v28 = vadd.f32 %v2264_v5, %v296_v20  ;;  %v300_v29 = vadd.f32 %v2264_v5, %v283_v21  ;;  %v301_v30 = vadd.f32 %v2264_v5, %v284_v22  ;;  %s371_s23 = scalar_select %p355_p9, 1, 0 }
  0x1a   : > { %v314_v31 = vadd.f32 %v2264_v5, %v297_v23  ;;  %v315_v32 = vadd.f32 %v2264_v5, %v298_v24  ;;  %v302_v33 = vadd.f32 %v2264_v5, %v285_v25  ;;  %v286_v34 = vmul.f32 %v1802_v18, %v2261_v3  ;;  %s1776_s14 = sshll.u32 %s2378_s12, 3  ;;  %p228_p10 = scmp.lt.s32.totalorder %s2256_s29, 15 }
  0x1b   : > { %v2299_v35 = vmax.f32 %v312_v27, 0.0  ;;  %v2301_v36 = vmax.f32 %v313_v28, 0.0  ;;  %v2303_v37 = vmax.f32 %v300_v29, 0.0  ;;  %v2305_v38 = vmax.f32 %v301_v30, 0.0  ;;  %s360_s22 = scalar_lea.vmem %s2253_s28, %s1776_s14  ;;  %p238_p11 = scmp.lt.s32.totalorder %s2164_s15, 1 }
  0x1c   : > { %v2311_v39 = vmax.f32 %v302_v33, 0.0  ;;  %v287_v40 = vmul.f32 %v1805_v26, %v2261_v3  ;;  %v303_v46 = vadd.f32 %v2264_v5, %v286_v34  ;;  %v2336_v49 = vmax.f32 %v314_v31, 0.0  ;;  %s3210_s29 = smov (!%p228_p10, %s2256_s29), 15 }
  0x1d   : > { %v2320_v41 = vpack.i.bf16 %v2301_v36, %v2299_v35  ;;  %v1902_v42 = vpack.i.bf16 %v2305_v38, %v2303_v37  ;;  %v3151_v43 = vrot.slane %v2303_v37, 1  ;;  %v451_v44 = vrot.slane %v2305_v38, 1  ;;  %s3212_s15 = smov (!%p238_p11, %s2164_s15), 1 }
  0x1e   : > { %v452_v45 = vrot.slane %v2311_v39, 1  ;;  %v304_v47 = vadd.f32 %v2264_v5, %v287_v40  ;;  %v2338_v50 = vmax.f32 %v315_v32, 0.0  ;;  %v1830_v51 = vunpack.c.h.bf16 %v2331_v48 }
  0x1f   : > { %1913 = vrot.lane.b32.xlu0 %v2320_v41, %s2182_s11  ;;  %1903 = vrot.lane.b32.xlu1 %v1902_v42, %s2182_s11  ;;  %v2351_v54 = vsel %vm468_vm0, %v3151_v43, %v451_v44  ;;  %v2353_v55 = vmax.f32 %v303_v46, 0.0  ;;  %v350_v59 = vstv %s2309_s7  ;;  %v1806_v60 = vunpack.c.h.bf16 %v2273_v14 }
  0x20   : > { %v484_v53 = vsel %vm468_vm0, %v451_v44, %v452_v45  ;;  %v2355_v56 = vmax.f32 %v304_v47, 0.0  ;;  %v344_v58 = vmul.f32 %v1830_v51, %v2261_v3  ;;  %v1809_v63 = vunpack.c.l.bf16 %v2342_v52  ;;  %v1832_v44 = vld [vmem:[%s360_s22] sm:$0xff]  }
  0x21   : > { %v2359_v57 = vsel %vm447_vm1, %v484_v53, 0.0  ;;  %v453_v61 = vrot.slane %v2353_v55, 1  ;;  %v2369_v0 = vpack.i.bf16 %v2338_v50, %v2336_v49  ;;  %v288_v6 = vmul.f32 %v1806_v60, %v2261_v3  ;;  %v1838_v53 = vld [vmem:[%s2259_s30 + $0x20] sm:$0xff]  }
  0x22   : > { %v454_v62 = vrot.slane %v2355_v56, 1  ;;  %v1922_v1 = vpack.i.bf16 %v2359_v57, %v2351_v54  ;;  %v346_v4 = vadd.f32 %v344_v58, %v2264_v5  ;;  %vm2380_vm2 = vcmp.eq.s32.totalorder %v350_v59, 1 }
  0x23   : > { %v383_v9 = vrot.slane %v2303_v37, 7  ;;  %v384_v10 = vrot.slane %v2305_v38, 7  ;;  %v289_v11 = vmul.f32 %v1809_v63, %v2261_v3  ;;  %v305_v14 = vadd.f32 %v2264_v5, %v288_v6  ;;  %v1839_v6 = vld [vmem:[%s2259_s30 + $0x28] sm:$0xff]  }
  0x24   : > { %v482_v12 = vsel %vm468_vm0, %v453_v61, %v454_v62  ;;  %v348_v13 = vmax.f32 %v346_v4, 0.0  ;;  %v385_v15 = vrot.slane %v2311_v39, 7  ;;  %v2399_v17 = vsel %vm468_vm0, %v452_v45, %v453_v61 }
  0x25   : > { %v306_v16 = vadd.f32 %v2264_v5, %v289_v11  ;;  %v2405_v19 = vmax.f32 %v305_v14, 0.0  ;;  %v2409_v20 = vpack.i.bf16 %v2353_v55, %v2311_v39  ;;  %v2414_v21 = vsel %vm447_vm1, %v482_v12, 0.0 }
  0x26   : > { %v2403_v18 = vsel %vm2380_vm2, %v348_v13, 0.0  ;;  %v386_v24 = vrot.slane %v2353_v55, 7  ;;  %v2422_v25 = vsel %vm401_vm3, %v383_v9, %v384_v10  ;;  %v417_v27 = vsel %vm401_vm3, %v384_v10, %v385_v15 }
  0x27   : > { %1918 = vrot.lane.b32.xlu1 %v2369_v0, %s2183_s13  ;;  %1923 = vrot.lane.b32.xlu0 %v1922_v1, %s2182_s11  ;;  %v3150_v22 = vrot.slane %v2403_v18, 7  ;;  %v2417_v23 = vmax.f32 %v306_v16, 0.0  ;;  %v455_v26 = vrot.slane %v2405_v19, 1  ;;  %v1927_v30 = vpack.i.bf16 %v2414_v21, %v2399_v17 }
  0x28   : > { %1908 = vrot.lane.b32.xlu2 %v2409_v20, %s2183_s13  ;;  %v2445_v33 = vsel %vm401_vm3, %v385_v15, %v386_v24  ;;  %v2449_v34 = vsel %vm379_vm4, %v417_v27, 0.0  ;;  %v1833_v47 = vunpack.c.l.bf16 %v1832_v44  ;;  %v1834_v51 = vunpack.c.h.bf16 %v1832_v44 }
  0x29   : > { %3169 = vst [vmem:[#allocation2_spill] sm:$0xff] %v2417_v23  ;;  %v419_v28 = vsel %vm401_vm3, %v3150_v22, %v383_v9  ;;  %v456_v29 = vrot.slane %v2417_v23, 1  ;;  %v1932_v42 = vpack.i.bf16 %v2445_v33, %v2449_v34  ;;  %v2461_v45 = vsel %vm468_vm0, %v454_v62, %v455_v26 }
  0x2a   : > { %v2439_v31 = vsel %vm379_vm4, %v419_v28, 0.0  ;;  %v387_v58 = vrot.slane %v2355_v56, 7  ;;  %v1813_v60 = vunpack.c.l.bf16 %v1838_v53  ;;  %v388_v61 = vrot.slane %v2405_v19, 7 }
  0x2b   : > { %v1947_v32 = vpack.i.bf16 %v2422_v25, %v2439_v31  ;;  %v480_v40 = vsel %vm468_vm0, %v455_v26, %v456_v29  ;;  %v365_v62 = vmul.f32 %v1833_v47, %v2261_v3  ;;  %v366_v63 = vmul.f32 %v1834_v51, %v2261_v3 }
  0x2c   : > { %v2465_v46 = vsel %vm447_vm1, %v480_v40, 0.0  ;;  %v415_v1 = vsel %vm401_vm3, %v386_v24, %v387_v58  ;;  %v1810_v4 = vunpack.c.h.bf16 %v2342_v52  ;;  %v291_v9 = vmul.f32 %v1813_v60, %v2261_v3 }
  0x2d   : > { %v1942_v59 = vpack.i.bf16 %v2465_v46, %v2461_v45  ;;  %v2485_v10 = vsel %vm401_vm3, %v387_v58, %v388_v61  ;;  %v2489_v11 = vsel %vm379_vm4, %v415_v1, 0.0  ;;  %v367_v12 = vadd.f32 %v365_v62, %v2264_v5 }
  0x2e   : > { %v368_v52 = vadd.f32 %v366_v63, %v2264_v5  ;;  %v290_v13 = vmul.f32 %v1810_v4, %v2261_v3  ;;  %v1818_v14 = vunpack.c.h.bf16 %v1839_v6  ;;  %v372_v15 = vstv %s371_s23 }
  0x2f   : > { %1928 = vrot.lane.b32.xlu0 %v1927_v30, %s2183_s13  ;;  %1948 = vrot.lane.b32.xlu1 %v1947_v32, %s2182_s11  ;;  %v1962_v16 = vpack.i.bf16 %v2485_v10, %v2489_v11  ;;  %v1967_v24 = vpack.i.bf16 %v2405_v19, %v2355_v56  ;;  %v308_v26 = vadd.f32 %v2264_v5, %v291_v9  ;;  %v369_v27 = vmax.f32 %v367_v12, 0.0 }
  0x30   : > { %1933 = vrot.lane.b32.xlu2 %v1932_v42, %s2183_s13  ;;  %v370_v28 = vmax.f32 %v368_v52, 0.0  ;;  %vm373_vm5 = vcmp.eq.s32.totalorder %v372_v15, 1  ;;  %v307_v32 = vadd.f32 %v2264_v5, %v290_v13  ;;  %v294_v40 = vmul.f32 %v1818_v14, %v2261_v3 }
  0x31   : > { %v1814_v58 = vunpack.c.h.bf16 %v1838_v53  ;;  %v1817_v60 = vunpack.c.l.bf16 %v1839_v6  ;;  %v395_v6 = vrot.slane %v2299_v35, 7  ;;  %v389_v15 = vrot.slane %v2417_v23, 7 }
  0x32   : > { %v2508_v44 = vsel %vm373_vm5, %v370_v28, 0.0  ;;  %v2512_v47 = vmax.f32 %v307_v32, 0.0  ;;  %v311_v51 = vadd.f32 %v2264_v5, %v294_v40 }
  0x33   : > { %v292_v9 = vmul.f32 %v1814_v58, %v2261_v3  ;;  %v293_v12 = vmul.f32 %v1817_v60, %v2261_v3  ;;  %v413_v32 = vsel %vm401_vm3, %v388_v61, %v389_v15 }
  0x34   : > { %3171 = vst [vmem:[#allocation4_spill] sm:$0xff] %v2512_v47  ;;  %v457_v63 = vrot.slane %v2512_v47, 1  ;;  %v2519_v4 = vmax.f32 %v311_v51, 0.0  ;;  %v390_v58 = vrot.slane %v2512_v47, 7  ;;  %v2577_v61 = vsel %vm379_vm4, %v413_v32, 0.0 }
  0x35   : > { %v309_v52 = vadd.f32 %v2264_v5, %v292_v9  ;;  %v310_v13 = vadd.f32 %v2264_v5, %v293_v12  ;;  %v397_v9 = vrot.slane %v2336_v49, 7 }
  0x36   : > { %v3152_v53 = vrot.slane %v2519_v4, 7  ;;  %v2537_v14 = vsel %vm468_vm0, %v456_v29, %v457_v63 }
  0x37   : > { %1943 = vrot.lane.b32.xlu0 %v1942_v59, %s2183_s13  ;;  %1953 = vrot.lane.b32.xlu1 %v1932_v42, %s2182_s11  ;;  %v2506_v42 = vsel %vm373_vm5, %v369_v27, 0.0  ;;  %v2549_v27 = vmax.f32 %v309_v52, 0.0  ;;  %v2551_v28 = vmax.f32 %v310_v13, 0.0 }
  0x38   : > { %1938 = vrot.lane.b32.xlu2 %v1927_v30, %s2182_s11  ;;  %v2504_v30 = vmax.f32 %v308_v26, 0.0  ;;  %v1977_v62 = vpack.i.bf16 %v2508_v44, %v2506_v42  ;;  %v396_v26 = vrot.slane %v2301_v36, 7 }
  0x39   : > { %3172 = vst [vmem:[#allocation5_spill] sm:$0xff] %v2549_v27  ;;  %v459_v60 = vrot.slane %v2549_v27, 1 }
  0x3a   : > { %3170 = vst [vmem:[#allocation3_spill] sm:$0xff] %v2504_v30  ;;  %v458_v1 = vrot.slane %v2504_v30, 1  ;;  %v2561_v40 = vsel %vm401_vm3, %v395_v6, %v396_v26  ;;  %v405_v52 = vsel %vm401_vm3, %v396_v26, %v397_v9 }
  0x3b   : > { %v442_v22 = vsel %vm379_vm4, %v405_v52, 0.0 }
  0x3c   : > { %v2598_v13 = vsel %vm468_vm0, %v458_v1, %v459_v60 }
  0x3d   : > { %3173 = vst [vmem:[#allocation6_spill] sm:$0xff] %v2598_v13 }
  0x3f   : > { %1963 = vrot.lane.b32.xlu0 %v1962_v16, %s2183_s13  ;;  %1968 = vrot.lane.b32.xlu1 %v1967_v24, %s2183_s13 }
  0x40   : > { %1958 = vrot.lane.b32.xlu2 %v2409_v20, %s2182_s11  ;;  %v478_v20 = vsel %vm468_vm0, %v457_v63, %v458_v1  ;;  %v392_v1 = vrot.slane %v2549_v27, 7 }
  0x47   : > { %1978 = vrot.lane.b32.xlu0 %v1977_v62, %s2183_s13  ;;  %1983 = vrot.lane.b32.xlu1 %v1942_v59, %s2182_s11  ;;  %v2541_v59 = vsel %vm447_vm1, %v478_v20, 0.0  ;;  %v460_v62 = vrot.slane %v2551_v28, 1 }
  0x48   : > { %1973 = vrot.lane.b32.xlu2 %v2369_v0, %s2182_s11  ;;  %v407_v0 = vsel %vm401_vm3, %v3152_v53, %v395_v6  ;;  %v1987_v29 = vpack.i.bf16 %v2541_v59, %v2537_v14  ;;  %v398_v6 = vrot.slane %v2338_v50, 7 }
  0x49   : > { %v2565_v51 = vsel %vm379_vm4, %v407_v0, 0.0  ;;  %v476_v12 = vsel %vm468_vm0, %v459_v60, %v460_v62  ;;  %v391_v0 = vrot.slane %v2504_v30, 7 }
  0x4a   : > { %v2583_v63 = vpack.i.bf16 %v2561_v40, %v2565_v51  ;;  %v404_v32 = vsel %vm401_vm3, %v397_v9, %v398_v6  ;;  %v1788_v9 = vld [vmem:[%s3147_s2 + $0x58] sm:$0xff] }
  0x4b   : > { %v411_v60 = vsel %vm401_vm3, %v390_v58, %v391_v0  ;;  %v2625_v52 = vsel %vm401_vm3, %v391_v0, %v392_v1  ;;  %911 = vmatpush.bf16.msra.mxu0 %v1788_v9  ;;  %1842 = vmatpush.bf16.msra.mxu3 %v1788_v9  ;;  %v3154_v0 = vrot.slane %v2508_v44, 7 }
  0x4c   : > { %3175 = vst [vmem:[#allocation8_spill] sm:$0xff] %v2625_v52  ;;  %v2629_v43 = vsel %vm379_vm4, %v411_v60, 0.0  ;;  %v1786_v60 = vld [vmem:[%s3147_s2 + $0x48] sm:$0xff] }
  0x4d   : > { %3176 = vst [vmem:[#allocation9_spill] sm:$0xff] %v2629_v43 }
  0x4f   : > { %1993 = vrot.lane.b32.xlu0 %v1962_v16, %s2182_s11  ;;  %1998 = vrot.lane.b32.xlu1 %v1967_v24, %s2182_s11  ;;  %v2573_v16 = vsel %vm401_vm3, %v389_v15, %v390_v58  ;;  %v2007_v24 = vpack.i.bf16 %v2512_v47, %v2417_v23  ;;  %v2602_v15 = vsel %vm447_vm1, %v476_v12, 0.0  ;;  %v2017_v12 = vpack.i.bf16 %v404_v32, %v442_v22  ;;  %v1787_v22 = vld [vmem:[%s3147_s2 + $0x50] sm:$0xff] }
  0x50   : > { %1988 = vrot.lane.b32.xlu2 %v1987_v29, %s2183_s13  ;;  %v2002_v20 = vpack.i.bf16 %v2573_v16, %v2577_v61  ;;  %3174 = vst [vmem:[#allocation7_spill] sm:$0xff] %v2602_v15  ;;  %v2612_v26 = vpack.i.bf16 %v2602_v15, %v2598_v13  ;;  %v399_v58 = vrot.slane %v2506_v42, 7  ;;  %912 = vmatpush.bf16.msra.mxu0 %v1787_v22  ;;  %v2751_v13 = vld [vmem:[%s3147_s2 + $0x68] sm:$0xff] }
  0x51   : > { %1843 = vmatpush.bf16.msra.mxu3 %v1787_v22  ;;  %v3155_v22 = vrot.slane %v2299_v35, 1 }
  0x52   : > { %v403_v32 = vsel %vm401_vm3, %v398_v6, %v399_v58  ;;  %v402_v9 = vsel %vm401_vm3, %v399_v58, %v3154_v0  ;;  %v461_v6 = vrot.slane %v2519_v4, 1 }
  0x53   : > { %v444_v53 = vsel %vm379_vm4, %v403_v32, 0.0  ;;  %v2047_v32 = vpack.i.bf16 %v2549_v27, %v2504_v30  ;;  %v3179_v30 = vrot.slane %v2519_v4, 7 }
  0x54   : > { %913 = vmatpush.bf16.msra.mxu0 %v1786_v60  ;;  %v474_v58 = vsel %vm468_vm0, %v461_v6, %v3155_v22  ;;  %v1780_v22 = vld [vmem:[%s3147_s2 + $0x18] sm:$0xff] }
  0x55   : > { %1844 = vmatpush.bf16.msra.mxu3 %v1786_v60  ;;  %v1782_v60 = vld [vmem:[%s3147_s2 + $0x28] sm:$0xff]  ;;  %v2683_v0 = vsel %vm447_vm1, %v474_v58, 0.0 }
  0x56   : > { %3178 = vst [vmem:[#allocation11_spill] sm:$0xff] %v2683_v0  ;;  %1020 = vmatpush.bf16.msra.mxu1 %v1782_v60 }
  0x57   : > { %2008 = vrot.lane.b32.xlu0 %v2007_v24, %s2183_s13  ;;  %2013 = vrot.lane.b32.xlu1 %v2583_v63, %s2182_s11 }
  0x58   : > { %2003 = vrot.lane.b32.xlu2 %v2002_v20, %s2183_s13 }
  0x5f   : > { %2023 = vrot.lane.b32.xlu0 %v1987_v29, %s2182_s11  ;;  %2028 = vrot.lane.b32.xlu1 %v2612_v26, %s2183_s13  ;;  %v2042_v29 = vpack.i.bf16 %v2625_v52, %v2629_v43  ;;  %v2057_v43 = vpack.i.bf16 %v402_v9, %v444_v53  ;;  %v1784_v53 = vld [vmem:[%s3147_s2 + $0x38] sm:$0xff]  ;;  %v2679_v9 = vsel %vm468_vm0, %v460_v62, %v461_v6  ;;  %v1783_v6 = vld [vmem:[%s3147_s2 + $0x30] sm:$0xff] }
  0x60   : > { %2018 = vrot.lane.b32.xlu2 %v2017_v12, %s2183_s13  ;;  %3177 = vst [vmem:[#allocation10_spill] sm:$0xff] %v2679_v9  ;;  %v2067_v62 = vpack.i.bf16 %v2683_v0, %v2679_v9  ;;  %v1829_v9 = vunpack.c.l.bf16 %v2331_v48  ;;  %v3180_v0 = vrot.slane %v2299_v35, 1  ;;  %v1777_v48 = vld [vmem:[%s3147_s2] sm:$0xff] }
  0x67   : > { %2038 = vrot.lane.b32.xlu0 %v2007_v24, %s2182_s11  ;;  %2043 = vrot.lane.b32.xlu1 %v2042_v29, %s2183_s13  ;;  %v1785_v24 = vld [vmem:[%s3147_s2 + $0x40] sm:$0xff] }
  0x68   : > { %2033 = vrot.lane.b32.xlu2 %v2002_v20, %s2182_s11  ;;  %914 = vmatpush.bf16.msra.mxu0 %v1785_v24  ;;  %v2667_v20 = vld [vmem:[%s3147_s2 + $0x88] sm:$0xff] }
  0x69   : > { %1845 = vmatpush.bf16.msra.mxu3 %v1785_v24  ;;  %1296 = vmatpush.bf16.msra.mxu2 %v2667_v20  ;;  %v1781_v24 = vld [vmem:[%s3147_s2 + $0x20] sm:$0xff] }
  0x6a   : > { %1021 = vmatpush.bf16.msra.mxu1 %v1781_v24 }
  0x6c   : > { %915 = vmatpush.bf16.msra.mxu0 %v1784_v53 }
  0x6d   : > { %1846 = vmatpush.bf16.msra.mxu3 %v1784_v53  ;;  %v2707_v53 = vld [vmem:[%s3147_s2 + $0x78] sm:$0xff] }
  0x6e   : > { %1022 = vmatpush.bf16.msra.mxu1 %v1780_v22 }
  0x6f   : > { %2053 = vrot.lane.b32.xlu0 %v2017_v12, %s2182_s11  ;;  %2058 = vrot.lane.b32.xlu1 %v2057_v43, %s2183_s13  ;;  %v393_v43 = vrot.slane %v2551_v28, 7  ;;  %v2691_v12 = vld [vmem:[%s3147_s2 + $0x80] sm:$0xff] }
  0x70   : > { %2048 = vrot.lane.b32.xlu2 %v2047_v32, %s2183_s13  ;;  %1297 = vmatpush.bf16.msra.mxu2 %v2691_v12 }
  0x71   : > { %v409_v58 = vsel %vm401_vm3, %v392_v1, %v393_v43  ;;  %916 = vmatpush.bf16.msra.mxu0 %v1783_v6  ;;  %1847 = vmatpush.bf16.msra.mxu3 %v1783_v6  ;;  %v2718_v1 = vsel %vm401_vm3, %v393_v43, %v3179_v30  ;;  %v3160_v6 = vrot.slane %v2506_v42, 1  ;;  %v2732_v30 = vld [vmem:[%s3147_s2 + $0x70] sm:$0xff] }
  0x72   : > { %v2722_v27 = vsel %vm379_vm4, %v409_v58, 0.0  ;;  %v2087_v58 = vpack.i.bf16 %v2519_v4, %v2551_v28 }
  0x73   : > { %v2082_v43 = vpack.i.bf16 %v2718_v1, %v2722_v27 }
  0x74   : > { %1298 = vmatpush.bf16.msra.mxu2 %v2707_v53 }
  0x75   : > { %1848 = vmatpush.bf16.msrb.mxu3 %v1782_v60  ;;  %v463_v60 = vrot.slane %v2301_v36, 1 }
  0x77   : > { %2068 = vrot.lane.b32.xlu0 %v2067_v62, %s2183_s13  ;;  %2073 = vrot.lane.b32.xlu1 %v2042_v29, %s2182_s11  ;;  %v465_v29 = vrot.slane %v2338_v50, 1  ;;  %v1779_v50 = vld [vmem:[%s3147_s2 + $0x10] sm:$0xff]  ;;  %v2771_v23 = vsel %vm468_vm0, %v3180_v0, %v463_v60  ;;  %v343_v0 = vmul.f32 %v1829_v9, %v2261_v3 }
  0x78   : > { %2063 = vrot.lane.b32.xlu2 %v2612_v26, %s2182_s11  ;;  %v464_v26 = vrot.slane %v2336_v49, 1  ;;  %1299 = vmatpush.bf16.msra.mxu2 %v2732_v30 }
  0x79   : > { %1849 = vmatpush.bf16.msrb.mxu3 %v1781_v24  ;;  %v470_v52 = vsel %vm468_vm0, %v465_v29, %v3160_v6  ;;  %1023 = vmatpush.bf16.msra.mxu1 %v1779_v50  ;;  %v1778_v24 = vld [vmem:[%s3147_s2 + $0x8] sm:$0xff] }
  0x7a   : > { %v472_v49 = vsel %vm468_vm0, %v463_v60, %v464_v26  ;;  %v471_v6 = vsel %vm468_vm0, %v464_v26, %v465_v29  ;;  %v510_v15 = vsel %vm447_vm1, %v470_v52, 0.0  ;;  %v2780_v52 = vld [vmem:[%s3147_s2 + $0x60] sm:$0xff] }
  0x7b   : > { %v2775_v47 = vsel %vm447_vm1, %v472_v49, 0.0 }
  0x7c   : > { %1300 = vmatpush.bf16.msra.mxu2 %v2751_v13  ;;  %v2092_v29 = vpack.i.bf16 %v2775_v47, %v2771_v23 }
  0x7d   : > { %1850 = vmatpush.bf16.msrb.mxu3 %v1780_v22  ;;  %1024 = vmatpush.bf16.msra.mxu1 %v1778_v24  ;;  %v2097_v22 = vpack.i.bf16 %v510_v15, %v471_v6  ;;  %v345_v15 = vadd.f32 %v343_v0, %v2264_v5 }
  0x7f   : > { %2083 = vrot.lane.b32.xlu0 %v2082_v43, %s2183_s13  ;;  %2088 = vrot.lane.b32.xlu1 %v2087_v58, %s2183_s13  ;;  %v347_v60 = vmax.f32 %v345_v15, 0.0 }
  0x80   : > { %2078 = vrot.lane.b32.xlu2 %v2047_v32, %s2182_s11  ;;  %1301 = vmatpush.bf16.msra.mxu2 %v2780_v52 }
  0x81   : > { %1851 = vmatpush.bf16.msrb.mxu3 %v1779_v50  ;;  %1025 = vmatpush.bf16.msra.mxu1 %v1777_v48  ;;  %v352_v9 = vsel %vm2380_vm2, %v347_v60, 0.0 }
  0x82   : > { %v1909_v32 = vpop.permute.xlu2 %1908 }
  0x83   : > { %v1910_v26 = vunpack.i.l.bf16 %v1909_v32 }
  0x85   : > { %1852 = vmatpush.bf16.msrb.mxu3 %v1778_v24  ;;  %v467_v24 = vrot.slane %v2508_v44, 1 }
  0x87   : > { %2098 = vrot.lane.b32.xlu0 %v2097_v22, %s2183_s13  ;;  %2103 = vrot.lane.b32.xlu1 %v2067_v62, %s2182_s11  ;;  %v1911_v62 = vunpack.i.h.bf16 %v1909_v32 }
  0x88   : > { %2093 = vrot.lane.b32.xlu2 %v2092_v29, %s2182_s11 }
  0x89   : > { %1853 = vmatpush.bf16.msrb.mxu3 %v1777_v48 }
  0x8a   : > { %v2793_v6 = vpop.permute.xlu2 %1933 }
  0x8f   : > { %2113 = vrot.lane.b32.xlu0 %v2082_v43, %s2182_s11  ;;  %2118 = vrot.lane.b32.xlu1 %v2087_v58, %s2182_s11  ;;  %v448_v43 = vrot.slane %v352_v9, 1 }
  0x90   : > { %2108 = vrot.lane.b32.xlu2 %v2092_v29, %s2183_s13 }
  0x91   : > { %v1914_v3 = vpop.permute.xlu0 %1913  ;;  %v1904_v50 = vpop.permute.xlu1 %1903 }
  0x92   : > { %v1906_v5 = vunpack.i.h.bf16 %v1904_v50  ;;  %v1905_v49 = vunpack.i.l.bf16 %v1904_v50  ;;  %v2801_v48 = vpop.permute.xlu2 %1938  ;;  %v1916_v29 = vunpack.i.h.bf16 %v1914_v3  ;;  %v1915_v60 = vunpack.i.l.bf16 %v1914_v3 }
  0x93   : > { %v488_v50 = vsel %vm468_vm0, %v467_v24, %v448_v43 }
  0x94   : > { %v796_v58 = vsel %vm627_vm6, %v2403_v18, %v1906_v5  ;;  %v795_v0 = vsel %vm627_vm6, %v352_v9, %v1905_v49  ;;  %v381_v5 = vrot.slane %v352_v9, 7  ;;  %v807_v9 = vsel %vm627_vm6, %v2551_v28, %v1915_v60 }
  0x95   : > { %v811_v7 = vsel %vm644_vm7, %v795_v0, %v1910_v26  ;;  %v812_v15 = vsel %vm644_vm7, %v796_v58, %v1911_v62  ;;  %v449_v26 = vrot.slane %v2403_v18, 1  ;;  %v3181_v58 = vrot.slane %v2506_v42, 1 }
  0x96   : > { %v827_v32 = vpack.c.bf16 %v812_v15, %v811_v7  ;;  %v808_v7 = vsel %vm627_vm6, %v2519_v4, %v1916_v29  ;;  %v3182_v42 = vrot.slane %v2303_v37, 1 }
  0x97   : > { %2128 = vrot.lane.b32.xlu0 %v2320_v41, %s2183_s13  ;;  %2133 = vrot.lane.b32.xlu1 %v2097_v22, %s2182_s11  ;;  %v469_v41 = vsel %vm468_vm0, %v3181_v58, %v467_v24  ;;  %v512_v22 = vsel %vm447_vm1, %v488_v50, 0.0  ;;  %v3183_v50 = vrot.slane %v2508_v44, 7  ;;  %v487_v29 = vsel %vm468_vm0, %v448_v43, %v449_v26  ;;  %s1637_s11 = sshll.u32 %s3210_s29, 1  ;;  %s1640_s29 = sshll.u32 %s3206_s16, 1 }
  0x98   : > { %1686 = vmatmul.msk.bf16.vlgmr.msra.gmra.mxu0 %vm884_vm8, %v827_v32  ;;  %2123 = vrot.lane.b32.xlu2 %v2583_v63, %s2183_s13  ;;  %v486_v24 = vsel %vm468_vm0, %v449_v26, %v3182_v42  ;;  %v2137_v58 = vpack.i.bf16 %v512_v22, %v469_v41  ;;  %v3184_v41 = vrot.slane %v2403_v18, 7  ;;  %v1935_v18 = vunpack.i.l.bf16 %v2793_v6  ;;  %s241_s8 = sadd.s32 %s1640_s29, %s3212_s15 }
  0x99   : > { %v1919_v49 = vpop.permute.xlu1 %1918  ;;  %v1924_v0 = vpop.permute.xlu0 %1923  ;;  %v421_v28 = vsel %vm401_vm3, %v3183_v50, %v381_v5  ;;  %s1641_s9 = sshll.u32 %s241_s8, 1 }
  0x9a   : > { %v1921_v62 = vunpack.i.h.bf16 %v1919_v49  ;;  %v1920_v3 = vunpack.i.l.bf16 %v1919_v49  ;;  %v2827_v15 = vpop.permute.xlu2 %1958  ;;  %v1926_v60 = vunpack.i.h.bf16 %v1924_v0  ;;  %v1925_v4 = vunpack.i.l.bf16 %v1924_v0  ;;  %s243_s14 = scalar_lea.vmem %s3149_s4, %s1641_s9 }
  0x9b   : > { %v420_v44 = vsel %vm401_vm3, %v381_v5, %v3184_v41  ;;  %v426_v22 = vsel %vm379_vm4, %v421_v28, 0.0 }
  0x9c   : > { %v823_v63 = vsel %vm644_vm7, %v807_v9, %v1920_v3  ;;  %v824_v32 = vsel %vm644_vm7, %v808_v7, %v1921_v62  ;;  %v494_v62 = vsel %vm447_vm1, %v486_v24, 0.0 }
  0x9d   : > { %v833_v49 = vpack.c.bf16 %v824_v32, %v823_v63  ;;  %v1182_v8 = vsel %vm627_vm6, %v494_v62, %v1926_v60  ;;  %v1936_v63 = vunpack.i.h.bf16 %v2793_v6 }
  0x9f   : > { %1692 = vmatmul.msk.bf16.vlgmr.msra.gmra.mxu3 %vm884_vm8, %v833_v49 }
  0xa0   : > { %1854 = vmatpush.bf16.msra.mxu3 %v2667_v20  ;;  %2138 = vrot.lane.b32.xlu2 %v2137_v58, %s2183_s13  ;;  %v1181_v20 = vsel %vm627_vm6, %v487_v29, %v1925_v4  ;;  %v1941_v29 = vunpack.i.h.bf16 %v2801_v48  ;;  %s1638_s13 = sshll.u32 %s3206_s16, 5 }
  0xa1   : > { %v1929_v3 = vpop.permute.xlu0 %1928  ;;  %v1949_v0 = vpop.permute.xlu1 %1948  ;;  %s232_s28 = sadd.s32 %s1638_s13, %s1637_s11 }
  0xa2   : > { %v1931_v9 = vunpack.i.h.bf16 %v1929_v3  ;;  %v1930_v7 = vunpack.i.l.bf16 %v1929_v3  ;;  %v1951_v43 = vunpack.i.h.bf16 %v1949_v0  ;;  %v1950_v26 = vunpack.i.l.bf16 %v1949_v0  ;;  %v1974_v32 = vpop.permute.xlu2 %1973  ;;  %s1639_s30 = sshll.u32 %s232_s28, 2 }
  0xa3   : > { %v1960_v0 = vunpack.i.l.bf16 %v2827_v15  ;;  %s3023_s7 = scalar_lea.vmem %s3148_s3, %s1639_s30 }
  0xa4   : > { %v629_v5 = vsel %vm627_vm6, %v420_v44, %v1951_v43  ;;  %v628_v2 = vsel %vm627_vm6, %v426_v22, %v1950_v26  ;;  %v1197_v42 = vsel %vm644_vm7, %v1181_v20, %v1930_v7  ;;  %v1198_v24 = vsel %vm644_vm7, %v1182_v8, %v1931_v9  ;;  %1855 = vmatpush.bf16.msra.mxu3 %v2691_v12 }
  0xa5   : > { %v1213_v49 = vpack.c.bf16 %v1198_v24, %v1197_v42  ;;  %v645_v58 = vsel %vm644_vm7, %v628_v2, %v1935_v18  ;;  %v646_v50 = vsel %vm644_vm7, %v629_v5, %v1936_v63  ;;  %v1940_v12 = vunpack.i.l.bf16 %v2801_v48 }
  0xa6   : > { %v661_v28 = vpack.c.bf16 %v646_v50, %v645_v58  ;;  %v1961_v22 = vunpack.i.h.bf16 %v2827_v15  ;;  %v1976_v58 = vunpack.i.h.bf16 %v1974_v32  ;;  %v1975_v50 = vunpack.i.l.bf16 %v1974_v32 }
  0xa7   : > { %1762 = vmatmul.msk.bf16.vlgmr.msra.gmra.mxu2 %vm884_vm8, %v1213_v49  ;;  %v1183_v9 = vsel %vm627_vm6, %v2351_v54, %v1940_v12 }
  0xa8   : > { %1718 = vmatmul.msk.bf16.vlgmr.msra.gmra.mxu1 %vm884_vm8, %v661_v28  ;;  %1856 = vmatpush.bf16.msra.mxu3 %v2707_v53  ;;  %v1184_v53 = vsel %vm627_vm6, %v2359_v57, %v1941_v29  ;;  %v798_v54 = vsel %vm627_vm6, %v2305_v38, %v1961_v22 }
  0xa9   : > { %v1944_v6 = vpop.permute.xlu0 %1943  ;;  %v1954_v60 = vpop.permute.xlu1 %1953 }
  0xaa   : > { %v2866_v4 = vpop.permute.xlu2 %1988  ;;  %v1946_v62 = vunpack.i.h.bf16 %v1944_v6  ;;  %v1945_v3 = vunpack.i.l.bf16 %v1944_v6  ;;  %v1956_v41 = vunpack.i.h.bf16 %v1954_v60  ;;  %v1955_v44 = vunpack.i.l.bf16 %v1954_v60 }
  0xab   : > { %v810_v60 = vsel %vm627_vm6, %v2301_v36, %v1976_v58  ;;  %v1990_v22 = vunpack.i.l.bf16 %v2866_v4 }
  0xac   : > { %1857 = vmatpush.bf16.msra.mxu3 %v2732_v30  ;;  %v1199_v30 = vsel %vm644_vm7, %v1183_v9, %v1945_v3  ;;  %v1200_v43 = vsel %vm644_vm7, %v1184_v53, %v1946_v62  ;;  %v631_v15 = vsel %vm627_vm6, %v2422_v25, %v1956_v41  ;;  %v630_v57 = vsel %vm627_vm6, %v2439_v31, %v1955_v44 }
  0xad   : > { %v1214_v49 = vpack.c.bf16 %v1200_v43, %v1199_v30  ;;  %v1991_v44 = vunpack.i.h.bf16 %v2866_v4 }
  0xb0   : > { %1858 = vmatpush.bf16.msra.mxu3 %v2751_v13  ;;  %v797_v13 = vsel %vm627_vm6, %v2303_v37, %v1960_v0 }
  0xb1   : > { %v1964_v7 = vpop.permute.xlu0 %1963  ;;  %v1969_v48 = vpop.permute.xlu1 %1968 }
  0xb2   : > { %v1966_v26 = vunpack.i.h.bf16 %v1964_v7  ;;  %v1965_v8 = vunpack.i.l.bf16 %v1964_v7  ;;  %v1971_v20 = vunpack.i.h.bf16 %v1969_v48  ;;  %v1970_v63 = vunpack.i.l.bf16 %v1969_v48  ;;  %v2004_v18 = vpop.permute.xlu2 %2003 }
  0xb3   : > { %v2006_v9 = vunpack.i.h.bf16 %v2004_v18  ;;  %v2005_v7 = vunpack.i.l.bf16 %v2004_v18 }
  0xb4   : > { %v813_v5 = vsel %vm644_vm7, %v797_v13, %v1970_v63  ;;  %v814_v2 = vsel %vm644_vm7, %v798_v54, %v1971_v20  ;;  %v647_v42 = vsel %vm644_vm7, %v630_v57, %v1965_v8  ;;  %v648_v24 = vsel %vm644_vm7, %v631_v15, %v1966_v26  ;;  %1859 = vmatpush.bf16.msra.mxu3 %v2780_v52 }
  0xb5   : > { %v828_v25 = vpack.c.bf16 %v814_v2, %v813_v5  ;;  %v662_v31 = vpack.c.bf16 %v648_v24, %v647_v42  ;;  %v809_v52 = vsel %vm627_vm6, %v2299_v35, %v1975_v50 }
  0xb7   : > { %1687 = vmatmul.msk.bf16.gmra.mxu0 %vm884_vm8, %v828_v25  ;;  %1763 = vmatmul.msk.bf16.gmra.mxu2 %vm884_vm8, %v1214_v49 }
  0xb8   : > { %1719 = vmatmul.msk.bf16.gmra.mxu1 %vm884_vm8, %v662_v31 }
  0xb9   : > { %v1979_v37 = vpop.permute.xlu0 %1978  ;;  %v1984_v38 = vpop.permute.xlu1 %1983 }
  0xba   : > { %v1981_v28 = vunpack.i.h.bf16 %v1979_v37  ;;  %v1980_v6 = vunpack.i.l.bf16 %v1979_v37  ;;  %v1986_v29 = vunpack.i.h.bf16 %v1984_v38  ;;  %v1985_v12 = vunpack.i.l.bf16 %v1984_v38  ;;  %v2019_v62 = vpop.permute.xlu2 %2018 }
  0xbb   : > { %v2021_v5 = vunpack.i.h.bf16 %v2019_v62  ;;  %v2020_v2 = vunpack.i.l.bf16 %v2019_v62 }
  0xbc   : > { %v825_v32 = vsel %vm644_vm7, %v809_v52, %v1980_v6  ;;  %v826_v3 = vsel %vm644_vm7, %v810_v60, %v1981_v28  ;;  %v1186_v0 = vsel %vm627_vm6, %v2414_v21, %v1986_v29  ;;  %v1185_v36 = vsel %vm627_vm6, %v2399_v17, %v1985_v12 }
  0xbd   : > { %v834_v41 = vpack.c.bf16 %v826_v3, %v825_v32  ;;  %v1201_v43 = vsel %vm644_vm7, %v1185_v36, %v1990_v22  ;;  %v1202_v26 = vsel %vm644_vm7, %v1186_v0, %v1991_v44 }
  0xbe   : > { %v1215_v17 = vpack.c.bf16 %v1202_v26, %v1201_v43 }
  0xbf   : > { %1693 = vmatmul.msk.bf16.gmra.mxu3 %vm884_vm8, %v834_v41 }
  0xc1   : > { %v1994_v35 = vpop.permute.xlu0 %1993  ;;  %v1999_v53 = vpop.permute.xlu1 %1998 }
  0xc2   : > { %v1996_v48 = vunpack.i.h.bf16 %v1994_v35  ;;  %v1995_v30 = vunpack.i.l.bf16 %v1994_v35  ;;  %v2034_v8 = vpop.permute.xlu2 %2033  ;;  %v2001_v57 = vunpack.i.h.bf16 %v1999_v53  ;;  %v2000_v54 = vunpack.i.l.bf16 %v1999_v53 }
  0xc3   : > { %v2036_v0 = vunpack.i.h.bf16 %v2034_v8  ;;  %v2035_v36 = vunpack.i.l.bf16 %v2034_v8 }
  0xc4   : > { %v633_v4 = vsel %vm627_vm6, %v2445_v33, %v1996_v48  ;;  %v632_v21 = vsel %vm627_vm6, %v2449_v34, %v1995_v30  ;;  %v800_v25 = vsel %vm627_vm6, %v2353_v55, %v2001_v57  ;;  %v799_v49 = vsel %vm627_vm6, %v2311_v39, %v2000_v54 }
  0xc5   : > { %v649_v20 = vsel %vm644_vm7, %v632_v21, %v2005_v7  ;;  %v650_v63 = vsel %vm644_vm7, %v633_v4, %v2006_v9  ;;  %v634_v26 = vsel %vm627_vm6, %v2489_v11, %v2035_v36 }
  0xc6   : > { %v663_v15 = vpack.c.bf16 %v650_v63, %v649_v20 }
  0xc7   : > { %1764 = vmatmul.msk.bf16.gmra.mxu2 %vm884_vm8, %v1215_v17 }
  0xc8   : > { %1720 = vmatmul.msk.bf16.gmra.mxu1 %vm884_vm8, %v663_v15 }
  0xc9   : > { %v2009_v13 = vpop.permute.xlu0 %2008  ;;  %v2014_v18 = vpop.permute.xlu1 %2013 }
  0xca   : > { %v2011_v33 = vunpack.i.h.bf16 %v2009_v13  ;;  %v2010_v42 = vunpack.i.l.bf16 %v2009_v13  ;;  %v2016_v24 = vunpack.i.h.bf16 %v2014_v18  ;;  %v2015_v34 = vunpack.i.l.bf16 %v2014_v18  ;;  %v2049_v31 = vpop.permute.xlu2 %2048 }
  0xcb   : > { %v2051_v9 = vunpack.i.h.bf16 %v2049_v31  ;;  %v2050_v7 = vunpack.i.l.bf16 %v2049_v31 }
  0xcc   : > { %v641_v58 = vsel %vm627_vm6, %v2718_v1, %v2016_v24  ;;  %v640_v50 = vsel %vm627_vm6, %v2722_v27, %v2015_v34  ;;  %v815_v37 = vsel %vm644_vm7, %v799_v49, %v2010_v42  ;;  %v816_v38 = vsel %vm644_vm7, %v800_v25, %v2011_v33 }
  0xcd   : > { %v657_v28 = vsel %vm644_vm7, %v640_v50, %v2020_v2  ;;  %v658_v6 = vsel %vm644_vm7, %v641_v58, %v2021_v5  ;;  %v829_v60 = vpack.c.bf16 %v816_v38, %v815_v37 }
  0xce   : > { %v667_v55 = vpack.c.bf16 %v658_v6, %v657_v28 }
  0xcf   : > { %1688 = vmatmul.msk.bf16.gmra.mxu0 %vm884_vm8, %v829_v60 }
  0xd0   : > { %1724 = vmatmul.msk.bf16.vlgmr.msrb.gmra.mxu3 %vm884_vm8, %v667_v55 }
  0xd1   : > { %v2024_v39 = vpop.permute.xlu0 %2023  ;;  %v2029_v52 = vpop.permute.xlu1 %2028 }
  0xd2   : > { %v2026_v1 = vunpack.i.h.bf16 %v2024_v39  ;;  %v2025_v29 = vunpack.i.l.bf16 %v2024_v39  ;;  %v2031_v12 = vunpack.i.h.bf16 %v2029_v52  ;;  %v2030_v27 = vunpack.i.l.bf16 %v2029_v52  ;;  %v2064_v3 = vpop.permute.xlu2 %2063 }
  0xd3   : > { %v2066_v34 = vunpack.i.h.bf16 %v2064_v3  ;;  %v2065_v25 = vunpack.i.l.bf16 %v2064_v3 }
  0xd4   : > { %v1188_v62 = vsel %vm627_vm6, %v2465_v46, %v2026_v1  ;;  %v1187_v32 = vsel %vm627_vm6, %v2461_v45, %v2025_v29  ;;  %v635_v45 = vsel %vm627_vm6, %v2485_v10, %v2036_v0 }
  0xd5   : > { %v1203_v41 = vsel %vm644_vm7, %v1187_v32, %v2030_v27  ;;  %v1204_v44 = vsel %vm644_vm7, %v1188_v62, %v2031_v12 }
  0xd6   : > { %v1216_v22 = vpack.c.bf16 %v1204_v44, %v1203_v41  ;;  %v3185_v41 = vld [vmem:[#allocation4_spill] sm:$0xff] }
  0xd8   : > { %1765 = vmatmul.msk.bf16.gmra.mxu2 %vm884_vm8, %v1216_v22  ;;  %v3186_v22 = vld [vmem:[#allocation2_spill] sm:$0xff] }
  0xd9   : > { %v2039_v35 = vpop.permute.xlu0 %2038  ;;  %v2044_v53 = vpop.permute.xlu1 %2043 }
  0xda   : > { %v2041_v48 = vunpack.i.h.bf16 %v2039_v35  ;;  %v2040_v30 = vunpack.i.l.bf16 %v2039_v35  ;;  %v2046_v46 = vunpack.i.h.bf16 %v2044_v53  ;;  %v2045_v43 = vunpack.i.l.bf16 %v2044_v53  ;;  %v2079_v10 = vpop.permute.xlu2 %2078 }
  0xdb   : > { %v2081_v39 = vunpack.i.h.bf16 %v2079_v10  ;;  %v2080_v52 = vunpack.i.l.bf16 %v2079_v10 }
  0xdc   : > { %v802_v4 = vsel %vm627_vm6, %v2405_v19, %v2041_v48  ;;  %v801_v8 = vsel %vm627_vm6, %v2355_v56, %v2040_v30  ;;  %v651_v21 = vsel %vm644_vm7, %v634_v26, %v2045_v43  ;;  %v652_v17 = vsel %vm644_vm7, %v635_v45, %v2046_v46 }
  0xdd   : > { %v664_v20 = vpack.c.bf16 %v652_v17, %v651_v21  ;;  %v817_v63 = vsel %vm644_vm7, %v801_v8, %v2050_v7  ;;  %v818_v15 = vsel %vm644_vm7, %v802_v4, %v2051_v9  ;;  %v804_v44 = vsel %vm627_vm6, %v3185_v41, %v2081_v39  ;;  %v3187_v17 = vld [vmem:[#allocation11_spill] sm:$0xff] }
  0xde   : > { %v830_v57 = vpack.c.bf16 %v818_v15, %v817_v63  ;;  %v803_v0 = vsel %vm627_vm6, %v3186_v22, %v2080_v52  ;;  %v3188_v63 = vld [vmem:[#allocation10_spill] sm:$0xff] }
  0xdf   : > { %1721 = vmatmul.msk.bf16.gmra.mxu1 %vm884_vm8, %v664_v20 }
  0xe0   : > { %1689 = vmatmul.msk.bf16.gmra.mxu0 %vm884_vm8, %v830_v57 }
  0xe1   : > { %v2054_v11 = vpop.permute.xlu0 %2053  ;;  %v2059_v19 = vpop.permute.xlu1 %2058 }
  0xe2   : > { %v2056_v54 = vunpack.i.h.bf16 %v2054_v11  ;;  %v2055_v13 = vunpack.i.l.bf16 %v2054_v11  ;;  %v2061_v56 = vunpack.i.h.bf16 %v2059_v19  ;;  %v2060_v18 = vunpack.i.l.bf16 %v2059_v19  ;;  %v2094_v49 = vpop.permute.xlu2 %2093  ;;  %v3189_v11 = vld [vmem:[#allocation7_spill] sm:$0xff] }
  0xe3   : > { %v2095_v30 = vunpack.i.l.bf16 %v2094_v49 }
  0xe4   : > { %v643_v5 = vsel %vm627_vm6, %v2561_v40, %v2056_v54  ;;  %v642_v2 = vsel %vm627_vm6, %v2565_v51, %v2055_v13  ;;  %v1190_v40 = vsel %vm627_vm6, %v2541_v59, %v2066_v34  ;;  %v1189_v51 = vsel %vm627_vm6, %v2537_v14, %v2065_v25  ;;  %v3190_v54 = vld [vmem:[#allocation6_spill] sm:$0xff] }
  0xe5   : > { %v659_v33 = vsel %vm644_vm7, %v642_v2, %v2060_v18  ;;  %v660_v42 = vsel %vm644_vm7, %v643_v5, %v2061_v56  ;;  %v1193_v15 = vsel %vm627_vm6, %v3188_v63, %v2095_v30 }
  0xe6   : > { %v668_v24 = vpack.c.bf16 %v660_v42, %v659_v33 }
  0xe8   : > { %1725 = vmatmul.msk.bf16.gmra.mxu3 %vm884_vm8, %v668_v24 }
  0xe9   : > { %v2069_v31 = vpop.permute.xlu0 %2068  ;;  %v2074_v58 = vpop.permute.xlu1 %2073 }
  0xea   : > { %v2071_v50 = vunpack.i.h.bf16 %v2069_v31  ;;  %v2070_v37 = vunpack.i.l.bf16 %v2069_v31  ;;  %v2076_v60 = vunpack.i.h.bf16 %v2074_v58  ;;  %v2075_v55 = vunpack.i.l.bf16 %v2074_v58  ;;  %v2109_v32 = vpop.permute.xlu2 %2108  ;;  %v3191_v58 = vld [vmem:[#allocation8_spill] sm:$0xff] }
  0xeb   : > { %v2111_v43 = vunpack.i.h.bf16 %v2109_v32  ;;  %v2110_v45 = vunpack.i.l.bf16 %v2109_v32  ;;  %v3193_v32 = vld [vmem:[#allocation5_spill] sm:$0xff] }
  0xec   : > { %v1205_v38 = vsel %vm644_vm7, %v1189_v51, %v2070_v37  ;;  %v1206_v28 = vsel %vm644_vm7, %v1190_v40, %v2071_v50  ;;  %v637_v14 = vsel %vm627_vm6, %v2573_v16, %v2076_v60  ;;  %v636_v3 = vsel %vm627_vm6, %v2577_v61, %v2075_v55  ;;  %v3192_v37 = vld [vmem:[#allocation9_spill] sm:$0xff] }
  0xed   : > { %v1217_v6 = vpack.c.bf16 %v1206_v28, %v1205_v38  ;;  %v2096_v16 = vunpack.i.h.bf16 %v2094_v49 }
  0xef   : > { %1766 = vmatmul.msk.bf16.gmra.mxu2 %vm884_vm8, %v1217_v6  ;;  %v1194_v20 = vsel %vm627_vm6, %v3187_v17, %v2096_v16 }
  0xf1   : > { %v2084_v1 = vpop.permute.xlu0 %2083  ;;  %v2089_v29 = vpop.permute.xlu1 %2088 }
  0xf2   : > { %v2086_v12 = vunpack.i.h.bf16 %v2084_v1  ;;  %v2085_v27 = vunpack.i.l.bf16 %v2084_v1  ;;  %v2091_v62 = vunpack.i.h.bf16 %v2089_v29  ;;  %v2090_v59 = vunpack.i.l.bf16 %v2089_v29  ;;  %v2124_v56 = vpop.permute.xlu2 %2123 }
  0xf3   : > { %v2126_v34 = vunpack.i.h.bf16 %v2124_v56  ;;  %v2125_v25 = vunpack.i.l.bf16 %v2124_v56 }
  0xf4   : > { %v819_v36 = vsel %vm644_vm7, %v803_v0, %v2090_v59  ;;  %v820_v35 = vsel %vm644_vm7, %v804_v44, %v2091_v62  ;;  %v653_v53 = vsel %vm644_vm7, %v636_v3, %v2085_v27  ;;  %v654_v9 = vsel %vm644_vm7, %v637_v14, %v2086_v12  ;;  %v3194_v3 = vld [vmem:[#allocation3_spill] sm:$0xff] }
  0xf5   : > { %v831_v7 = vpack.c.bf16 %v820_v35, %v819_v36  ;;  %v665_v48 = vpack.c.bf16 %v654_v9, %v653_v53 }
  0xf7   : > { %1690 = vmatmul.msk.bf16.gmra.mxu0 %vm884_vm8, %v831_v7  ;;  %1722 = vmatmul.msk.bf16.gmra.mxu1 %vm884_vm8, %v665_v48 }
  0xf9   : > { %v2099_v61 = vpop.permute.xlu0 %2098  ;;  %v2104_v46 = vpop.permute.xlu1 %2103 }
  0xfa   : > { %v2101_v26 = vunpack.i.h.bf16 %v2099_v61  ;;  %v2100_v4 = vunpack.i.l.bf16 %v2099_v61  ;;  %v2106_v8 = vunpack.i.h.bf16 %v2104_v46  ;;  %v2105_v21 = vunpack.i.l.bf16 %v2104_v46  ;;  %v2139_v6 = vpop.permute.xlu2 %2138 }
  0xfb   : > { %v2141_v1 = vunpack.i.h.bf16 %v2139_v6  ;;  %v2140_v29 = vunpack.i.l.bf16 %v2139_v6 }
  0xfc   : > { %v1210_v57 = vsel %vm644_vm7, %v1194_v20, %v2101_v26  ;;  %v1209_v10 = vsel %vm644_vm7, %v1193_v15, %v2100_v4  ;;  %v1192_v19 = vsel %vm627_vm6, %v3189_v11, %v2106_v8  ;;  %v1191_v13 = vsel %vm627_vm6, %v3190_v54, %v2105_v21 }
  0xfd   : > { %v1219_v18 = vpack.c.bf16 %v1210_v57, %v1209_v10  ;;  %v1207_v5 = vsel %vm644_vm7, %v1191_v13, %v2110_v45  ;;  %v1208_v2 = vsel %vm644_vm7, %v1192_v19, %v2111_v43 }
  0xfe   : > { %v1218_v33 = vpack.c.bf16 %v1208_v2, %v1207_v5 }
  0xff   : > { %1768 = vmatmul.msk.bf16.vlgmr.msra.gmra.mxu3 %vm884_vm8, %v1219_v18 }
 0x100   : > { %1767 = vmatmul.msk.bf16.gmra.mxu2 %vm884_vm8, %v1218_v33 }
 0x101   : > { %v2114_v42 = vpop.permute.xlu0 %2113  ;;  %v2119_v24 = vpop.permute.xlu1 %2118 }
 0x102   : > { %v2116_v49 = vunpack.i.h.bf16 %v2114_v42  ;;  %v2115_v31 = vunpack.i.l.bf16 %v2114_v42  ;;  %v2121_v60 = vunpack.i.h.bf16 %v2119_v24  ;;  %v2120_v55 = vunpack.i.l.bf16 %v2119_v24 }
 0x104   : > { %v639_v50 = vsel %vm627_vm6, %v3191_v58, %v2116_v49  ;;  %v638_v40 = vsel %vm627_vm6, %v3192_v37, %v2115_v31  ;;  %v806_v14 = vsel %vm627_vm6, %v3193_v32, %v2121_v60  ;;  %v805_v41 = vsel %vm627_vm6, %v3194_v3, %v2120_v55 }
 0x105   : > { %v655_v51 = vsel %vm644_vm7, %v638_v40, %v2125_v25  ;;  %v656_v38 = vsel %vm644_vm7, %v639_v50, %v2126_v34 }
 0x106   : > { %v666_v28 = vpack.c.bf16 %v656_v38, %v655_v51 }
 0x108   : > { %1723 = vmatmul.msk.bf16.gmra.mxu1 %vm884_vm8, %v666_v28 }
 0x109   : > { %v2129_v39 = vpop.permute.xlu0 %2128  ;;  %v2134_v52 = vpop.permute.xlu1 %2133 }
 0x10a   : > { %v2131_v12 = vunpack.i.h.bf16 %v2129_v39  ;;  %v2130_v27 = vunpack.i.l.bf16 %v2129_v39  ;;  %v2136_v62 = vunpack.i.h.bf16 %v2134_v52  ;;  %v2135_v59 = vunpack.i.l.bf16 %v2134_v52 }
 0x10c   : > { %v1196_v44 = vsel %vm627_vm6, %v2775_v47, %v2136_v62  ;;  %v1195_v22 = vsel %vm627_vm6, %v2771_v23, %v2135_v59  ;;  %v821_v0 = vsel %vm644_vm7, %v805_v41, %v2130_v27  ;;  %v822_v36 = vsel %vm644_vm7, %v806_v14, %v2131_v12 }
 0x10d   : > { %v832_v35 = vpack.c.bf16 %v822_v36, %v821_v0  ;;  %v1211_v53 = vsel %vm644_vm7, %v1195_v22, %v2140_v29  ;;  %v1212_v9 = vsel %vm644_vm7, %v1196_v44, %v2141_v1 }
 0x10e   : > { %v1220_v7 = vpack.c.bf16 %v1212_v9, %v1211_v53 }
 0x10f   : > { %1691 = vmatmul.msk.bf16.gmra.mxu0 %vm884_vm8, %v832_v35 }
 0x110   : > { %1769 = vmatmul.msk.bf16.gmra.mxu3 %vm884_vm8, %v1220_v7 }
 0x115   : > { %v918_v47 = vpop.f32.mrf.mxu0 }
 0x11d   : > { %v920_v61 = vpop.f32.mrf.mxu0 }
 0x122   : > { %v3029_v11 = vpop.f32.mrf.mxu3 }
 0x125   : > { %v1027_v23 = vpop.f32.mrf.mxu1 }
 0x126   : > { %v1028_v48 = vadd.f32 %v1027_v23, %v918_v47 }
 0x12a   : > { %v1303_v16 = vpop.f32.mrf.mxu2  ;;  %v3039_v58 = vpop.f32.mrf.mxu3 }
 0x12b   : > { %v1343_v30 = vadd.f32 %v1303_v16, %v1028_v48 }
 0x12d   : > { %v1453_v46 = vpack.c.bf16 %v1343_v30, %v1343_v30  ;;  %v1029_v43 = vpop.f32.mrf.mxu1  ;;  %v1396_v4 = vmul.f32 %v1343_v30, %v1343_v30  ;;  %v1359_v17 = vsel %vm627_vm6, %v1343_v30, 0.0 }
 0x12e   : > { %v1030_v45 = vadd.f32 %v1029_v43, %v920_v61 }
 0x12f   : > { %1470 = vst.msk [vmem:[%s3023_s7] sm:$0xf] %vm1469_vm9, %v1453_v46  ;;  %v1412_v19 = vsel %vm627_vm6, %v1396_v4, 0.0 }
 0x132   : > { %v1305_v26 = vpop.f32.mrf.mxu2 }
 0x133   : > { %v1344_v8 = vadd.f32 %v1305_v26, %v1030_v45 }
 0x134   : > { %v923_v21 = vpop.f32.mrf.mxu0 }
 0x135   : > { %v1360_v20 = vsel %vm627_vm6, %v1344_v8, 0.0  ;;  %v1397_v63 = vmul.f32 %v1344_v8, %v1344_v8  ;;  %v1454_v15 = vpack.c.bf16 %v1344_v8, %v1344_v8  ;;  %v1032_v57 = vpop.f32.mrf.mxu1 }
 0x136   : > { %v1361_v10 = vadd.f32 %v1360_v20, %v1359_v17  ;;  %v1033_v56 = vadd.f32 %v1032_v57, %v923_v21 }
 0x137   : > { %v1413_v54 = vsel %vm627_vm6, %v1397_v63, 0.0  ;;  %1471 = vst.msk [vmem:[%s3023_s7 + $0x4] sm:$0xf] %vm1469_vm9, %v1454_v15 }
 0x138   : > { %v1414_v13 = vadd.f32 %v1413_v54, %v1412_v19 }
 0x13a   : > { %v1308_v18 = vpop.f32.mrf.mxu2 }
 0x13b   : > { %v1345_v5 = vadd.f32 %v1308_v18, %v1033_v56 }
 0x13c   : > { %v925_v34 = vpop.f32.mrf.mxu0 }
 0x13d   : > { %v1362_v2 = vsel %vm627_vm6, %v1345_v5, 0.0  ;;  %v1398_v33 = vmul.f32 %v1345_v5, %v1345_v5  ;;  %v1455_v42 = vpack.c.bf16 %v1345_v5, %v1345_v5  ;;  %v1034_v25 = vpop.f32.mrf.mxu1 }
 0x13e   : > { %v1363_v24 = vadd.f32 %v1362_v2, %v1361_v10  ;;  %v1035_v50 = vadd.f32 %v1034_v25, %v925_v34 }
 0x13f   : > { %v1415_v49 = vsel %vm627_vm6, %v1398_v33, 0.0  ;;  %1472 = vst.msk [vmem:[%s3023_s7 + $0x8] sm:$0xf] %vm1469_vm9, %v1455_v42 }
 0x140   : > { %v1416_v31 = vadd.f32 %v1415_v49, %v1414_v13 }
 0x142   : > { %v1310_v37 = vpop.f32.mrf.mxu2  ;;  %v3049_v39 = vpop.f32.mrf.mxu3 }
 0x143   : > { %v1346_v40 = vadd.f32 %v1310_v37, %v1035_v50 }
 0x145   : > { %v1364_v51 = vsel %vm627_vm6, %v1346_v40, 0.0  ;;  %v1399_v38 = vmul.f32 %v1346_v40, %v1346_v40  ;;  %v1456_v28 = vpack.c.bf16 %v1346_v40, %v1346_v40  ;;  %v1037_v52 = vpop.f32.mrf.mxu1 }
 0x146   : > { %v3042_v6 = vadd.f32 %v1364_v51, %v1363_v24 }
 0x147   : > { %v1417_v60 = vsel %vm627_vm6, %v1399_v38, 0.0  ;;  %1473 = vst.msk [vmem:[%s3023_s7 + $0xc] sm:$0xf] %vm1469_vm9, %v1456_v28 }
 0x148   : > { %v3047_v55 = vadd.f32 %v1417_v60, %v1416_v31 }
 0x14a   : > { %v1313_v1 = vpop.f32.mrf.mxu2  ;;  %v3051_v59 = vpop.f32.mrf.mxu3 }
 0x14c   : > { %v928_v29 = vpop.f32.mrf.mxu0 }
 0x14d   : > { %v1038_v12 = vadd.f32 %v1037_v52, %v928_v29  ;;  %v1039_v14 = vpop.f32.mrf.mxu1 }
 0x14f   : > { %v1347_v27 = vadd.f32 %v1313_v1, %v1038_v12 }
 0x151   : > { %v1457_v62 = vpack.c.bf16 %v1347_v27, %v1347_v27  ;;  %v1400_v33 = vmul.f32 %v1347_v27, %v1347_v27  ;;  %v1366_v24 = vsel %vm627_vm6, %v1347_v27, 0.0 }
 0x152   : > { %v1315_v32 = vpop.f32.mrf.mxu2  ;;  %v1367_v40 = vadd.f32 %v1366_v24, %v3042_v6 }
 0x153   : > { %1474 = vst.msk [vmem:[%s3023_s7 + $0x10] sm:$0xf] %vm1469_vm9, %v1457_v62  ;;  %v1057_v53 = vpop.f32.mrf.mxu3 }
 0x154   : > { %v930_v3 = vpop.f32.mrf.mxu0  ;;  %v1058_v13 = vadd.f32 %v1057_v53, %v3029_v11  ;;  %v1419_v11 = vsel %vm627_vm6, %v1400_v33, 0.0 }
 0x155   : > { %v1040_v41 = vadd.f32 %v1039_v14, %v930_v3  ;;  %v1420_v29 = vadd.f32 %v1419_v11, %v3047_v55 }
 0x157   : > { %v1348_v44 = vadd.f32 %v1315_v32, %v1040_v41 }
 0x159   : > { %v1458_v22 = vpack.c.bf16 %v1348_v44, %v1348_v44  ;;  %v1401_v42 = vmul.f32 %v1348_v44, %v1348_v44  ;;  %v1368_v31 = vsel %vm627_vm6, %v1348_v44, 0.0 }
 0x15a   : > { %v1369_v12 = vadd.f32 %v1368_v31, %v1367_v40 }
 0x15b   : > { %1475 = vst.msk [vmem:[%s3023_s7 + $0x14] sm:$0xf] %vm1469_vm9, %v1458_v22  ;;  %v1318_v36 = vpop.f32.mrf.mxu2  ;;  %v1059_v61 = vpop.f32.mrf.mxu3  ;;  %v1421_v51 = vsel %vm627_vm6, %v1401_v42, 0.0 }
 0x15c   : > { %v1042_v0 = vpop.f32.mrf.mxu1  ;;  %v1060_v34 = vadd.f32 %v1059_v61, %v3039_v58  ;;  %v1422_v14 = vadd.f32 %v1421_v51, %v1420_v29 }
 0x15d   : > { %v933_v35 = vpop.f32.mrf.mxu0 }
 0x15e   : > { %v1043_v9 = vadd.f32 %v1042_v0, %v933_v35 }
 0x160   : > { %v1349_v7 = vadd.f32 %v1318_v36, %v1043_v9 }
 0x162   : > { %v1459_v47 = vpack.c.bf16 %v1349_v7, %v1349_v7  ;;  %v1402_v50 = vmul.f32 %v1349_v7, %v1349_v7  ;;  %v1370_v60 = vsel %vm627_vm6, %v1349_v7, 0.0 }
 0x163   : > { %v1320_v30 = vpop.f32.mrf.mxu2  ;;  %v1371_v3 = vadd.f32 %v1370_v60, %v1369_v12 }
 0x164   : > { %1476 = vst.msk [vmem:[%s3023_s7 + $0x18] sm:$0xf] %vm1469_vm9, %v1459_v47  ;;  %v1044_v23 = vpop.f32.mrf.mxu1  ;;  %v1423_v27 = vsel %vm627_vm6, %v1402_v50, 0.0 }
 0x165   : > { %v935_v48 = vpop.f32.mrf.mxu0  ;;  %v1424_v36 = vadd.f32 %v1423_v27, %v1422_v14 }
 0x166   : > { %v1045_v16 = vadd.f32 %v1044_v23, %v935_v48 }
 0x168   : > { %v1350_v46 = vadd.f32 %v1320_v30, %v1045_v16 }
 0x16a   : > { %v1460_v43 = vpack.c.bf16 %v1350_v46, %v1350_v46  ;;  %v1403_v52 = vmul.f32 %v1350_v46, %v1350_v46  ;;  %v1372_v62 = vsel %vm627_vm6, %v1350_v46, 0.0 }
 0x16b   : > { %v1062_v45 = vpop.f32.mrf.mxu3  ;;  %v1373_v55 = vadd.f32 %v1372_v62, %v1371_v3 }
 0x16c   : > { %1477 = vst.msk [vmem:[%s3023_s7 + $0x1c] sm:$0xf] %vm1469_vm9, %v1460_v43  ;;  %v1425_v41 = vsel %vm627_vm6, %v1403_v52, 0.0  ;;  %v1063_v35 = vadd.f32 %v1062_v45, %v3049_v39 }
 0x16d   : > { %v1426_v23 = vadd.f32 %v1425_v41, %v1424_v36 }
 0x172   : > { %v1323_v26 = vpop.f32.mrf.mxu2 }
 0x173   : > { %v3061_v63 = vpop.f32.mrf.mxu3 }
 0x174   : > { %v938_v4 = vpop.f32.mrf.mxu0  ;;  %v1047_v8 = vpop.f32.mrf.mxu1 }
 0x175   : > { %v1048_v21 = vadd.f32 %v1047_v8, %v938_v4 }
 0x177   : > { %v1351_v17 = vadd.f32 %v1323_v26, %v1048_v21 }
 0x179   : > { %v1461_v20 = vpack.c.bf16 %v1351_v17, %v1351_v17  ;;  %v1404_v6 = vmul.f32 %v1351_v17, %v1351_v17  ;;  %v1374_v44 = vsel %vm627_vm6, %v1351_v17, 0.0 }
 0x17a   : > { %v1325_v19 = vpop.f32.mrf.mxu2  ;;  %v1375_v48 = vadd.f32 %v1374_v44, %v1373_v55 }
 0x17b   : > { %1478 = vst.msk [vmem:[%s3023_s7 + $0x20] sm:$0xf] %vm1469_vm9, %v1461_v20  ;;  %v1427_v53 = vsel %vm627_vm6, %v1404_v6, 0.0 }
 0x17c   : > { %v940_v15 = vpop.f32.mrf.mxu0  ;;  %v1049_v57 = vpop.f32.mrf.mxu1  ;;  %v1428_v39 = vadd.f32 %v1427_v53, %v1426_v23 }
 0x17d   : > { %v1050_v10 = vadd.f32 %v1049_v57, %v940_v15 }
 0x17f   : > { %v1352_v54 = vadd.f32 %v1325_v19, %v1050_v10 }
 0x181   : > { %v1462_v56 = vpack.c.bf16 %v1352_v54, %v1352_v54  ;;  %v1405_v22 = vmul.f32 %v1352_v54, %v1352_v54  ;;  %v1376_v9 = vsel %vm627_vm6, %v1352_v54, 0.0 }
 0x182   : > { %v1333_v18 = vpop.f32.mrf.mxu3  ;;  %v1377_v45 = vadd.f32 %v1376_v9, %v1375_v48 }
 0x183   : > { %1479 = vst.msk [vmem:[%s3023_s7 + $0x24] sm:$0xf] %vm1469_vm9, %v1462_v56  ;;  %v3068_v5 = vadd.f32 %v1333_v18, %v1058_v13  ;;  %v1328_v38 = vpop.f32.mrf.mxu2  ;;  %v1429_v46 = vsel %vm627_vm6, %v1405_v22, 0.0  ;;  %v1065_v13 = vadd.f32 %v3061_v63, %v3051_v59 }
 0x184   : > { %v1430_v20 = vadd.f32 %v1429_v46, %v1428_v39 }
 0x185   : > { %v1465_v2 = vpack.c.bf16 %v3068_v5, %v3068_v5  ;;  %v1052_v25 = vpop.f32.mrf.mxu1  ;;  %v1408_v57 = vmul.f32 %v3068_v5, %v3068_v5 }
 0x187   : > { %1482 = vst.msk [vmem:[%s3023_s7 + $0x30] sm:$0xf] %vm1469_vm9, %v1465_v2  ;;  %v1382_v2 = vsel %vm627_vm6, %v3068_v5, 0.0  ;;  %v1435_v59 = vsel %vm627_vm6, %v1408_v57, 0.0 }
 0x18a   : > { %v1335_v49 = vpop.f32.mrf.mxu3 }
 0x18b   : > { %v3078_v37 = vadd.f32 %v1335_v49, %v1060_v34  ;;  %v1330_v4 = vpop.f32.mrf.mxu2 }
 0x18c   : > { %v943_v28 = vpop.f32.mrf.mxu0 }
 0x18d   : > { %v1466_v58 = vpack.c.bf16 %v3078_v37, %v3078_v37  ;;  %v1053_v1 = vadd.f32 %v1052_v25, %v943_v28  ;;  %v1054_v16 = vpop.f32.mrf.mxu1  ;;  %v1409_v33 = vmul.f32 %v3078_v37, %v3078_v37  ;;  %v1384_v63 = vsel %vm627_vm6, %v3078_v37, 0.0 }
 0x18f   : > { %1483 = vst.msk [vmem:[%s3023_s7 + $0x34] sm:$0xf] %vm1469_vm9, %v1466_v58  ;;  %v1353_v32 = vadd.f32 %v1328_v38, %v1053_v1  ;;  %v1437_v50 = vsel %vm627_vm6, %v1409_v33, 0.0 }
 0x191   : > { %v1463_v0 = vpack.c.bf16 %v1353_v32, %v1353_v32  ;;  %v1406_v7 = vmul.f32 %v1353_v32, %v1353_v32  ;;  %v1378_v43 = vsel %vm627_vm6, %v1353_v32, 0.0 }
 0x192   : > { %v1379_v15 = vadd.f32 %v1378_v43, %v1377_v45 }
 0x193   : > { %1480 = vst.msk [vmem:[%s3023_s7 + $0x28] sm:$0xf] %vm1469_vm9, %v1463_v0  ;;  %v1338_v47 = vpop.f32.mrf.mxu3  ;;  %v1431_v21 = vsel %vm627_vm6, %v1406_v7, 0.0 }
 0x194   : > { %v1357_v30 = vadd.f32 %v1338_v47, %v1063_v35  ;;  %v945_v61 = vpop.f32.mrf.mxu0  ;;  %v1432_v56 = vadd.f32 %v1431_v21, %v1430_v20 }
 0x195   : > { %v1055_v26 = vadd.f32 %v1054_v16, %v945_v61 }
 0x196   : > { %v1467_v8 = vpack.c.bf16 %v1357_v30, %v1357_v30  ;;  %v1410_v11 = vmul.f32 %v1357_v30, %v1357_v30  ;;  %v1386_v40 = vsel %vm627_vm6, %v1357_v30, 0.0 }
 0x197   : > { %v1354_v17 = vadd.f32 %v1330_v4, %v1055_v26 }
 0x198   : > { %1484 = vst.msk [vmem:[%s3023_s7 + $0x38] sm:$0xf] %vm1469_vm9, %v1467_v8  ;;  %v1439_v52 = vsel %vm627_vm6, %v1410_v11, 0.0 }
 0x199   : > { %v1380_v10 = vsel %vm627_vm6, %v1354_v17, 0.0  ;;  %v1407_v19 = vmul.f32 %v1354_v17, %v1354_v17  ;;  %v1464_v54 = vpack.c.bf16 %v1354_v17, %v1354_v17 }
 0x19a   : > { %v1381_v18 = vadd.f32 %v1380_v10, %v1379_v15 }
 0x19b   : > { %v1433_v42 = vsel %vm627_vm6, %v1407_v19, 0.0  ;;  %1481 = vst.msk [vmem:[%s3023_s7 + $0x2c] sm:$0xf] %vm1469_vm9, %v1464_v54  ;;  %v1340_v24 = vpop.f32.mrf.mxu3 }
 0x19c   : > { %v1383_v34 = vadd.f32 %v1382_v2, %v1381_v18  ;;  %v1434_v25 = vadd.f32 %v1433_v42, %v1432_v56  ;;  %v1358_v49 = vadd.f32 %v1340_v24, %v1065_v13 }
 0x19e   : > { %v1436_v5 = vadd.f32 %v1435_v59, %v1434_v25  ;;  %v1385_v31 = vadd.f32 %v1384_v63, %v1383_v34  ;;  %v1411_v51 = vmul.f32 %v1358_v49, %v1358_v49  ;;  %v1468_v38 = vpack.c.bf16 %v1358_v49, %v1358_v49 }
 0x19f   : > { %v1388_v58 = vsel %vm627_vm6, %v1358_v49, 0.0 }
 0x1a0   : > { %v1387_v28 = vadd.f32 %v1386_v40, %v1385_v31  ;;  %v1438_v60 = vadd.f32 %v1437_v50, %v1436_v5  ;;  %1485 = vst.msk [vmem:[%s3023_s7 + $0x3c] sm:$0xf] %vm1469_vm9, %v1468_v38  ;;  %v1441_v29 = vsel %vm627_vm6, %v1411_v51, 0.0 }
 0x1a2   : > { %v1389_v37 = vadd.f32 %v1388_v58, %v1387_v28  ;;  %v1440_v1 = vadd.f32 %v1439_v52, %v1438_v60 }
 0x1a4   : > { %v1390_v12 = vrot.slane %v1389_v37, 4  ;;  %v1442_v27 = vadd.f32 %v1441_v29, %v1440_v1 }
 0x1a6   : > { %v1391_v62 = vadd.f32 %v1390_v12, %v1389_v37  ;;  %v1443_v6 = vrot.slane %v1442_v27, 4 }
 0x1a8   : > { %v1392_v32 = vrot.slane %v1391_v62, 2  ;;  %v1444_v14 = vadd.f32 %v1443_v6, %v1442_v27 }
 0x1aa   : > { %v1393_v3 = vadd.f32 %v1392_v32, %v1391_v62  ;;  %v1445_v41 = vrot.slane %v1444_v14, 2 }
 0x1ac   : > { %v1394_v44 = vrot.slane %v1393_v3, 1  ;;  %v1446_v22 = vadd.f32 %v1445_v41, %v1444_v14 }
 0x1ae   : > { %v1447_v0 = vrot.slane %v1446_v22, 1  ;;  %v1395_v36 = vadd.f32 %v1394_v44, %v1393_v3 }
 0x1b0   : > { %v1448_v55 = vadd.f32 %v1447_v0, %v1446_v22 }
 0x1b2   : > { %v1450_v35 = vsel %vm1449_vm10, %v1395_v36, %v1448_v55 }
 0x1b3   : > { %1452 = vst.msk [vmem:[%s243_s14] sm:$0x3] %vm1451_vm11, %v1450_v35 }
 0x1b4 PF: > { %s15_s19 = sadd.s32 1, %s2180_s19   ;;  %s3195_s15 = smov %s2172_s17 }
 0x1b5   : > { %p12_p12 = scmp.ge.s32.totalorder %s15_s19, 6   ;;  %s3196_s16 = smov %s2176_s18 }
 0x1b6   : > { %s3197_s17 = smov %s3200_s20  ;;  %s3198_s18 = smov %s3204_s21 }
 0x1b7   :  { %14 = sbr.rel (!%p12_p12) target bundleno = 3 (0x3), region = 79 }

</bundles_post_ra>
